<compile_context>
chip_gen: v7x
topology: tpu7x:2x2x1
jax: 0.10.0
libtpu: 0.0.40
codegen_flags: <defaults>
</compile_context>

<pallas_src>
import functools

import jax
import jax.numpy as jnp
from jax import lax
from jax.experimental import pallas as pl
from jax.experimental.pallas import tpu as pltpu


def _pair(v):
    return (v, v) if isinstance(v, int) else tuple(v)


def _tile_vmem_bytes(shape, itemsize):
    """Approx VMEM footprint of a block with dtype-correct (sublane,128) padding."""
    sub_pack = max(8, 32 // itemsize)      # 8 for f32, 16 for bf16, 32 for int8/fp8
    if len(shape) == 1:
        return (-(-shape[0] // 128) * 128) * itemsize
    *lead, sub, lane = shape
    sub = -(-sub // sub_pack) * sub_pack
    lane = -(-lane // 128) * 128
    n = 1
    for d in lead:
        n *= d
    return n * sub * lane * itemsize


def _vmem_info():
    """(physical VMEM bytes, per-step tile budget bytes) — generation aware."""
    cap = None
    try:
        cap = getattr(pltpu.get_tpu_info(), "vmem_capacity_bytes", None)
    except Exception:
        cap = None
    if not cap:
        cap = 64 * 1024 * 1024             # conservative fallback (v7x per-core)
    budget = max(8 << 20, min(int(cap) // 3, 48 << 20))
    return int(cap), int(budget)


def _pick_tiles(N, C, H, W, Hp, Wp, kh, kw, out_h, out_w, merged_L,
                itemsize, budget):
    """Pick (batch_tile, channel_tile) under a VMEM budget, keeping >=2 steps."""
    L = out_h * out_w
    need_pad = (Hp > H) or (Wp > W)

    def footprint(nb, ct):
        lead = nb * ct
        in_b = 2 * _tile_vmem_bytes((lead, H, W), itemsize)            # dbl-buffered
        if merged_L:
            out_b = 2 * _tile_vmem_bytes((lead, kh * kw, L), itemsize)
        else:
            out_b = 2 * _tile_vmem_bytes((lead * kh * kw, out_h, out_w), itemsize)
        pad_b = _tile_vmem_bytes((lead, Hp, Wp), itemsize) if need_pad else 0
        return in_b + out_b + pad_b

    eff = int(budget * 0.75)   # ~25% headroom for unrolled-loop temporaries/spills

    c_tile = 1
    for ct in range(C, 0, -1):
        if C % ct == 0 and footprint(1, ct) <= eff:
            c_tile = ct
            break

    # Fold batch into the block while per-step work is tiny and budget permits,
    # but never drop below 2 grid steps (keeps both v7x TensorCores busy).
    nb = 1
    target = 4 << 20
    for cand in range(2, N + 1):
        if N % cand:
            continue
        if (N // cand) * (C // c_tile) < 2:
            break
        if footprint(cand, c_tile) > eff:
            break
        if footprint(nb, c_tile) >= target:
            break
        nb = cand
    return nb, c_tile


def _unfold_kernel(x_ref, o_ref, *scratch, nb, c_blk, h, w, kh, kw,
                   dh, dw, ph, pw, sh, sw, out_h, out_w, merged_L):
    # x_ref : (nb, c_blk, H, W) unpadded image block
    # o_ref : (nb, c_blk, kh*kw, L) or (nb, c_blk, kh*kw, out_h, out_w)
    L = out_h * out_w
    span_w = (out_w - 1) * sw + 1

    if scratch:
        pad_ref, = scratch
        wp = w + 2 * pw
        # Zero only the halo — the interior is fully overwritten below.  Re-done
        # every step: scratch is per-core and the parallel grid may be
        # megacore-sharded, so step-0 gating would be unsafe.
        if ph > 0:
            zrow = jnp.zeros((nb, c_blk, ph, wp), pad_ref.dtype)
            pad_ref[:, :, pl.ds(0, ph), :] = zrow
            pad_ref[:, :, pl.ds(ph + h, ph), :] = zrow
        if pw > 0:
            zcol = jnp.zeros((nb, c_blk, h, pw), pad_ref.dtype)
            pad_ref[:, :, pl.ds(ph, h), pl.ds(0, pw)] = zcol
            pad_ref[:, :, pl.ds(ph, h), pl.ds(pw + w, pw)] = zcol
        # TODO(synk): DMA x straight into the slab interior (pl.ANY input +
        # make_async_copy) to drop this VMEM->VMEM copy — biggest win on v5e.
        pad_ref[:, :, pl.ds(ph, h), pl.ds(pw, w)] = x_ref[...]
        src = pad_ref
    else:
        src = x_ref

    def load(r0, c0):
        if sh > 1:
            rows = src[:, :, pl.ds(r0, out_h, stride=sh), pl.ds(c0, span_w)]
        else:
            rows = src[:, :, pl.ds(r0, out_h), pl.ds(c0, span_w)]
        if sw > 1:
            # TODO(synk): lane-strided compaction for stride_w > 1 is unexercised.
            rows = rows[:, :, :, ::sw]
        return rows

    def store(idx, blk):
        if merged_L:
            o_ref[:, :, pl.ds(idx, 1), :] = jnp.reshape(blk, (nb, c_blk, 1, L))
        else:
            o_ref[:, :, pl.ds(idx, 1), :, :] = jnp.reshape(
                blk, (nb, c_blk, 1, out_h, out_w))

    if kh * kw >= 16 and sh == 1:
        # Large kernels: bounded loop over kernel rows keeps vreg pressure flat
        # (only kw slice/store chains live at once instead of kh*kw).
        def body(ki, carry):
            r0 = ki * dh
            for kj in range(kw):
                store(ki * kw + kj, load(r0, kj * dw))
            return carry
        lax.fori_loop(0, kh, body, 0)
    else:
        # Small kernels: static full unroll, zero loop overhead.
        for ki in range(kh):
            for kj in range(kw):
                store(ki * kw + kj, load(ki * dh, kj * dw))


def pallas_unfold(x, kernel_size, dilation=1, padding=0, stride=1):
    """F.unfold(x, kernel_size, dilation, padding, stride) for NCHW input."""
    kh, kw = _pair(kernel_size)
    dh, dw = _pair(dilation)
    ph, pw = _pair(padding)
    sh, sw = _pair(stride)

    N, C, H, W = x.shape
    out_h = (H + 2 * ph - dh * (kh - 1) - 1) // sh + 1
    out_w = (W + 2 * pw - dw * (kw - 1) - 1) // sw + 1
    Hp, Wp = H + 2 * ph, W + 2 * pw
    L = out_h * out_w
    KK = kh * kw

    itemsize = jnp.dtype(x.dtype).itemsize
    # out_w >= 128: dense (out_h, out_w) stores; otherwise lane-merged (1, L).
    merged_L = out_w < 128

    cap, budget = _vmem_info()
    nb, c_tile = _pick_tiles(N, C, H, W, Hp, Wp, kh, kw, out_h, out_w,
                             merged_L, itemsize, budget)
    need_pad = (ph > 0) or (pw > 0)

    kernel = functools.partial(
        _unfold_kernel, nb=nb, c_blk=c_tile, h=H, w=W, kh=kh, kw=kw,
        dh=dh, dw=dw, ph=ph, pw=pw, sh=sh, sw=sw,
        out_h=out_h, out_w=out_w, merged_L=merged_L)

    scratch_shapes = ([pltpu.VMEM((nb, c_tile, Hp, Wp), x.dtype)]
                      if need_pad else [])

    if merged_L:
        out_shape = jax.ShapeDtypeStruct((N, C, KK, L), x.dtype)
        out_spec = pl.BlockSpec((nb, c_tile, KK, L), lambda n, c: (n, c, 0, 0))
    else:
        out_shape = jax.ShapeDtypeStruct((N, C, KK, out_h, out_w), x.dtype)
        out_spec = pl.BlockSpec((nb, c_tile, KK, out_h, out_w),
                                lambda n, c: (n, c, 0, 0, 0))

    bytes_accessed = N * C * (H * W + KK * L) * itemsize
    cols = pl.pallas_call(
        kernel,
        out_shape=out_shape,
        grid_spec=pltpu.PrefetchScalarGridSpec(
            num_scalar_prefetch=0,
            grid=(N // nb, C // c_tile),
            in_specs=[pl.BlockSpec((nb, c_tile, H, W),
                                   lambda n, c: (n, c, 0, 0))],
            out_specs=out_spec,
            scratch_shapes=scratch_shapes,
        ),
        compiler_params=pltpu.CompilerParams(
            dimension_semantics=("parallel", "parallel"),
            vmem_limit_bytes=int(min(cap, max(2 * budget, 32 << 20))),
        ),
        cost_estimate=pl.CostEstimate(
            flops=0, transcendentals=0, bytes_accessed=bytes_accessed),
    )(x)

    # Free reshape (merges adjacent dims only) to torch's (N, C*kh*kw, L).
    return cols.reshape(N, C * KK, L)


def unfold_ref(x, kernel_size, dilation=1, padding=0, stride=1):
    """Pure-JAX reference matching torch.nn.functional.unfold semantics."""
    kh, kw = _pair(kernel_size)
    dh, dw = _pair(dilation)
    ph, pw = _pair(padding)
    sh, sw = _pair(stride)
    N, C, H, W = x.shape
    out_h = (H + 2 * ph - dh * (kh - 1) - 1) // sh + 1
    out_w = (W + 2 * pw - dw * (kw - 1) - 1) // sw + 1
    xp = jnp.pad(x, ((0, 0), (0, 0), (ph, ph), (pw, pw)))
    patches = []
    for ki in range(kh):
        for kj in range(kw):
            r0, c0 = ki * dh, kj * dw
            patch = xp[:, :, r0:r0 + (out_h - 1) * sh + 1:sh,
                             c0:c0 + (out_w - 1) * sw + 1:sw]
            patches.append(patch)
    stacked = jnp.stack(patches, axis=2)          # (N, C, kh*kw, out_h, out_w)
    return stacked.reshape(N, C * kh * kw, out_h * out_w)


if __name__ == "__main__":
    key = jax.random.PRNGKey(0)
    # Shapes consistent with an NCHW unfold: batch=2, channels=4, spatial=16x16.
    x = jax.random.normal(key, (2, 4, 16, 16), dtype=jnp.float32)

    configs = [
        # 3x3 kernel, dilation=1, padding=1, stride=1 -> (2, 36, 256)
        dict(kernel_size=3, dilation=1, padding=1, stride=1),
        # 3x3 kernel, dilation=2, padding=2, stride=1 -> (2, 36, 256)
        dict(kernel_size=3, dilation=2, padding=2, stride=1),
        # 2x2 kernel, no padding -> (2, 16, 225)   (exercises the no-pad branch)
        dict(kernel_size=2, dilation=1, padding=0, stride=1),
        # 5x5 kernel, padding=2 -> (2, 100, 256)   (exercises the fori_loop path)
        dict(kernel_size=5, dilation=1, padding=2, stride=1),
    ]
    for cfg in configs:
        out = pallas_unfold(x, **cfg)
        out = jax.block_until_ready(out)
        ref = unfold_ref(x, **cfg)
        assert out.shape == ref.shape, (cfg, out.shape, ref.shape)
        assert jnp.array_equal(out, ref), ("mismatch vs reference", cfg)

    print("KERNEL_OK")
</pallas_src>

<mosaic_0001>
module attributes {stable_mosaic.version = 11 : i64} {
  func.func @_unfold_kernel(%arg0: i32, %arg1: i32, %arg2: memref<1x4x16x16xf32, #tpu.memory_space<vmem>>, %arg3: memref<1x4x9x256xf32, #tpu.memory_space<vmem>>, %arg4: memref<1x4x18x18xf32, #tpu.memory_space<vmem>>) attributes {dimension_semantics = [#tpu.dimension_semantics<parallel>, #tpu.dimension_semantics<parallel>], iteration_bounds = array<i64: 2, 1>, scalar_prefetch = 0 : i64, scratch_operands = 1 : i64, tpu.core_type = #tpu.core_type<tc>, window_params = [{transform_indices = @transform_0, window_bounds = array<i64: 1, 4, 16, 16>}, {transform_indices = @transform_1, window_bounds = array<i64: 1, 4, 9, 256>}]} {
    %cst = arith.constant 0.000000e+00 : f32
    %0 = vector.broadcast %cst : f32 to vector<1x4x1x18xf32>
    %c0 = arith.constant 0 : index
    %c0_0 = arith.constant 0 : index
    %c0_1 = arith.constant 0 : index
    %c0_2 = arith.constant 0 : index
    %1 = vector.load %arg4[%c0, %c0_0, %c0_1, %c0_2] : memref<1x4x18x18xf32, #tpu.memory_space<vmem>>, vector<1x4x1x18xf32>
    tpu.vector_store %arg4[%c0, %c0_0, %c0_1, %c0_2], %0 {strides = array<i32>} : memref<1x4x18x18xf32, #tpu.memory_space<vmem>>, vector<1x4x1x18xf32>,
    %c0_3 = arith.constant 0 : index
    %c0_4 = arith.constant 0 : index
    %c17 = arith.constant 17 : index
    %c0_5 = arith.constant 0 : index
    %2 = vector.load %arg4[%c0_3, %c0_4, %c17, %c0_5] : memref<1x4x18x18xf32, #tpu.memory_space<vmem>>, vector<1x4x1x18xf32>
    tpu.vector_store %arg4[%c0_3, %c0_4, %c17, %c0_5], %0 {strides = array<i32>} : memref<1x4x18x18xf32, #tpu.memory_space<vmem>>, vector<1x4x1x18xf32>,
    %cst_6 = arith.constant 0.000000e+00 : f32
    %3 = vector.broadcast %cst_6 : f32 to vector<1x4x16x1xf32>
    %c0_7 = arith.constant 0 : index
    %c0_8 = arith.constant 0 : index
    %c1 = arith.constant 1 : index
    %c0_9 = arith.constant 0 : index
    %4 = vector.load %arg4[%c0_7, %c0_8, %c1, %c0_9] : memref<1x4x18x18xf32, #tpu.memory_space<vmem>>, vector<1x4x16x1xf32>
    tpu.vector_store %arg4[%c0_7, %c0_8, %c1, %c0_9], %3 {strides = array<i32>} : memref<1x4x18x18xf32, #tpu.memory_space<vmem>>, vector<1x4x16x1xf32>,
    %c0_10 = arith.constant 0 : index
    %c0_11 = arith.constant 0 : index
    %c1_12 = arith.constant 1 : index
    %c17_13 = arith.constant 17 : index
    %5 = vector.load %arg4[%c0_10, %c0_11, %c1_12, %c17_13] : memref<1x4x18x18xf32, #tpu.memory_space<vmem>>, vector<1x4x16x1xf32>
    tpu.vector_store %arg4[%c0_10, %c0_11, %c1_12, %c17_13], %3 {strides = array<i32>} : memref<1x4x18x18xf32, #tpu.memory_space<vmem>>, vector<1x4x16x1xf32>,
    %c0_14 = arith.constant 0 : index
    %c0_15 = arith.constant 0 : index
    %c0_16 = arith.constant 0 : index
    %c0_17 = arith.constant 0 : index
    %6 = vector.load %arg2[%c0_14, %c0_15, %c0_16, %c0_17] : memref<1x4x16x16xf32, #tpu.memory_space<vmem>>, vector<1x4x16x16xf32>
    %c0_18 = arith.constant 0 : index
    %c0_19 = arith.constant 0 : index
    %c1_20 = arith.constant 1 : index
    %c1_21 = arith.constant 1 : index
    %7 = vector.load %arg4[%c0_18, %c0_19, %c1_20, %c1_21] : memref<1x4x18x18xf32, #tpu.memory_space<vmem>>, vector<1x4x16x16xf32>
    tpu.vector_store %arg4[%c0_18, %c0_19, %c1_20, %c1_21], %6 {strides = array<i32>} : memref<1x4x18x18xf32, #tpu.memory_space<vmem>>, vector<1x4x16x16xf32>,
    %c0_22 = arith.constant 0 : index
    %c0_23 = arith.constant 0 : index
    %c0_24 = arith.constant 0 : index
    %c0_25 = arith.constant 0 : index
    %8 = vector.load %arg4[%c0_22, %c0_23, %c0_24, %c0_25] : memref<1x4x18x18xf32, #tpu.memory_space<vmem>>, vector<1x4x16x16xf32>
    %9 = vector.shape_cast %8 : vector<1x4x16x16xf32> to vector<1x4x1x256xf32>
    %c0_26 = arith.constant 0 : index
    %c0_27 = arith.constant 0 : index
    %c0_28 = arith.constant 0 : index
    %c0_29 = arith.constant 0 : index
    %10 = vector.load %arg3[%c0_26, %c0_27, %c0_28, %c0_29] : memref<1x4x9x256xf32, #tpu.memory_space<vmem>>, vector<1x4x1x256xf32>
    tpu.vector_store %arg3[%c0_26, %c0_27, %c0_28, %c0_29], %9 {strides = array<i32>} : memref<1x4x9x256xf32, #tpu.memory_space<vmem>>, vector<1x4x1x256xf32>,
    %c0_30 = arith.constant 0 : index
    %c0_31 = arith.constant 0 : index
    %c0_32 = arith.constant 0 : index
    %c1_33 = arith.constant 1 : index
    %11 = vector.load %arg4[%c0_30, %c0_31, %c0_32, %c1_33] : memref<1x4x18x18xf32, #tpu.memory_space<vmem>>, vector<1x4x16x16xf32>
    %12 = vector.shape_cast %11 : vector<1x4x16x16xf32> to vector<1x4x1x256xf32>
    %c0_34 = arith.constant 0 : index
    %c0_35 = arith.constant 0 : index
    %c1_36 = arith.constant 1 : index
    %c0_37 = arith.constant 0 : index
    %13 = vector.load %arg3[%c0_34, %c0_35, %c1_36, %c0_37] : memref<1x4x9x256xf32, #tpu.memory_space<vmem>>, vector<1x4x1x256xf32>
    tpu.vector_store %arg3[%c0_34, %c0_35, %c1_36, %c0_37], %12 {strides = array<i32>} : memref<1x4x9x256xf32, #tpu.memory_space<vmem>>, vector<1x4x1x256xf32>,
    %c0_38 = arith.constant 0 : index
    %c0_39 = arith.constant 0 : index
    %c0_40 = arith.constant 0 : index
    %c2 = arith.constant 2 : index
    %14 = vector.load %arg4[%c0_38, %c0_39, %c0_40, %c2] : memref<1x4x18x18xf32, #tpu.memory_space<vmem>>, vector<1x4x16x16xf32>
    %15 = vector.shape_cast %14 : vector<1x4x16x16xf32> to vector<1x4x1x256xf32>
    %c0_41 = arith.constant 0 : index
    %c0_42 = arith.constant 0 : index
    %c2_43 = arith.constant 2 : index
    %c0_44 = arith.constant 0 : index
    %16 = vector.load %arg3[%c0_41, %c0_42, %c2_43, %c0_44] : memref<1x4x9x256xf32, #tpu.memory_space<vmem>>, vector<1x4x1x256xf32>
    tpu.vector_store %arg3[%c0_41, %c0_42, %c2_43, %c0_44], %15 {strides = array<i32>} : memref<1x4x9x256xf32, #tpu.memory_space<vmem>>, vector<1x4x1x256xf32>,
    %c0_45 = arith.constant 0 : index
    %c0_46 = arith.constant 0 : index
    %c1_47 = arith.constant 1 : index
    %c0_48 = arith.constant 0 : index
    %17 = vector.load %arg4[%c0_45, %c0_46, %c1_47, %c0_48] : memref<1x4x18x18xf32, #tpu.memory_space<vmem>>, vector<1x4x16x16xf32>
    %18 = vector.shape_cast %17 : vector<1x4x16x16xf32> to vector<1x4x1x256xf32>
    %c0_49 = arith.constant 0 : index
    %c0_50 = arith.constant 0 : index
    %c3 = arith.constant 3 : index
    %c0_51 = arith.constant 0 : index
    %19 = vector.load %arg3[%c0_49, %c0_50, %c3, %c0_51] : memref<1x4x9x256xf32, #tpu.memory_space<vmem>>, vector<1x4x1x256xf32>
    tpu.vector_store %arg3[%c0_49, %c0_50, %c3, %c0_51], %18 {strides = array<i32>} : memref<1x4x9x256xf32, #tpu.memory_space<vmem>>, vector<1x4x1x256xf32>,
    %c0_52 = arith.constant 0 : index
    %c0_53 = arith.constant 0 : index
    %c1_54 = arith.constant 1 : index
    %c1_55 = arith.constant 1 : index
    %20 = vector.load %arg4[%c0_52, %c0_53, %c1_54, %c1_55] : memref<1x4x18x18xf32, #tpu.memory_space<vmem>>, vector<1x4x16x16xf32>
    %21 = vector.shape_cast %20 : vector<1x4x16x16xf32> to vector<1x4x1x256xf32>
    %c0_56 = arith.constant 0 : index
    %c0_57 = arith.constant 0 : index
    %c4 = arith.constant 4 : index
    %c0_58 = arith.constant 0 : index
    %22 = vector.load %arg3[%c0_56, %c0_57, %c4, %c0_58] : memref<1x4x9x256xf32, #tpu.memory_space<vmem>>, vector<1x4x1x256xf32>
    tpu.vector_store %arg3[%c0_56, %c0_57, %c4, %c0_58], %21 {strides = array<i32>} : memref<1x4x9x256xf32, #tpu.memory_space<vmem>>, vector<1x4x1x256xf32>,
    %c0_59 = arith.constant 0 : index
    %c0_60 = arith.constant 0 : index
    %c1_61 = arith.constant 1 : index
    %c2_62 = arith.constant 2 : index
    %23 = vector.load %arg4[%c0_59, %c0_60, %c1_61, %c2_62] : memref<1x4x18x18xf32, #tpu.memory_space<vmem>>, vector<1x4x16x16xf32>
    %24 = vector.shape_cast %23 : vector<1x4x16x16xf32> to vector<1x4x1x256xf32>
    %c0_63 = arith.constant 0 : index
    %c0_64 = arith.constant 0 : index
    %c5 = arith.constant 5 : index
    %c0_65 = arith.constant 0 : index
    %25 = vector.load %arg3[%c0_63, %c0_64, %c5, %c0_65] : memref<1x4x9x256xf32, #tpu.memory_space<vmem>>, vector<1x4x1x256xf32>
    tpu.vector_store %arg3[%c0_63, %c0_64, %c5, %c0_65], %24 {strides = array<i32>} : memref<1x4x9x256xf32, #tpu.memory_space<vmem>>, vector<1x4x1x256xf32>,
    %c0_66 = arith.constant 0 : index
    %c0_67 = arith.constant 0 : index
    %c2_68 = arith.constant 2 : index
    %c0_69 = arith.constant 0 : index
    %26 = vector.load %arg4[%c0_66, %c0_67, %c2_68, %c0_69] : memref<1x4x18x18xf32, #tpu.memory_space<vmem>>, vector<1x4x16x16xf32>
    %27 = vector.shape_cast %26 : vector<1x4x16x16xf32> to vector<1x4x1x256xf32>
    %c0_70 = arith.constant 0 : index
    %c0_71 = arith.constant 0 : index
    %c6 = arith.constant 6 : index
    %c0_72 = arith.constant 0 : index
    %28 = vector.load %arg3[%c0_70, %c0_71, %c6, %c0_72] : memref<1x4x9x256xf32, #tpu.memory_space<vmem>>, vector<1x4x1x256xf32>
    tpu.vector_store %arg3[%c0_70, %c0_71, %c6, %c0_72], %27 {strides = array<i32>} : memref<1x4x9x256xf32, #tpu.memory_space<vmem>>, vector<1x4x1x256xf32>,
    %c0_73 = arith.constant 0 : index
    %c0_74 = arith.constant 0 : index
    %c2_75 = arith.constant 2 : index
    %c1_76 = arith.constant 1 : index
    %29 = vector.load %arg4[%c0_73, %c0_74, %c2_75, %c1_76] : memref<1x4x18x18xf32, #tpu.memory_space<vmem>>, vector<1x4x16x16xf32>
    %30 = vector.shape_cast %29 : vector<1x4x16x16xf32> to vector<1x4x1x256xf32>
    %c0_77 = arith.constant 0 : index
    %c0_78 = arith.constant 0 : index
    %c7 = arith.constant 7 : index
    %c0_79 = arith.constant 0 : index
    %31 = vector.load %arg3[%c0_77, %c0_78, %c7, %c0_79] : memref<1x4x9x256xf32, #tpu.memory_space<vmem>>, vector<1x4x1x256xf32>
    tpu.vector_store %arg3[%c0_77, %c0_78, %c7, %c0_79], %30 {strides = array<i32>} : memref<1x4x9x256xf32, #tpu.memory_space<vmem>>, vector<1x4x1x256xf32>,
    %c0_80 = arith.constant 0 : index
    %c0_81 = arith.constant 0 : index
    %c2_82 = arith.constant 2 : index
    %c2_83 = arith.constant 2 : index
    %32 = vector.load %arg4[%c0_80, %c0_81, %c2_82, %c2_83] : memref<1x4x18x18xf32, #tpu.memory_space<vmem>>, vector<1x4x16x16xf32>
    %33 = vector.shape_cast %32 : vector<1x4x16x16xf32> to vector<1x4x1x256xf32>
    %c0_84 = arith.constant 0 : index
    %c0_85 = arith.constant 0 : index
    %c8 = arith.constant 8 : index
    %c0_86 = arith.constant 0 : index
    %34 = vector.load %arg3[%c0_84, %c0_85, %c8, %c0_86] : memref<1x4x9x256xf32, #tpu.memory_space<vmem>>, vector<1x4x1x256xf32>
    tpu.vector_store %arg3[%c0_84, %c0_85, %c8, %c0_86], %33 {strides = array<i32>} : memref<1x4x9x256xf32, #tpu.memory_space<vmem>>, vector<1x4x1x256xf32>,
    return
  }
  func.func @transform_0(%arg0: i32, %arg1: i32) -> (i32, i32, i32, i32) {
    %c0_i32 = arith.constant 0 : i32
    %c0_i32_0 = arith.constant 0 : i32
    %c0_i32_1 = arith.constant 0 : i32
    return %arg0, %arg1, %c0_i32, %c0_i32_0 : i32, i32, i32, i32
  }
  func.func @transform_1(%arg0: i32, %arg1: i32) -> (i32, i32, i32, i32) {
    %c0_i32 = arith.constant 0 : i32
    %c0_i32_0 = arith.constant 0 : i32
    %c0_i32_1 = arith.constant 0 : i32
    return %arg0, %arg1, %c0_i32, %c0_i32_0 : i32, i32, i32, i32
  }
}

</mosaic_0001>

<bundles_post_ra>
// kernel: tpu_custom_call.1
= control target key start
LH: loop header
LB: loop body
LE: loop exit
PB: predicated region body
PF: predicated region fallthrough
CT: control target
= control target key end

     0   :  { %6 = vsyncpa [#allocation4], 0  ;;  %s11319_s0 = inlined_call_operand.hbm [shape: f32[2,4,16,16], index: 0, kind: input, shape index: {}]   ;;  %s11320_s1 = inlined_call_operand.vmem [shape: f32[2,4,9,256], index: 1, kind: output, shape index: {}]  }
   0x1   :  { %8 = vsyncpa [#allocation4 + $0x1], 0  ;;  %s7655_s6 = smov 0   ;;  %s7657_s7 = smov 0  }
   0x2   :  { %s7659_s8 = smov 0   ;;  %s7661_s9 = smov 0  }
   0x3   :  { %s7663_s10 = smov 0   ;;  %s7665_s11 = smov 0  }
   0x4 LB: > { %s7423_s12 = sadd.s32 4294967295, %s7626_s11   ;;  %s26_s13 = sadd.s32 1, %s7622_s10  ;;  %s7626_s11 = sphi %s7665_s11, %s14_s11   ;;  %s7622_s10 = sphi %s7663_s10, %s11568_s10   ;;  %s7618_s9 = sphi %s7661_s9, %s11567_s9   ;;  %s7614_s8 = sphi %s7659_s8, %s11566_s8   ;;  %s7610_s7 = sphi %s7657_s7, %s11565_s7   ;;  %s7606_s6 = sphi %s7655_s6, %s11564_s6  }
   0x5   : > { %p28_p0 = scmp.ge.s32.totalorder %s26_s13, 2  ;;  %s35_s14 = sadd.s32 1, %s7614_s8 }
   0x6   : > { %p42_p1 = scmp.ne.s32.totalorder %s7614_s8, %s7610_s7  ;;  %p43_p2 = scmp.eq.s32.totalorder %s7626_s11, 0 }
   0x7   : > { %s11570_s13 = smov (%p28_p0, %s26_s13), 0  ;;  %p48_p4 = scmp.ne.s32.totalorder %s7610_s7, %s7606_s6 }
   0x8   : > { %p7691_p3 = por %p43_p2, %p42_p1  ;;  %s30_s16 = ssub.s32 %s7622_s10, %s11570_s13 }
   0x9   : > { %p49_p5 = scmp.eq.s32.totalorder %s7423_s12, 0  ;;  %p33_p6 = scmp.eq.s32.totalorder %s30_s16, 0 }
   0xa   : > { %p7479_p8 = scmp.lt.s32.totalorder %s7626_s11, 2  ;;  %s100_s19 = sand.u32 1, %s7614_s8  }
   0xb   : > { %p7698_p7 = por %p49_p5, %p48_p4  ;;  %s7471_s20 = sshll.u32 %s7622_s10, 10 }
   0xc   : > { %s7704_s18 = scalar_select %p33_p6, %s7614_s8, %s35_s14  }
   0xd   : > { %s7427_s21 = sshll.u32 %s100_s19, 6  ;;  %s7711_s24 = scalar_lea.hbm %s11319_s0, %s7471_s20 }
   0xe   : > { %s104_s25 = scalar_lea.vmem [#allocation3], %s7427_s21  ;;  %p7715_p9 = pnand %p7479_p8, %p7691_p3 }
   0xf   : > { %s114_s26 = sshll.u32 %s104_s25, 4  ;;  %s7721_s28 = scalar_lea.sflag [#allocation4], %s100_s19  ;;  %s7719_s26 = int_to_ptr.vmem [resolvable:$true] %s114_s26 }
  0x10   : > { %s7546_s29 = scalar_lea.hbm %s7711_s24, 1024  ;;  %p7548_p11 = pneg %p7715_p9 }
  0x11   : > { %p7547_p10 = scmp.ne.s32.totalorder %s7711_s24, %s7546_s29  ;;  %s7551_s3 = scalar_lea.hbm %s11319_s0, 2048 }
  0x12   : > { %p7552_p0 = scmp.lt.u32.totalorder %s7711_s24, %s11319_s0  ;;  %p7553_p1 = scmp.lt.u32.totalorder %s7551_s3, %s7546_s29 }
  0x13   : > { %p7549_p12 = pnand %p7548_p11, %p7547_p10  ;;  %p7555_p3 = scmp.lt.u32.totalorder %s7546_s29, %s7711_s24 }
  0x14   : > { %p7554_p2 = por %p7553_p1, %p7552_p0 }
  0x15   : > { %p7550_p13 = pneg %p7549_p12 }
  0x16   : > { %p7556_p4 = por %p7555_p3, %p7554_p2 }
  0x18   : > { %p7557_p5 = pnand %p7556_p4, %p7550_p13 }
  0x1a   : > { %7560 = shalt.err (!%p7557_p5)
}
  0x1b   : > { %s7561_s6 = scalar_lea.vmem %s7719_s26, 1024  ;;  %s7628_s12 = smov [#allocation3]  }
  0x1c   : > { %p7562_p6 = scmp.ne.s32.totalorder %s7719_s26, %s7561_s6  ;;  %s7566_s14 = sshll.u32 %s7628_s12, 4  ;;  %s7567_s14 = int_to_ptr.vmem [resolvable:$false] %s7566_s14 }
  0x1d   : > { %s7568_s15 = scalar_lea.vmem %s7567_s14, 2048  ;;  %p7569_p12 = scmp.lt.s32.totalorder %s7719_s26, %s7567_s14 }
  0x1e   : > { %p7564_p8 = pnand %p7562_p6, %p7548_p11  ;;  %p7570_p0 = scmp.lt.s32.totalorder %s7568_s15, %s7561_s6 }
  0x20   : > { %p7565_p10 = pneg %p7564_p8  ;;  %p7571_p1 = por %p7570_p0, %p7569_p12 }
  0x22   : > { %p7572_p2 = pnand %p7571_p1, %p7565_p10 }
  0x24   : > { %7575 = shalt.err (!%p7572_p2)
}
  0x25   : > { %s7629_s16 = smov 128   ;;  %s7630_s19 = smov 8  }
  0x26   : > { %7478 = dma.hbm_to_vmem [thread:$0]  (!%p7715_p9), %s7711_s24, 1024, %s7719_s26, %s7721_s28, %s7629_s16, %s7629_s16, %s7630_s19  }
  0x27   : > { %p7430_p11 = scmp.ge.s32.totalorder %s7626_s11, 1  ;;  %p122_p13 = scmp.lt.s32.totalorder %s7626_s11, 3 }
  0x29   : > { %p123_p3 = pnand %p7430_p11, %p122_p13 }
  0x2b   : > { %126 = sbr.rel (%p123_p3) target bundleno = 1947 (0x79b), region = 24 }
  0x32   : > { %s128_s20 = sand.u32 1, %s7610_s7  }
  0x33   : > { %s7431_s21 = sshll.u32 %s128_s20, 6  ;;  %s129_s22 = scalar_lea.sflag [#allocation4], %s128_s20 }
  0x34   : > { %s7752_s23 = scalar_lea.vmem [#allocation3], %s7431_s21 }
  0x35   : > { %7601 = dma.done.wait (%p7698_p7), %s129_s22, 1024  }
  0x36   : > { %7603 = vsyncadd (%p7698_p7), %s129_s22, 4294966272  ;;  %vm177_vm0 = vcmask 7168   ;;  %vm186_vm1 = vcmask 146568   ;;  %v11324_v0 = vmov 0.0   ;;  %vm168_vm2 = vcmask 139264   ;;  %v197_v1 = vld [vmem:[%s7752_s23 + $0x10] sm:$0xff] }
  0x37   : > { %180 = vst.msk [vmem:[#allocation2 + $0x19] sm:$0xff] %vm177_vm0, %v11324_v0  ;;  %178 = vst.msk [vmem:[#allocation2 + $0x1] sm:$0xff] %vm177_vm0, %v11324_v0  ;;  %v195_v2 = vld [vmem:[%s7752_s23] sm:$0xff]  ;;  %s7632_s17 = smov 1   ;;  %v198_v3 = vld [vmem:[%s7752_s23 + $0x18] sm:$0xff]  ;;  %vm235_vm3 = vcmask 138248   ;;  %v11321_v13 = vlaneseq }
  0x38   : > { %179 = vst.msk [vmem:[#allocation2 + $0x9] sm:$0xff] %vm177_vm0, %v11324_v0  ;;  %181 = vst.msk [vmem:[#allocation2 + $0x21] sm:$0xff] %vm177_vm0, %v11324_v0  ;;  %215 = vrot.lane.b32.xlu1 %v197_v1, %s7632_s17  ;;  %211 = vrot.lane.b32.xlu0 %v195_v2, %s7632_s17  ;;  %v196_v4 = vld [vmem:[%s7752_s23 + $0x8] sm:$0xff]  ;;  %v199_v6 = vld [vmem:[%s7752_s23 + $0x20] sm:$0xff]  ;;  %v7633_v11 = vmov 1983009808  }
  0x39   : > { %182 = vst.msk [vmem:[#allocation2 + $0x31] sm:$0xff] %vm177_vm0, %v11324_v0  ;;  %183 = vst.msk [vmem:[#allocation2 + $0x39] sm:$0xff] %vm177_vm0, %v11324_v0  ;;  %v200_v5 = vld [vmem:[%s7752_s23 + $0x28] sm:$0xff]  ;;  %v202_v7 = vld [vmem:[%s7752_s23 + $0x38] sm:$0xff]  ;;  %v254_v12 = vunpack.c.l.s4 %v7633_v11  ;;  %v7811_v17 = vshrl.u32 %v11321_v13, 7  ;;  %s7635_s24 = smov 127  }
  0x3a   : > { %184 = vst.msk [vmem:[#allocation2 + $0x49] sm:$0xff] %vm177_vm0, %v11324_v0  ;;  %185 = vst.msk [vmem:[#allocation2 + $0x51] sm:$0xff] %vm177_vm0, %v11324_v0  ;;  %v201_v8 = vld [vmem:[%s7752_s23 + $0x30] sm:$0xff]  ;;  %v7634_v18 = vmov 1934713408   ;;  %s7636_s25 = smov 16  }
  0x3b   : > { %189 = vst.msk [vmem:[#allocation2 + $0x19] sm:$0xff] %vm186_vm1, %v11324_v0  ;;  %187 = vst.msk [vmem:[#allocation2 + $0x1] sm:$0xff] %vm186_vm1, %v11324_v0  ;;  %v255_v16 = vunpack.c.0.s8 %v254_v12  ;;  %v269_v19 = vunpack.c.l.s4 %v7634_v18  ;;  %s7637_s26 = smov 32   ;;  %s7638_s27 = smov 64   ;;  %vm868_vm4 = vcmask 130048   ;;  %vm873_vm5 = vcmask 261120  }
  0x3c   : > { %188 = vst.msk [vmem:[#allocation2 + $0x9] sm:$0xff] %vm186_vm1, %v11324_v0  ;;  %190 = vst.msk [vmem:[#allocation2 + $0x21] sm:$0xff] %vm186_vm1, %v11324_v0  ;;  %217 = vrot.lane.b32.xlu1 %v198_v3, %s7632_s17  ;;  %213 = vrot.lane.b32.xlu0 %v196_v4, %s7632_s17  ;;  %s7639_s28 = smov 48   ;;  %s7640_s29 = smov 80   ;;  %vm878_vm6 = vcmask 392192   ;;  %vm883_vm7 = vcmask 523264  }
  0x3d   : > { %191 = vst.msk [vmem:[#allocation2 + $0x31] sm:$0xff] %vm186_vm1, %v11324_v0  ;;  %192 = vst.msk [vmem:[#allocation2 + $0x39] sm:$0xff] %vm186_vm1, %v11324_v0  ;;  %v7820_v24 = vsub.s32 %v255_v16, %v7811_v17  ;;  %v270_v25 = vunpack.c.0.s8 %v269_v19  ;;  %s7641_s30 = smov 96   ;;  %s7642_s2 = smov 112   ;;  %vm888_vm8 = vcmask 654336   ;;  %vm893_vm9 = vcmask 785408  }
  0x3e   : > { %193 = vst.msk [vmem:[#allocation2 + $0x49] sm:$0xff] %vm186_vm1, %v11324_v0  ;;  %194 = vst.msk [vmem:[#allocation2 + $0x51] sm:$0xff] %vm186_vm1, %v11324_v0  ;;  %s7643_s3 = smov 126   ;;  %p158_p7 = scmp.lt.s32.totalorder %s7618_s9, 1  ;;  %vm898_vm10 = vcmask 916480  }
  0x3f   : > { %169 = vst.msk [vmem:[#allocation2] sm:$0x1] %vm168_vm2, %v11324_v0  ;;  %170 = vst.msk [vmem:[#allocation2 + $0x18] sm:$0x1] %vm168_vm2, %v11324_v0  ;;  %v7832_v30 = vsub.s32 %v270_v25, %v7811_v17 }
  0x40   : > { %171 = vst.msk [vmem:[#allocation2 + $0x30] sm:$0x1] %vm168_vm2, %v11324_v0  ;;  %172 = vst.msk [vmem:[#allocation2 + $0x48] sm:$0x1] %vm168_vm2, %v11324_v0  ;;  %221 = vrot.lane.b32.xlu1 %v200_v5, %s7632_s17  ;;  %219 = vrot.lane.b32.xlu0 %v199_v6, %s7632_s17  ;;  %s11572_s9 = smov (!%p158_p7, %s7618_s9), 1 }
  0x41   : > { %173 = vst.msk [vmem:[#allocation2 + $0x11] sm:$0x1] %vm168_vm2, %v11324_v0  ;;  %174 = vst.msk [vmem:[#allocation2 + $0x29] sm:$0x1] %vm168_vm2, %v11324_v0  ;;  %s7472_s4 = sshll.u32 %s11572_s9, 7 }
  0x42   : > { %175 = vst.msk [vmem:[#allocation2 + $0x41] sm:$0x1] %vm168_vm2, %v11324_v0  ;;  %176 = vst.msk [vmem:[#allocation2 + $0x59] sm:$0x1] %vm168_vm2, %v11324_v0  ;;  %s8608_s6 = scalar_lea.vmem %s11320_s1, %s7472_s4 }
  0x43   : > { %11398 = vst [vmem:[#allocation6_spill] sm:$0xff] %v7820_v24  ;;  %11399 = vst [vmem:[#allocation7_spill] sm:$0xff] %v7832_v30 }
  0x44   : > { %225 = vrot.lane.b32.xlu1 %v202_v7, %s7632_s17  ;;  %223 = vrot.lane.b32.xlu0 %v201_v8, %s7632_s17 }
  0xaa   : > { %v216_v9 = vpop.permute.xlu1 %215  ;;  %v212_v10 = vpop.permute.xlu0 %211 }
  0xab   : > { %238 = vst.msk [vmem:[#allocation2 + $0x19] sm:$0xff] %vm235_vm3, %v216_v9  ;;  %236 = vst.msk [vmem:[#allocation2 + $0x1] sm:$0xff] %vm235_vm3, %v212_v10 }
  0xae   : > { %v218_v14 = vpop.permute.xlu1 %217  ;;  %v214_v15 = vpop.permute.xlu0 %213 }
  0xaf   : > { %239 = vst.msk [vmem:[#allocation2 + $0x21] sm:$0xff] %vm235_vm3, %v218_v14  ;;  %237 = vst.msk [vmem:[#allocation2 + $0x9] sm:$0xff] %vm235_vm3, %v214_v15 }
  0xb2   : > { %v222_v20 = vpop.permute.xlu1 %221  ;;  %v220_v21 = vpop.permute.xlu0 %219  ;;  %v7813_v22 = vld [vmem:[#allocation2] sm:$0xff]  ;;  %v1020_v23 = vld [vmem:[#allocation2 + $0x18] sm:$0xff] }
  0xb3   : > { %241 = vst.msk [vmem:[#allocation2 + $0x39] sm:$0xff] %vm235_vm3, %v222_v20  ;;  %240 = vst.msk [vmem:[#allocation2 + $0x31] sm:$0xff] %vm235_vm3, %v220_v21  ;;  %1034 = vrot.lane.b32.xlu0 %v7813_v22, %s7635_s24  ;;  %v259_v29 = vrot.slane %v7813_v22, %v7820_v24  ;;  %v357_v34 = vrot.slane %v1020_v23, %v7820_v24  ;;  %v252_v47 = vcombine.high %v7813_v22, %v11324_v0 }
  0xb4   : > { %v350_v53 = vcombine.high %v1020_v23, %v11324_v0 }
  0xb5   : > { %v7840_v33 = vrot.slane %v259_v29, %v7832_v30  ;;  %v7852_v39 = vrot.slane %v357_v34, %v7832_v30  ;;  %v267_v46 = vcombine.high %v259_v29, %v11324_v0  ;;  %v365_v50 = vcombine.high %v357_v34, %v11324_v0 }
  0xb6   : > { %v226_v26 = vpop.permute.xlu1 %225  ;;  %v224_v27 = vpop.permute.xlu0 %223  ;;  %v7822_v28 = vld [vmem:[#allocation2 + $0x8] sm:$0xff]  ;;  %v7834_v31 = vld [vmem:[#allocation2 + $0x20] sm:$0xff]  ;;  %v7886_v52 = vrot.slane %v252_v47, %v7820_v24  ;;  %v7906_v59 = vrot.slane %v350_v53, %v7820_v24 }
  0xb7   : > { %243 = vst.msk [vmem:[#allocation2 + $0x51] sm:$0xff] %vm235_vm3, %v226_v26  ;;  %242 = vst.msk [vmem:[#allocation2 + $0x49] sm:$0xff] %vm235_vm3, %v224_v27  ;;  %1036 = vrot.lane.b32.xlu1 %v7822_v28, %s7635_s24  ;;  %1038 = vrot.lane.b32.xlu0 %v1020_v23, %s7635_s24  ;;  %v297_v38 = vcombine.high %v7840_v33, %v11324_v0  ;;  %v395_v43 = vcombine.high %v7852_v39, %v11324_v0 }
  0xb8   : > { %v7878_v49 = vrot.slane %v267_v46, %v7832_v30  ;;  %v7890_v54 = vrot.slane %v365_v50, %v7832_v30  ;;  %v7903_v58 = vrot.slane %v7886_v52, %v7832_v30  ;;  %v308_v63 = vrot.slane %v7822_v28, %v7820_v24 }
  0xb9   : > { %v387_v1 = vrot.slane %v7906_v59, %v7832_v30  ;;  %v406_v2 = vrot.slane %v7834_v31, %v7820_v24  ;;  %v301_v18 = vcombine.high %v7822_v28, %v11324_v0  ;;  %v399_v26 = vcombine.high %v7834_v31, %v11324_v0 }
  0xba   : > { %v1022_v32 = vld [vmem:[#allocation2 + $0x30] sm:$0xff]  ;;  %v7844_v36 = vld [vmem:[#allocation2 + $0x38] sm:$0xff]  ;;  %v7931_v5 = vrot.slane %v308_v63, %v7832_v30  ;;  %v316_v16 = vcombine.high %v308_v63, %v11324_v0  ;;  %v298_v47 = vcombine.high %v7878_v49, %v11324_v0 }
  0xbb   : > { %1040 = vrot.lane.b32.xlu1 %v7834_v31, %s7635_s24  ;;  %1042 = vrot.lane.b32.xlu0 %v1022_v32, %s7635_s24  ;;  %v455_v35 = vrot.slane %v1022_v32, %v7820_v24  ;;  %v448_v57 = vcombine.high %v1022_v32, %v11324_v0  ;;  %v504_v6 = vrot.slane %v7844_v36, %v7820_v24 }
  0xbc   : > { %v7938_v7 = vrot.slane %v406_v2, %v7832_v30  ;;  %v346_v9 = vcombine.high %v7931_v5, %v11324_v0  ;;  %v330_v20 = vrot.slane %v316_v16, %v7832_v30  ;;  %v414_v21 = vcombine.high %v406_v2, %v11324_v0 }
  0xbd   : > { %v7855_v40 = vrot.slane %v455_v35, %v7832_v30  ;;  %v463_v51 = vcombine.high %v455_v35, %v11324_v0  ;;  %v7912_v61 = vrot.slane %v448_v57, %v7820_v24  ;;  %v7945_v10 = vrot.slane %v504_v6, %v7832_v30 }
  0xbe   : > { %v1024_v37 = vld [vmem:[#allocation2 + $0x48] sm:$0xff]  ;;  %v7858_v42 = vld [vmem:[#allocation2 + $0x50] sm:$0xff]  ;;  %v444_v12 = vcombine.high %v7938_v7, %v11324_v0  ;;  %v512_v23 = vcombine.high %v504_v6, %v11324_v0  ;;  %v7971_v25 = vrot.slane %v301_v18, %v7820_v24  ;;  %v428_v27 = vrot.slane %v414_v21, %v7832_v30 }
  0xbf   : > { %1044 = vrot.lane.b32.xlu1 %v7844_v36, %s7635_s24  ;;  %1046 = vrot.lane.b32.xlu0 %v1024_v37, %s7635_s24  ;;  %v553_v41 = vrot.slane %v1024_v37, %v7820_v24  ;;  %v493_v44 = vcombine.high %v7855_v40, %v11324_v0  ;;  %v7893_v55 = vrot.slane %v463_v51, %v7832_v30 }
  0xc0   : > { %v546_v62 = vcombine.high %v1024_v37, %v11324_v0  ;;  %v485_v3 = vrot.slane %v7912_v61, %v7832_v30  ;;  %v602_v11 = vrot.slane %v7858_v42, %v7820_v24  ;;  %v542_v14 = vcombine.high %v7945_v10, %v11324_v0 }
  0xc1   : > { %v7868_v45 = vrot.slane %v553_v41, %v7832_v30  ;;  %v561_v56 = vcombine.high %v553_v41, %v11324_v0  ;;  %v526_v29 = vrot.slane %v512_v23, %v7832_v30  ;;  %v497_v34 = vcombine.high %v7844_v36, %v11324_v0 }
  0xc2   : > { %v7928_v4 = vrot.slane %v546_v62, %v7820_v24  ;;  %v7956_v15 = vrot.slane %v602_v11, %v7832_v30  ;;  %v610_v32 = vcombine.high %v602_v11, %v11324_v0  ;;  %v338_v35 = vrot.slane %v7971_v25, %v7832_v30 }
  0xc3   : > { %1048 = vrot.lane.b32.xlu1 %v7858_v42, %s7635_s24  ;;  %648 = vrot.lane.b32.xlu0 %v297_v38, %s7636_s25  ;;  %v591_v48 = vcombine.high %v7868_v45, %v11324_v0  ;;  %v7909_v60 = vrot.slane %v561_v56, %v7832_v30  ;;  %v413_v31 = vrot.slane %v399_v26, %v7820_v24 }
  0xc4   : > { %v583_v8 = vrot.slane %v7928_v4, %v7832_v30  ;;  %v640_v19 = vcombine.high %v7956_v15, %v11324_v0  ;;  %v624_v37 = vrot.slane %v610_v32, %v7832_v30  ;;  %v511_v38 = vrot.slane %v497_v34, %v7820_v24 }
  0xc5   : > { %v595_v41 = vcombine.high %v7858_v42, %v11324_v0  ;;  %v436_v36 = vrot.slane %v413_v31, %v7832_v30  ;;  %v396_v42 = vcombine.high %v7890_v54, %v11324_v0  ;;  %v592_v50 = vcombine.high %v7909_v60, %v11324_v0 }
  0xc6   : > { %v397_v51 = vcombine.high %v387_v1, %v11324_v0  ;;  %v495_v53 = vcombine.high %v485_v3, %v11324_v0  ;;  %v380_v57 = vcombine.high %v7906_v59, %v11324_v0  ;;  %v576_v62 = vcombine.high %v7928_v4, %v11324_v0 }
  0xc7   : > { %650 = vrot.lane.b32.xlu1 %v395_v43, %s7636_s25  ;;  %652 = vrot.lane.b32.xlu0 %v493_v44, %s7636_s25  ;;  %v534_v43 = vrot.slane %v511_v38, %v7832_v30  ;;  %v609_v44 = vrot.slane %v595_v41, %v7820_v24  ;;  %v445_v63 = vcombine.high %v428_v27, %v11324_v0 }
  0xc8   : > { %v590_v59 = vrot.slane %v576_v62, %v7832_v30  ;;  %v641_v2 = vcombine.high %v624_v37, %v11324_v0  ;;  %v446_v4 = vcombine.high %v436_v36, %v11324_v0 }
  0xc9   : > { %v632_v46 = vrot.slane %v609_v44, %v7832_v30  ;;  %v544_v6 = vcombine.high %v534_v43, %v11324_v0 }
  0xca   : > { %v594_v32 = vcombine.high %v590_v59, %v11324_v0 }
  0xcb   : > { %654 = vrot.lane.b32.xlu1 %v591_v48, %s7636_s25  ;;  %664 = vrot.lane.b32.xlu0 %v7878_v49, %s7637_s26  ;;  %v494_v48 = vcombine.high %v7893_v55, %v11324_v0  ;;  %v299_v49 = vcombine.high %v7903_v58, %v11324_v0 }
  0xcf   : > { %666 = vrot.lane.b32.xlu1 %v7890_v54, %s7637_s26  ;;  %668 = vrot.lane.b32.xlu0 %v7893_v55, %s7637_s26  ;;  %v282_v54 = vcombine.high %v7886_v52, %v11324_v0  ;;  %v593_v55 = vcombine.high %v583_v8, %v11324_v0  ;;  %v394_v52 = vrot.slane %v380_v57, %v7832_v30 }
  0xd1   : > { %v296_v56 = vrot.slane %v282_v54, %v7832_v30 }
  0xd3   : > { %670 = vrot.lane.b32.xlu1 %v7909_v60, %s7637_s26  ;;  %696 = vrot.lane.b32.xlu0 %v7903_v58, %s7638_s27  ;;  %v478_v58 = vcombine.high %v7912_v61, %v11324_v0  ;;  %v347_v61 = vcombine.high %v330_v20, %v11324_v0  ;;  %v300_v21 = vcombine.high %v296_v56, %v11324_v0 }
  0xd5   : > { %v492_v60 = vrot.slane %v478_v58, %v7832_v30 }
  0xd7   : > { %698 = vrot.lane.b32.xlu1 %v387_v1, %s7638_s27  ;;  %700 = vrot.lane.b32.xlu0 %v485_v3, %s7638_s27  ;;  %v543_v1 = vcombine.high %v526_v29, %v11324_v0  ;;  %v348_v3 = vcombine.high %v338_v35, %v11324_v0  ;;  %v496_v26 = vcombine.high %v492_v60, %v11324_v0 }
  0xdb   : > { %702 = vrot.lane.b32.xlu1 %v583_v8, %s7638_s27  ;;  %760 = vrot.lane.b32.xlu0 %v346_v9, %s7636_s25  ;;  %v331_v8 = vcombine.high %v7971_v25, %v11324_v0  ;;  %v642_v9 = vcombine.high %v632_v46, %v11324_v0  ;;  %v398_v25 = vcombine.high %v394_v52, %v11324_v0 }
  0xdd   : > { %v345_v11 = vrot.slane %v331_v8, %v7832_v30 }
  0xdf   : > { %762 = vrot.lane.b32.xlu1 %v444_v12, %s7636_s25  ;;  %764 = vrot.lane.b32.xlu0 %v542_v14, %s7636_s25  ;;  %v429_v12 = vcombine.high %v413_v31, %v11324_v0  ;;  %v527_v14 = vcombine.high %v511_v38, %v11324_v0  ;;  %v349_v34 = vcombine.high %v345_v11, %v11324_v0 }
  0xe1   : > { %v443_v16 = vrot.slane %v429_v12, %v7832_v30  ;;  %v541_v18 = vrot.slane %v527_v14, %v7832_v30 }
  0xe3   : > { %766 = vrot.lane.b32.xlu1 %v640_v19, %s7636_s25  ;;  %776 = vrot.lane.b32.xlu0 %v330_v20, %s7637_s26  ;;  %v625_v19 = vcombine.high %v609_v44, %v11324_v0  ;;  %v447_v38 = vcombine.high %v443_v16, %v11324_v0  ;;  %v545_v41 = vcombine.high %v541_v18, %v11324_v0 }
  0xe5   : > { %v639_v20 = vrot.slane %v625_v19, %v7832_v30 }
  0xe7   : > { %778 = vrot.lane.b32.xlu1 %v428_v27, %s7637_s26  ;;  %780 = vrot.lane.b32.xlu0 %v526_v29, %s7637_s26 }
  0xeb   : > { %782 = vrot.lane.b32.xlu1 %v624_v37, %s7637_s26  ;;  %808 = vrot.lane.b32.xlu0 %v338_v35, %s7638_s27 }
  0xef   : > { %810 = vrot.lane.b32.xlu1 %v436_v36, %s7638_s27  ;;  %812 = vrot.lane.b32.xlu0 %v534_v43, %s7638_s27 }
  0xf3   : > { %814 = vrot.lane.b32.xlu1 %v632_v46, %s7638_s27  ;;  %680 = vrot.lane.b32.xlu0 %v298_v47, %s7639_s28 }
  0xf7   : > { %682 = vrot.lane.b32.xlu1 %v396_v42, %s7639_s28  ;;  %684 = vrot.lane.b32.xlu0 %v494_v48, %s7639_s28  ;;  %v643_v42 = vcombine.high %v639_v20, %v11324_v0 }
  0xfb   : > { %686 = vrot.lane.b32.xlu1 %v592_v50, %s7639_s28  ;;  %712 = vrot.lane.b32.xlu0 %v299_v49, %s7640_s29 }
  0xff   : > { %714 = vrot.lane.b32.xlu1 %v397_v51, %s7640_s29  ;;  %716 = vrot.lane.b32.xlu0 %v495_v53, %s7640_s29 }
 0x103   : > { %718 = vrot.lane.b32.xlu1 %v593_v55, %s7640_s29  ;;  %728 = vrot.lane.b32.xlu0 %v296_v56, %s7641_s30 }
 0x107   : > { %730 = vrot.lane.b32.xlu1 %v394_v52, %s7641_s30  ;;  %732 = vrot.lane.b32.xlu0 %v492_v60, %s7641_s30 }
 0x10b   : > { %734 = vrot.lane.b32.xlu1 %v590_v59, %s7641_s30  ;;  %792 = vrot.lane.b32.xlu0 %v347_v61, %s7639_s28 }
 0x10f   : > { %794 = vrot.lane.b32.xlu1 %v445_v63, %s7639_s28  ;;  %796 = vrot.lane.b32.xlu0 %v543_v1, %s7639_s28 }
 0x113   : > { %798 = vrot.lane.b32.xlu1 %v641_v2, %s7639_s28  ;;  %824 = vrot.lane.b32.xlu0 %v348_v3, %s7640_s29 }
 0x117   : > { %826 = vrot.lane.b32.xlu1 %v446_v4, %s7640_s29  ;;  %828 = vrot.lane.b32.xlu0 %v544_v6, %s7640_s29 }
 0x11b   : > { %830 = vrot.lane.b32.xlu1 %v642_v9, %s7640_s29  ;;  %840 = vrot.lane.b32.xlu0 %v345_v11, %s7641_s30 }
 0x11f   : > { %842 = vrot.lane.b32.xlu1 %v443_v16, %s7641_s30  ;;  %844 = vrot.lane.b32.xlu0 %v541_v18, %s7641_s30 }
 0x123   : > { %846 = vrot.lane.b32.xlu1 %v639_v20, %s7641_s30  ;;  %744 = vrot.lane.b32.xlu0 %v300_v21, %s7642_s2 }
 0x125   : > { %v1035_v23 = vpop.permute.xlu0 %1034 }
 0x126   : > { %v1065_v35 = vrot.slane %v1035_v23, %v7820_v24 }
 0x127   : > { %746 = vrot.lane.b32.xlu1 %v398_v25, %s7642_s2  ;;  %748 = vrot.lane.b32.xlu0 %v496_v26, %s7642_s2 }
 0x128   : > { %v8084_v36 = vrot.slane %v1065_v35, %v7832_v30 }
 0x129   : > { %v8070_v27 = vpop.permute.xlu1 %1036  ;;  %v1039_v29 = vpop.permute.xlu0 %1038 }
 0x12a   : > { %11400 = vst [vmem:[#allocation8_spill] sm:$0xff] %v8084_v36  ;;  %v1163_v43 = vrot.slane %v1039_v29, %v7820_v24  ;;  %v1103_v54 = vcombine.high %v8084_v36, %v11324_v0  ;;  %v1156_v3 = vcombine.high %v1039_v29, %v11324_v0  ;;  %v1114_v14 = vrot.slane %v8070_v27, %v7820_v24 }
 0x12b   : > { %750 = vrot.lane.b32.xlu1 %v594_v32, %s7642_s2  ;;  %856 = vrot.lane.b32.xlu0 %v349_v34, %s7642_s2 }
 0x12c   : > { %v8095_v48 = vrot.slane %v1163_v43, %v7832_v30  ;;  %v1171_v60 = vcombine.high %v1163_v43, %v11324_v0  ;;  %v8162_v16 = vrot.slane %v1156_v3, %v7820_v24  ;;  %v8184_v26 = vrot.slane %v1114_v14, %v7832_v30 }
 0x12d   : > { %v8077_v37 = vpop.permute.xlu1 %1040  ;;  %v1043_v31 = vpop.permute.xlu0 %1042  ;;  %v1107_v3 = vcombine.high %v8070_v27, %v11324_v0 }
 0x12e   : > { %v1261_v44 = vrot.slane %v1043_v31, %v7820_v24  ;;  %11401 = vst [vmem:[#allocation9_spill] sm:$0xff] %v8095_v48  ;;  %v1201_v58 = vcombine.high %v8095_v48, %v11324_v0  ;;  %v1254_v4 = vcombine.high %v1043_v31, %v11324_v0  ;;  %v8150_v11 = vrot.slane %v1171_v60, %v7832_v30 }
 0x12f   : > { %858 = vrot.lane.b32.xlu1 %v447_v38, %s7642_s2  ;;  %860 = vrot.lane.b32.xlu0 %v545_v41, %s7642_s2  ;;  %11404 = vst [vmem:[#allocation12_spill] sm:$0xff] %v8184_v26  ;;  %v1212_v29 = vrot.slane %v8077_v37, %v7820_v24  ;;  %v8199_v38 = vrot.slane %v8162_v16, %v7832_v30 }
 0x130   : > { %v8098_v50 = vrot.slane %v1261_v44, %v7832_v30  ;;  %v1269_v62 = vcombine.high %v1261_v44, %v11324_v0  ;;  %v8165_v18 = vrot.slane %v1254_v4, %v7820_v24  ;;  %v8261_v27 = vrot.slane %v1107_v3, %v7820_v24 }
 0x131   : > { %v8088_v46 = vpop.permute.xlu1 %1044  ;;  %v1047_v47 = vpop.permute.xlu0 %1046  ;;  %v8210_v43 = vrot.slane %v1212_v29, %v7832_v30  ;;  %v1220_v4 = vcombine.high %v1212_v29, %v11324_v0  ;;  %v1205_v29 = vcombine.high %v8077_v37, %v11324_v0 }
 0x132   : > { %11402 = vst [vmem:[#allocation10_spill] sm:$0xff] %v8098_v50  ;;  %v1359_v49 = vrot.slane %v1047_v47, %v7820_v24  ;;  %v1299_v52 = vcombine.high %v8098_v50, %v11324_v0  ;;  %v8153_v12 = vrot.slane %v1269_v62, %v7832_v30  ;;  %v1352_v19 = vcombine.high %v1047_v47, %v11324_v0 }
 0x133   : > { %862 = vrot.lane.b32.xlu1 %v643_v42, %s7642_s2  ;;  %1830 = vrot.lane.b32.xlu0 %v7813_v22, %s7643_s3  ;;  %v1073_v22 = vcombine.high %v1065_v35, %v11324_v0  ;;  %v1310_v32 = vrot.slane %v8088_v46, %v7820_v24  ;;  %v8203_v41 = vrot.slane %v8165_v18, %v7832_v30 }
 0x134   : > { %v8112_v55 = vrot.slane %v1359_v49, %v7832_v30  ;;  %v1367_v6 = vcombine.high %v1359_v49, %v11324_v0  ;;  %v8191_v34 = vrot.slane %v1352_v19, %v7820_v24  ;;  %11405 = vst [vmem:[#allocation13_spill] sm:$0xff] %v8210_v43  ;;  %v1250_v62 = vcombine.high %v8210_v43, %v11324_v0 }
 0x135   : > { %v8101_v51 = vpop.permute.xlu1 %1048  ;;  %v8103_v53 = vpop.permute.xlu0 %648  ;;  %v8134_v1 = vrot.slane %v1073_v22, %v7832_v30  ;;  %v8213_v44 = vrot.slane %v1310_v32, %v7832_v30  ;;  %v1152_v22 = vcombine.high %v8184_v26, %v11324_v0  ;;  %v8283_v37 = vrot.slane %v1205_v29, %v7820_v24 }
 0x136   : > { %11403 = vst [vmem:[#allocation11_spill] sm:$0xff] %v8112_v55  ;;  %v1397_v63 = vcombine.high %v8112_v55, %v11324_v0  ;;  %v1408_v47 = vrot.slane %v8101_v51, %v7820_v24 }
 0x137   : > { %1832 = vrot.lane.b32.xlu1 %v7822_v28, %s7643_s3  ;;  %1454 = vrot.lane.b32.xlu0 %v1103_v54, %s7636_s25  ;;  %v1058_v28 = vcombine.high %v1035_v23, %v11324_v0  ;;  %v8173_v23 = vrot.slane %v1367_v6, %v7832_v30  ;;  %11406 = vst [vmem:[#allocation14_spill] sm:$0xff] %v8213_v44 }
 0x138   : > { %v8223_v54 = vrot.slane %v8191_v34, %v7832_v30  ;;  %v1318_v6 = vcombine.high %v1310_v32, %v11324_v0  ;;  %v1303_v32 = vcombine.high %v8088_v46, %v11324_v0 }
 0x139   : > { %v8114_v56 = vpop.permute.xlu1 %650  ;;  %v8116_v57 = vpop.permute.xlu0 %652  ;;  %v8140_v2 = vrot.slane %v1058_v28, %v7820_v24 }
 0x13a   : > { %v8286_v46 = vrot.slane %v1303_v32, %v7820_v24 }
 0x13b   : > { %1456 = vrot.lane.b32.xlu1 %v1201_v58, %s7636_s25  ;;  %1458 = vrot.lane.b32.xlu0 %v1299_v52, %s7636_s25  ;;  %v8177_v25 = vrot.slane %v8140_v2, %v7832_v30  ;;  %v1122_v58 = vcombine.high %v1114_v14, %v11324_v0  ;;  %v8232_v52 = vrot.slane %v1408_v47, %v7832_v30 }
 0x13d   : > { %v8127_v59 = vpop.permute.xlu1 %654  ;;  %v8129_v61 = vpop.permute.xlu0 %664  ;;  %11407 = vst [vmem:[#allocation15_spill] sm:$0xff] %v8232_v52  ;;  %v8255_v13 = vrot.slane %v1122_v58, %v7832_v30 }
 0x13f   : > { %1460 = vrot.lane.b32.xlu1 %v1397_v63, %s7636_s25  ;;  %1470 = vrot.lane.b32.xlu0 %v8134_v1, %s7637_s26  ;;  %v1348_v63 = vcombine.high %v8213_v44, %v11324_v0  ;;  %v8299_v44 = vrot.slane %v8261_v27, %v7832_v30 }
 0x141   : > { %v8145_v8 = vpop.permute.xlu1 %666  ;;  %v8147_v9 = vpop.permute.xlu0 %668 }
 0x143   : > { %1472 = vrot.lane.b32.xlu1 %v8150_v11, %s7637_s26  ;;  %1474 = vrot.lane.b32.xlu0 %v8153_v12, %s7637_s26 }
 0x145   : > { %v8168_v20 = vpop.permute.xlu1 %670  ;;  %v8170_v21 = vpop.permute.xlu0 %696 }
 0x147   : > { %1476 = vrot.lane.b32.xlu1 %v8173_v23, %s7637_s26  ;;  %1502 = vrot.lane.b32.xlu0 %v8177_v25, %s7638_s27 }
 0x149   : > { %v8193_v35 = vpop.permute.xlu1 %698  ;;  %v8195_v31 = vpop.permute.xlu0 %700 }
 0x14b   : > { %1504 = vrot.lane.b32.xlu1 %v8199_v38, %s7638_s27  ;;  %1506 = vrot.lane.b32.xlu0 %v8203_v41, %s7638_s27 }
 0x14d   : > { %v8217_v42 = vpop.permute.xlu1 %702  ;;  %v8219_v49 = vpop.permute.xlu0 %760 }
 0x14f   : > { %1508 = vrot.lane.b32.xlu1 %v8223_v54, %s7638_s27  ;;  %1566 = vrot.lane.b32.xlu0 %v1152_v22, %s7636_s25  ;;  %v1446_v22 = vcombine.high %v8232_v52, %v11324_v0  ;;  %v8276_v52 = vrot.slane %v1318_v6, %v7832_v30 }
 0x151   : > { %v8234_v28 = vpop.permute.xlu1 %762  ;;  %v8236_v60 = vpop.permute.xlu0 %764 }
 0x153   : > { %1568 = vrot.lane.b32.xlu1 %v1250_v62, %s7636_s25  ;;  %1570 = vrot.lane.b32.xlu0 %v1348_v63, %s7636_s25  ;;  %v1416_v62 = vcombine.high %v1408_v47, %v11324_v0  ;;  %v1401_v47 = vcombine.high %v8101_v51, %v11324_v0  ;;  %v8318_v0 = vrot.slane %v8286_v46, %v7832_v30 }
 0x155   : > { %v8248_v14 = vpop.permute.xlu1 %766  ;;  %v8250_v19 = vpop.permute.xlu0 %776  ;;  %v8295_v6 = vrot.slane %v1416_v62, %v7832_v30  ;;  %v8306_v29 = vrot.slane %v1401_v47, %v7820_v24  ;;  %v8314_v62 = vrot.slane %v8283_v37, %v7832_v30  ;;  %v11410_v47 = vmov 0.0  }
 0x156   : > { %v1104_v43 = vcombine.high %v8134_v1, %v11410_v47  ;;  %v1202_v48 = vcombine.high %v8150_v11, %v11410_v47  ;;  %v1300_v36 = vcombine.high %v8153_v12, %v11410_v47  ;;  %v1088_v12 = vcombine.high %v8140_v2, %v11410_v47 }
 0x157   : > { %1572 = vrot.lane.b32.xlu1 %v1446_v22, %s7636_s25  ;;  %1582 = vrot.lane.b32.xlu0 %v8255_v13, %s7637_s26  ;;  %v8273_v22 = vrot.slane %v1220_v4, %v7832_v30  ;;  %v8332_v26 = vrot.slane %v8306_v29, %v7832_v30  ;;  %v1284_v2 = vcombine.high %v8165_v18, %v11410_v47 }
 0x159   : > { %v8268_v63 = vpop.permute.xlu1 %778  ;;  %v8270_v58 = vpop.permute.xlu0 %780 }
 0x15b   : > { %1584 = vrot.lane.b32.xlu1 %v8273_v22, %s7637_s26  ;;  %1586 = vrot.lane.b32.xlu0 %v8276_v52, %s7637_s26 }
 0x15d   : > { %v8290_v3 = vpop.permute.xlu1 %782  ;;  %v8292_v4 = vpop.permute.xlu0 %808 }
 0x15f   : > { %1588 = vrot.lane.b32.xlu1 %v8295_v6, %s7637_s26  ;;  %1614 = vrot.lane.b32.xlu0 %v8299_v44, %s7638_s27 }
 0x161   : > { %v8308_v51 = vpop.permute.xlu1 %810  ;;  %v8310_v32 = vpop.permute.xlu0 %812 }
 0x162   : > { %11408 = vst [vmem:[#allocation16_spill] sm:$0xff] %v8308_v51  ;;  %11409 = vst [vmem:[#allocation17_spill] sm:$0xff] %v8310_v32  ;;  %v8380_v51 = vrot.slane %v1088_v12, %v7832_v30  ;;  %v1153_v12 = vcombine.high %v8255_v13, %v11410_v47  ;;  %v1447_v13 = vcombine.high %v8295_v6, %v11410_v47 }
 0x163   : > { %1616 = vrot.lane.b32.xlu1 %v8314_v62, %s7638_s27  ;;  %1618 = vrot.lane.b32.xlu0 %v8318_v0, %s7638_s27  ;;  %v1350_v6 = vcombine.high %v8318_v0, %v11410_v47 }
 0x165   : > { %v8326_v55 = vpop.permute.xlu1 %814  ;;  %v8328_v50 = vpop.permute.xlu0 %680 }
 0x166   : > { %11411 = vst [vmem:[#allocation18_spill] sm:$0xff] %v8326_v55  ;;  %v1398_v55 = vcombine.high %v8173_v23, %v11410_v47 }
 0x167   : > { %1620 = vrot.lane.b32.xlu1 %v8332_v26, %s7638_s27  ;;  %1486 = vrot.lane.b32.xlu0 %v1104_v43, %s7639_s28  ;;  %v1105_v43 = vcombine.high %v8177_v25, %v11410_v47 }
 0x169   : > { %v8341_v1 = vpop.permute.xlu1 %682  ;;  %v8343_v24 = vpop.permute.xlu0 %684 }
 0x16b   : > { %1488 = vrot.lane.b32.xlu1 %v1202_v48, %s7639_s28  ;;  %1490 = vrot.lane.b32.xlu0 %v1300_v36, %s7639_s28  ;;  %v1203_v36 = vcombine.high %v8199_v38, %v11410_v47  ;;  %v1301_v48 = vcombine.high %v8203_v41, %v11410_v47  ;;  %v1399_v38 = vcombine.high %v8223_v54, %v11410_v47 }
 0x16d   : > { %v8351_v32 = vpop.permute.xlu1 %686  ;;  %v8353_v11 = vpop.permute.xlu0 %712 }
 0x16f   : > { %1492 = vrot.lane.b32.xlu1 %v1398_v55, %s7639_s28  ;;  %1518 = vrot.lane.b32.xlu0 %v1105_v43, %s7640_s29  ;;  %v1186_v55 = vcombine.high %v8162_v16, %v11410_v47  ;;  %v1382_v16 = vcombine.high %v8191_v34, %v11410_v47 }
 0x171   : > { %v8363_v23 = vpop.permute.xlu1 %714  ;;  %v8365_v25 = vpop.permute.xlu0 %716  ;;  %v8392_v54 = vrot.slane %v1186_v55, %v7832_v30  ;;  %v1251_v55 = vcombine.high %v8273_v22, %v11410_v47 }
 0x173   : > { %1520 = vrot.lane.b32.xlu1 %v1203_v36, %s7640_s29  ;;  %1522 = vrot.lane.b32.xlu0 %v1301_v48, %s7640_s29  ;;  %v8395_v48 = vrot.slane %v1284_v2, %v7832_v30  ;;  %v1349_v2 = vcombine.high %v8276_v52, %v11410_v47  ;;  %v1137_v52 = vcombine.high %v8261_v27, %v11410_v47 }
 0x174   : > { %v1333_v27 = vcombine.high %v8286_v46, %v11410_v47 }
 0x175   : > { %v8375_v43 = vpop.permute.xlu1 %718  ;;  %v8377_v41 = vpop.permute.xlu0 %728 }
 0x176   : > { %11412 = vst [vmem:[#allocation19_spill] sm:$0xff] %v8375_v43  ;;  %v1396_v43 = vrot.slane %v1382_v16, %v7832_v30  ;;  %v1154_v16 = vcombine.high %v8299_v44, %v11410_v47 }
 0x177   : > { %1524 = vrot.lane.b32.xlu1 %v1399_v38, %s7640_s29  ;;  %1534 = vrot.lane.b32.xlu0 %v8380_v51, %s7641_s30 }
 0x179   : > { %v8387_v36 = vpop.permute.xlu1 %730  ;;  %v8389_v18 = vpop.permute.xlu0 %732 }
 0x17a   : > { %11413 = vst [vmem:[#allocation20_spill] sm:$0xff] %v8387_v36  ;;  %11414 = vst [vmem:[#allocation21_spill] sm:$0xff] %v8389_v18 }
 0x17b   : > { %1536 = vrot.lane.b32.xlu1 %v8392_v54, %s7641_s30  ;;  %1538 = vrot.lane.b32.xlu0 %v8395_v48, %s7641_s30 }
 0x17d   : > { %v8403_v34 = vpop.permute.xlu1 %734  ;;  %v8405_v38 = vpop.permute.xlu0 %792 }
 0x17e   : > { %11415 = vst [vmem:[#allocation22_spill] sm:$0xff] %v8403_v34  ;;  %v7644_v34 = vmov 1966171168  }
 0x17f   : > { %1540 = vrot.lane.b32.xlu1 %v1396_v43, %s7641_s30  ;;  %1598 = vrot.lane.b32.xlu0 %v1153_v12, %s7639_s28 }
 0x181   : > { %v8414_v18 = vpop.permute.xlu1 %794  ;;  %v8416_v36 = vpop.permute.xlu0 %796 }
 0x183   : > { %1600 = vrot.lane.b32.xlu1 %v1251_v55, %s7639_s28  ;;  %1602 = vrot.lane.b32.xlu0 %v1349_v2, %s7639_s28  ;;  %v1252_v55 = vcombine.high %v8314_v62, %v11410_v47  ;;  %v1448_v62 = vcombine.high %v8332_v26, %v11410_v47 }
 0x185   : > { %v8424_v12 = vpop.permute.xlu1 %798  ;;  %v8426_v22 = vpop.permute.xlu0 %824 }
 0x186   : > { %11416 = vst [vmem:[#allocation23_spill] sm:$0xff] %v8424_v12  ;;  %v941_v12 = vunpack.c.l.s4 %v7644_v34 }
 0x187   : > { %1604 = vrot.lane.b32.xlu1 %v1447_v13, %s7639_s28  ;;  %1630 = vrot.lane.b32.xlu0 %v1154_v16, %s7640_s29  ;;  %v1235_v13 = vcombine.high %v8283_v37, %v11410_v47  ;;  %v1431_v37 = vcombine.high %v8306_v29, %v11410_v47  ;;  %v870_v29 = vsel %vm868_vm4, %v7852_v39, %v8114_v56 }
 0x188   : > { %v942_v34 = vunpack.c.0.s8 %v941_v12 }
 0x189   : > { %v8436_v2 = vpop.permute.xlu1 %826  ;;  %v8438_v44 = vpop.permute.xlu0 %828  ;;  %v1249_v26 = vrot.slane %v1235_v13, %v7832_v30  ;;  %v1106_v13 = vcombine.high %v8380_v51, %v11410_v47 }
 0x18a   : > { %11417 = vst [vmem:[#allocation24_spill] sm:$0xff] %v8438_v44  ;;  %v1151_v44 = vrot.slane %v1137_v52, %v7832_v30  ;;  %v8464_v12 = vsub.s32 %v942_v34, %v7811_v17  ;;  %v869_v52 = vsel %vm868_vm4, %v7840_v33, %v8103_v53  ;;  %v872_v17 = vsel %vm868_vm4, %v7868_v45, %v8127_v59 }
 0x18b   : > { %1632 = vrot.lane.b32.xlu1 %v1252_v55, %s7640_s29  ;;  %1634 = vrot.lane.b32.xlu0 %v1350_v6, %s7640_s29  ;;  %v1347_v6 = vrot.slane %v1333_v27, %v7832_v30  ;;  %v874_v33 = vsel %vm873_vm5, %v869_v52, %v8129_v61  ;;  %v875_v53 = vsel %vm873_vm5, %v870_v29, %v8145_v8  ;;  %v11421_v52 = vld [vmem:[#allocation17_spill] sm:$0xff]  ;;  %v11423_v29 = vmov 0 }
 0x18c   : > { %11418 = vst [vmem:[#allocation25_spill] sm:$0xff] %v8464_v12  ;;  %v1204_v45 = vcombine.high %v8392_v54, %v11410_v47  ;;  %v1302_v59 = vcombine.high %v8395_v48, %v11410_v47  ;;  %v903_v61 = vsel %vm868_vm4, %v7931_v5, %v8219_v49  ;;  %v1400_v8 = vcombine.high %v1396_v43, %v11410_v47 }
 0x18d   : > { %v8448_v0 = vpop.permute.xlu1 %830  ;;  %v8450_v16 = vpop.permute.xlu0 %840  ;;  %v8503_v27 = vcombine.high %v1249_v26, %v11410_v47  ;;  %v907_v51 = vsel %vm873_vm5, %v903_v61, %v8250_v19  ;;  %v879_v54 = vsel %vm878_vm6, %v874_v33, %v8328_v50  ;;  %v1351_v5 = vcombine.high %v1347_v6, %v11410_v47  ;;  %v11427_v33 = vld [vmem:[#allocation21_spill] sm:$0xff] }
 0x18e   : > { %v904_v49 = vsel %vm868_vm4, %v7938_v7, %v8234_v28  ;;  %v880_v43 = vsel %vm878_vm6, %v875_v53, %v8341_v1  ;;  %v911_v50 = vsel %vm878_vm6, %v907_v51, %v8405_v38  ;;  %v877_v48 = vsel %vm873_vm5, %v872_v17, %v8168_v20 }
 0x18f   : > { %1636 = vrot.lane.b32.xlu1 %v1448_v62, %s7640_s29  ;;  %1646 = vrot.lane.b32.xlu0 %v1151_v44, %s7641_s30  ;;  %v871_v62 = vsel %vm868_vm4, %v7855_v40, %v8116_v57  ;;  %v8489_v57 = vrot.slane %v1431_v37, %v7832_v30  ;;  %v906_v7 = vsel %vm868_vm4, %v7956_v15, %v8248_v14  ;;  %v11419_v37 = vld [vmem:[#allocation23_spill] sm:$0xff] }
 0x190   : > { %v876_v39 = vsel %vm873_vm5, %v871_v62, %v8147_v9  ;;  %v1155_v9 = vcombine.high %v1151_v44, %v11410_v47  ;;  %v905_v44 = vsel %vm868_vm4, %v7945_v10, %v8236_v60  ;;  %v908_v28 = vsel %vm873_vm5, %v904_v49, %v8268_v63  ;;  %v11426_v62 = vld [vmem:[#allocation20_spill] sm:$0xff] }
 0x191   : > { %v8457_v46 = vpop.permute.xlu1 %842  ;;  %v8459_v55 = vpop.permute.xlu0 %844  ;;  %v881_v19 = vsel %vm878_vm6, %v876_v39, %v8343_v24  ;;  %v909_v38 = vsel %vm873_vm5, %v905_v44, %v8270_v58  ;;  %v910_v20 = vsel %vm873_vm5, %v906_v7, %v8290_v3  ;;  %v882_v34 = vsel %vm878_vm6, %v877_v48, %v8351_v32  ;;  %v11430_v48 = vld [vmem:[#allocation19_spill] sm:$0xff] }
 0x192   : > { %v884_v10 = vsel %vm883_vm7, %v879_v54, %v8170_v21  ;;  %v885_v15 = vsel %vm883_vm7, %v880_v43, %v8193_v35  ;;  %v886_v60 = vsel %vm883_vm7, %v881_v19, %v8195_v31  ;;  %v915_v14 = vsel %vm883_vm7, %v911_v50, %v8292_v4 }
 0x193   : > { %1648 = vrot.lane.b32.xlu1 %v1249_v26, %s7641_s30  ;;  %1650 = vrot.lane.b32.xlu0 %v1347_v6, %s7641_s30  ;;  %v889_v21 = vsel %vm888_vm8, %v884_v10, %v8353_v11  ;;  %v912_v35 = vsel %vm878_vm6, %v908_v28, %v8414_v18  ;;  %v913_v31 = vsel %vm878_vm6, %v909_v38, %v8416_v36  ;;  %v11420_v6 = vld [vmem:[#allocation16_spill] sm:$0xff]  ;;  %v1816_v10 = vld [vmem:[#allocation2 + $0x18] sm:$0xff] }
 0x194   : > { %v919_v63 = vsel %vm888_vm8, %v915_v14, %v8426_v22  ;;  %v890_v58 = vsel %vm888_vm8, %v885_v15, %v8363_v23  ;;  %v887_v3 = vsel %vm883_vm7, %v882_v34, %v8217_v42  ;;  %v894_v4 = vsel %vm893_vm9, %v889_v21, %v8377_v41  ;;  %v11433_v21 = vld [vmem:[#allocation6_spill] sm:$0xff] }
 0x195   : > { %v8486_v40 = vpop.permute.xlu1 %846  ;;  %v745_v56 = vpop.permute.xlu0 %744  ;;  %v923_v32 = vsel %vm893_vm9, %v919_v63, %v8450_v16  ;;  %v891_v36 = vsel %vm888_vm8, %v886_v60, %v8365_v25  ;;  %v914_v22 = vsel %vm878_vm6, %v910_v20, %v11419_v37  ;;  %v916_v42 = vsel %vm883_vm7, %v912_v35, %v11420_v6  ;;  %v1820_v37 = vld [vmem:[#allocation2 + $0x48] sm:$0xff]  ;;  %v1821_v6 = vld [vmem:[#allocation2 + $0x50] sm:$0xff] }
 0x196   : > { %v899_v26 = vsel %vm898_vm10, %v894_v4, %v745_v56  ;;  %v917_v41 = vsel %vm883_vm7, %v913_v31, %v11421_v52  ;;  %v11422_v16 = vlaneseq  ;;  %v895_v17 = vsel %vm893_vm9, %v890_v58, %v11426_v62  ;;  %v11428_v56 = vld [vmem:[#allocation24_spill] sm:$0xff]  ;;  %v1817_v58 = vld [vmem:[#allocation2 + $0x20] sm:$0xff] }
 0x197   : > { %1652 = vrot.lane.b32.xlu1 %v8489_v57, %s7641_s30  ;;  %1550 = vrot.lane.b32.xlu0 %v1106_v13, %s7642_s2  ;;  %v896_v53 = vsel %vm893_vm9, %v891_v36, %v11427_v33  ;;  %v920_v39 = vsel %vm888_vm8, %v916_v42, %v8436_v2  ;;  %v921_v13 = vsel %vm888_vm8, %v917_v41, %v11428_v56  ;;  %v1819_v36 = vld [vmem:[#allocation2 + $0x38] sm:$0xff] }
 0x198   : > { %vm8582_vm11 = vcmp.lt.s32.totalorder %v11422_v16, 256  ;;  %v924_v61 = vsel %vm893_vm9, %v920_v39, %v8457_v46  ;;  %v892_v44 = vsel %vm888_vm8, %v887_v3, %v11430_v48  ;;  %v1449_v28 = vcombine.high %v8489_v57, %v11410_v47  ;;  %v1818_v3 = vld [vmem:[#allocation2 + $0x30] sm:$0xff] }
 0x199   : > { %v747_v24 = vpop.permute.xlu1 %746  ;;  %v749_v1 = vpop.permute.xlu0 %748  ;;  %v11424_v29 = vsel %vm8582_vm11, 4294967295, %v11423_v29 }
 0x19a   : > { %11425 = vst [vmem:[#allocation23_spill] sm:$0xff] %v11424_v29  ;;  %v900_v49 = vsel %vm898_vm10, %v895_v17, %v747_v24  ;;  %v901_v2 = vsel %vm898_vm10, %v896_v53, %v749_v1  ;;  %v11431_v24 = vld [vmem:[#allocation22_spill] sm:$0xff] }
 0x19b   : > { %1552 = vrot.lane.b32.xlu1 %v1204_v45, %s7642_s2  ;;  %1554 = vrot.lane.b32.xlu0 %v1302_v59, %s7642_s2  ;;  %v11429_v45 = vld [vmem:[#allocation18_spill] sm:$0xff]  ;;  %v897_v1 = vsel %vm893_vm9, %v892_v44, %v11431_v24 }
 0x19c   : > { %v918_v59 = vsel %vm883_vm7, %v914_v22, %v11429_v45 }
 0x19d   : > { %v751_v11 = vpop.permute.xlu1 %750  ;;  %v857_v18 = vpop.permute.xlu0 %856  ;;  %v922_v7 = vsel %vm888_vm8, %v918_v59, %v8448_v0 }
 0x19e   : > { %v927_v23 = vsel %vm898_vm10, %v923_v32, %v857_v18  ;;  %v926_v38 = vsel %vm893_vm9, %v922_v7, %v8486_v40  ;;  %v902_v57 = vsel %vm898_vm10, %v897_v1, %v751_v11 }
 0x19f   : > { %v939_v25 = vcombine.low %v899_v26, %v927_v23  ;;  %1556 = vrot.lane.b32.xlu1 %v1400_v8, %s7642_s2  ;;  %1662 = vrot.lane.b32.xlu0 %v1155_v9, %s7642_s2  ;;  %v925_v8 = vsel %vm893_vm9, %v921_v13, %v8459_v55 }
 0x1a1   : > { %v946_v9 = vrot.slane %v939_v25, %v8464_v12  ;;  %v859_v51 = vpop.permute.xlu1 %858  ;;  %v861_v54 = vpop.permute.xlu0 %860 }
 0x1a2   : > { %v928_v43 = vsel %vm898_vm10, %v924_v61, %v859_v51  ;;  %v929_v46 = vsel %vm898_vm10, %v925_v8, %v861_v54 }
 0x1a3   : > { %v953_v55 = vrot.slane %v946_v9, %v8464_v12  ;;  %v954_v19 = vcombine.low %v900_v49, %v928_v43  ;;  %v969_v50 = vcombine.low %v901_v2, %v929_v46  ;;  %1664 = vrot.lane.b32.xlu1 %v8503_v27, %s7642_s2  ;;  %1666 = vrot.lane.b32.xlu0 %v1351_v5, %s7642_s2 }
 0x1a5   : > { %1007 = vst.msk [vmem:[%s8608_s6] ss:$8 sm:$0x3] %vm8582_vm11, %v953_v55  ;;  %v961_v27 = vrot.slane %v954_v19, %v8464_v12  ;;  %v976_v5 = vrot.slane %v969_v50, %v8464_v12  ;;  %v863_v20 = vpop.permute.xlu1 %862  ;;  %v8631_v0 = vpop.permute.xlu0 %1830 }
 0x1a6   : > { %11432 = vst [vmem:[#allocation16_spill] sm:$0xff] %v8631_v0  ;;  %v930_v34 = vsel %vm898_vm10, %v926_v38, %v863_v20  ;;  %v8648_v35 = vrot.slane %v8631_v0, %v11433_v21  ;;  %v11441_v0 = vld [vmem:[#allocation11_spill] sm:$0xff] }
 0x1a7   : > { %v968_v15 = vrot.slane %v961_v27, %v8464_v12  ;;  %v983_v40 = vrot.slane %v976_v5, %v8464_v12  ;;  %v984_v60 = vcombine.low %v902_v57, %v930_v34  ;;  %1668 = vrot.lane.b32.xlu1 %v1449_v28, %s7642_s2  ;;  %1834 = vrot.lane.b32.xlu0 %v1816_v10, %s7643_s3 }
 0x1a8   : > { %11434 = vst [vmem:[#allocation17_spill] sm:$0xff] %v8648_v35  ;;  %v8662_v32 = vrot.slane %v8648_v35, %v7832_v30 }
 0x1a9   : > { %7434 = vst.msk [vmem:[%s8608_s6 + $0x20] ss:$8 sm:$0x3] %vm8582_vm11, %v968_v15  ;;  %7435 = vst.msk [vmem:[%s8608_s6 + $0x40] ss:$8 sm:$0x3] %vm8582_vm11, %v983_v40  ;;  %v991_v14 = vrot.slane %v984_v60, %v8464_v12  ;;  %v8650_v31 = vpop.permute.xlu1 %1832  ;;  %v8652_v63 = vpop.permute.xlu0 %1454 }
 0x1aa   : > { %11435 = vst [vmem:[#allocation20_spill] sm:$0xff] %v8650_v31  ;;  %11436 = vst [vmem:[#allocation21_spill] sm:$0xff] %v8662_v32  ;;  %v1899_v23 = vcombine.high %v8662_v32, %v11410_v47  ;;  %v11440_v32 = vld [vmem:[#allocation10_spill] sm:$0xff] }
 0x1ab   : > { %v998_v4 = vrot.slane %v991_v14, %v8464_v12  ;;  %1836 = vrot.lane.b32.xlu1 %v1817_v58, %s7643_s3  ;;  %1838 = vrot.lane.b32.xlu0 %v1818_v3, %s7643_s3  ;;  %v11437_v3 = vld [vmem:[#allocation8_spill] sm:$0xff] }
 0x1ad   : > { %7436 = vst.msk [vmem:[%s8608_s6 + $0x60] ss:$8 sm:$0x3] %vm8582_vm11, %v998_v4  ;;  %v1457_v11 = vpop.permute.xlu1 %1456  ;;  %v1459_v18 = vpop.permute.xlu0 %1458  ;;  %v1674_v4 = vsel %vm868_vm4, %v11437_v3, %v8652_v63 }
 0x1ae   : > { %v1676_v31 = vsel %vm868_vm4, %v11440_v32, %v1459_v18  ;;  %v11443_v18 = vld [vmem:[#allocation14_spill] sm:$0xff] }
 0x1af   : > { %1840 = vrot.lane.b32.xlu1 %v1819_v36, %s7643_s3  ;;  %1842 = vrot.lane.b32.xlu0 %v1820_v37, %s7643_s3  ;;  %v11438_v36 = vld [vmem:[#allocation9_spill] sm:$0xff] }
 0x1b0   : > { %v1675_v37 = vsel %vm868_vm4, %v11438_v36, %v1457_v11  ;;  %v11442_v36 = vld [vmem:[#allocation13_spill] sm:$0xff] }
 0x1b1   : > { %v1461_v22 = vpop.permute.xlu1 %1460  ;;  %v1471_v26 = vpop.permute.xlu0 %1470 }
 0x1b2   : > { %v1677_v35 = vsel %vm868_vm4, %v11441_v0, %v1461_v22  ;;  %v1678_v47 = vsel %vm873_vm5, %v1674_v4, %v1471_v26  ;;  %v11444_v22 = vld [vmem:[#allocation15_spill] sm:$0xff] }
 0x1b3   : > { %1844 = vrot.lane.b32.xlu1 %v1821_v6, %s7643_s3  ;;  %2250 = vrot.lane.b32.xlu0 %v1899_v23, %s7636_s25  ;;  %v11439_v23 = vld [vmem:[#allocation12_spill] sm:$0xff] }
 0x1b5   : > { %v1473_v42 = vpop.permute.xlu1 %1472  ;;  %v1475_v52 = vpop.permute.xlu0 %1474 }
 0x1b6   : > { %v1679_v21 = vsel %vm873_vm5, %v1675_v37, %v1473_v42  ;;  %v1680_v63 = vsel %vm873_vm5, %v1676_v31, %v1475_v52 }
 0x1b9   : > { %v1477_v41 = vpop.permute.xlu1 %1476  ;;  %v8670_v16 = vpop.permute.xlu0 %1502 }
 0x1bd   : > { %v8672_v25 = vpop.permute.xlu1 %1504  ;;  %v8674_v62 = vpop.permute.xlu0 %1506 }
 0x1c1   : > { %v8676_v17 = vpop.permute.xlu1 %1508  ;;  %v1567_v33 = vpop.permute.xlu0 %1566 }
 0x1c2   : > { %v1702_v6 = vsel %vm868_vm4, %v11439_v23, %v1567_v33  ;;  %v1681_v33 = vsel %vm873_vm5, %v1677_v35, %v1477_v41 }
 0x1c5   : > { %v1569_v53 = vpop.permute.xlu1 %1568  ;;  %v1571_v39 = vpop.permute.xlu0 %1570 }
 0x1c6   : > { %v1703_v32 = vsel %vm868_vm4, %v11442_v36, %v1569_v53  ;;  %v1704_v0 = vsel %vm868_vm4, %v11443_v18, %v1571_v39  ;;  %v11445_v18 = vld [vmem:[#allocation6_spill] sm:$0xff] }
 0x1c9   : > { %v1573_v56 = vpop.permute.xlu1 %1572  ;;  %v1583_v13 = vpop.permute.xlu0 %1582 }
 0x1ca   : > { %v1706_v30 = vsel %vm873_vm5, %v1702_v6, %v1583_v13  ;;  %v1705_v26 = vsel %vm868_vm4, %v11444_v22, %v1573_v56 }
 0x1cd   : > { %v1585_v45 = vpop.permute.xlu1 %1584  ;;  %v1587_v59 = vpop.permute.xlu0 %1586 }
 0x1ce   : > { %v1707_v42 = vsel %vm873_vm5, %v1703_v32, %v1585_v45  ;;  %v1708_v31 = vsel %vm873_vm5, %v1704_v0, %v1587_v59 }
 0x1d1   : > { %v1589_v61 = vpop.permute.xlu1 %1588  ;;  %v1615_v8 = vpop.permute.xlu0 %1614 }
 0x1d2   : > { %v1709_v35 = vsel %vm873_vm5, %v1705_v26, %v1589_v61  ;;  %v11446_v26 = vld [vmem:[#allocation7_spill] sm:$0xff] }
 0x1d5   : > { %v8678_v9 = vpop.permute.xlu1 %1616  ;;  %v8680_v51 = vpop.permute.xlu0 %1618 }
 0x1d9   : > { %v8682_v54 = vpop.permute.xlu1 %1620  ;;  %v1487_v49 = vpop.permute.xlu0 %1486 }
 0x1da   : > { %v1682_v3 = vsel %vm878_vm6, %v1678_v47, %v1487_v49 }
 0x1db   : > { %v1686_v41 = vsel %vm883_vm7, %v1682_v3, %v8670_v16 }
 0x1dd   : > { %v1489_v2 = vpop.permute.xlu1 %1488  ;;  %v1491_v43 = vpop.permute.xlu0 %1490 }
 0x1de   : > { %v1683_v47 = vsel %vm878_vm6, %v1679_v21, %v1489_v2 }
 0x1df   : > { %v1687_v21 = vsel %vm883_vm7, %v1683_v47, %v8672_v25 }
 0x1e1   : > { %v1493_v46 = vpop.permute.xlu1 %1492  ;;  %v1519_v55 = vpop.permute.xlu0 %1518 }
 0x1e2   : > { %v1685_v52 = vsel %vm878_vm6, %v1681_v33, %v1493_v46  ;;  %v1690_v39 = vsel %vm888_vm8, %v1686_v41, %v1519_v55 }
 0x1e3   : > { %v1689_v46 = vsel %vm883_vm7, %v1685_v52, %v8676_v17 }
 0x1e5   : > { %v1521_v19 = vpop.permute.xlu1 %1520  ;;  %v1523_v50 = vpop.permute.xlu0 %1522 }
 0x1e9   : > { %v8684_v48 = vpop.permute.xlu1 %1524  ;;  %v1535_v44 = vpop.permute.xlu0 %1534 }
 0x1ea   : > { %v1694_v49 = vsel %vm893_vm9, %v1690_v39, %v1535_v44  ;;  %v1693_v6 = vsel %vm888_vm8, %v1689_v46, %v8684_v48  ;;  %v11449_v46 = vld [vmem:[#allocation16_spill] sm:$0xff] }
 0x1ed   : > { %v1537_v7 = vpop.permute.xlu1 %1536  ;;  %v8686_v28 = vpop.permute.xlu0 %1538 }
 0x1f1   : > { %v8688_v24 = vpop.permute.xlu1 %1540  ;;  %v1599_v1 = vpop.permute.xlu0 %1598 }
 0x1f2   : > { %v1710_v11 = vsel %vm878_vm6, %v1706_v30, %v1599_v1  ;;  %v1684_v30 = vsel %vm878_vm6, %v1680_v63, %v1491_v43  ;;  %v1691_v43 = vsel %vm888_vm8, %v1687_v21, %v1521_v19  ;;  %v1697_v3 = vsel %vm893_vm9, %v1693_v6, %v8688_v24 }
 0x1f3   : > { %v1714_v53 = vsel %vm883_vm7, %v1710_v11, %v1615_v8  ;;  %v1688_v61 = vsel %vm883_vm7, %v1684_v30, %v8674_v62  ;;  %v11447_v30 = vmov 0.0  }
 0x1f4   : > { %v1692_v25 = vsel %vm888_vm8, %v1688_v61, %v1523_v50 }
 0x1f5   : > { %v1601_v38 = vpop.permute.xlu1 %1600  ;;  %v1603_v27 = vpop.permute.xlu0 %1602 }
 0x1f6   : > { %v1711_v56 = vsel %vm878_vm6, %v1707_v42, %v1601_v38  ;;  %v1712_v45 = vsel %vm878_vm6, %v1708_v31, %v1603_v27  ;;  %v1695_v27 = vsel %vm893_vm9, %v1691_v43, %v1537_v7 }
 0x1f7   : > { %v1715_v62 = vsel %vm883_vm7, %v1711_v56, %v8678_v9  ;;  %v1716_v44 = vsel %vm883_vm7, %v1712_v45, %v8680_v51 }
 0x1f9   : > { %v1605_v5 = vpop.permute.xlu1 %1604  ;;  %v1631_v20 = vpop.permute.xlu0 %1630 }
 0x1fa   : > { %v1718_v59 = vsel %vm888_vm8, %v1714_v53, %v1631_v20  ;;  %v1713_v19 = vsel %vm878_vm6, %v1709_v35, %v1605_v5  ;;  %v11448_v53 = vld [vmem:[#allocation17_spill] sm:$0xff] }
 0x1fb   : > { %v1869_v39 = vcombine.high %v11448_v53, %v11447_v30 }
 0x1fd   : > { %v1633_v57 = vpop.permute.xlu1 %1632  ;;  %v1635_v34 = vpop.permute.xlu0 %1634 }
 0x1fe   : > { %v1719_v20 = vsel %vm888_vm8, %v1715_v62, %v1633_v57  ;;  %v1720_v17 = vsel %vm888_vm8, %v1716_v44, %v1635_v34 }
 0x201   : > { %v8690_v10 = vpop.permute.xlu1 %1636  ;;  %v1647_v15 = vpop.permute.xlu0 %1646 }
 0x202   : > { %v1722_v16 = vsel %vm893_vm9, %v1718_v59, %v1647_v15  ;;  %v1696_v15 = vsel %vm893_vm9, %v1692_v25, %v8686_v28  ;;  %v1717_v28 = vsel %vm883_vm7, %v1713_v19, %v8682_v54 }
 0x203   : > { %v1721_v63 = vsel %vm888_vm8, %v1717_v28, %v8690_v10 }
 0x205   : > { %v1649_v40 = vpop.permute.xlu1 %1648  ;;  %v1651_v60 = vpop.permute.xlu0 %1650 }
 0x206   : > { %v1723_v50 = vsel %vm893_vm9, %v1719_v20, %v1649_v40 }
 0x209   : > { %v8692_v14 = vpop.permute.xlu1 %1652  ;;  %v1551_v58 = vpop.permute.xlu0 %1550 }
 0x20a   : > { %v1698_v55 = vsel %vm898_vm10, %v1694_v49, %v1551_v58  ;;  %v1724_v58 = vsel %vm893_vm9, %v1720_v17, %v1651_v60  ;;  %v1725_v11 = vsel %vm893_vm9, %v1721_v63, %v8692_v14  ;;  %v1883_v49 = vrot.slane %v1869_v39, %v11446_v26 }
 0x20d   : > { %v1553_v13 = vpop.permute.xlu1 %1552  ;;  %v1555_v4 = vpop.permute.xlu0 %1554 }
 0x20e   : > { %v1699_v7 = vsel %vm898_vm10, %v1695_v27, %v1553_v13  ;;  %v1700_v5 = vsel %vm898_vm10, %v1696_v15, %v1555_v4 }
 0x211   : > { %v1557_v2 = vpop.permute.xlu1 %1556  ;;  %v1663_v8 = vpop.permute.xlu0 %1662 }
 0x212   : > { %v1726_v1 = vsel %vm898_vm10, %v1722_v16, %v1663_v8  ;;  %v1701_v32 = vsel %vm898_vm10, %v1697_v3, %v1557_v2 }
 0x213   : > { %v1738_v38 = vcombine.low %v1698_v55, %v1726_v1  ;;  %v1854_v55 = vcombine.high %v11449_v46, %v11447_v30  ;;  %v1900_v1 = vcombine.high %v1883_v49, %v11447_v30 }
 0x215   : > { %v1745_v9 = vrot.slane %v1738_v38, %v8464_v12  ;;  %v1665_v51 = vpop.permute.xlu1 %1664  ;;  %v1667_v37 = vpop.permute.xlu0 %1666  ;;  %v1868_v62 = vrot.slane %v1854_v55, %v11445_v18 }
 0x216   : > { %v1727_v57 = vsel %vm898_vm10, %v1723_v50, %v1665_v51  ;;  %v1728_v34 = vsel %vm898_vm10, %v1724_v58, %v1667_v37 }
 0x217   : > { %v1752_v40 = vrot.slane %v1745_v9, %v8464_v12  ;;  %v1753_v23 = vcombine.low %v1699_v7, %v1727_v57  ;;  %v1768_v60 = vcombine.low %v1700_v5, %v1728_v34  ;;  %v1891_v20 = vrot.slane %v1868_v62, %v11446_v26 }
 0x218   : > { %v1884_v57 = vcombine.high %v1868_v62, %v11447_v30 }
 0x219   : > { %7437 = vst.msk [vmem:[%s8608_s6 + $0x1] ss:$8 sm:$0x3] %vm8582_vm11, %v1752_v40  ;;  %v1760_v54 = vrot.slane %v1753_v23, %v8464_v12  ;;  %v1775_v33 = vrot.slane %v1768_v60, %v8464_v12  ;;  %v1669_v36 = vpop.permute.xlu1 %1668  ;;  %v1835_v48 = vpop.permute.xlu0 %1834  ;;  %v1901_v7 = vcombine.high %v1891_v20, %v11447_v30 }
 0x21a   : > { %v1729_v10 = vsel %vm898_vm10, %v1725_v11, %v1669_v36  ;;  %v1959_v0 = vrot.slane %v1835_v48, %v11445_v18  ;;  %v1952_v44 = vcombine.high %v1835_v48, %v11447_v30  ;;  %v1898_v60 = vrot.slane %v1884_v57, %v11446_v26 }
 0x21b   : > { %v1767_v24 = vrot.slane %v1760_v54, %v8464_v12  ;;  %v1782_v14 = vrot.slane %v1775_v33, %v8464_v12  ;;  %v1783_v22 = vcombine.low %v1701_v32, %v1729_v10  ;;  %v11450_v33 = vld [vmem:[#allocation20_spill] sm:$0xff] }
 0x21c   : > { %v8782_v13 = vrot.slane %v1959_v0, %v11446_v26  ;;  %v1967_v21 = vcombine.high %v1959_v0, %v11447_v30  ;;  %v1966_v17 = vrot.slane %v1952_v44, %v11445_v18  ;;  %v1910_v36 = vrot.slane %v11450_v33, %v11445_v18 }
 0x21d   : > { %7438 = vst.msk [vmem:[%s8608_s6 + $0x21] ss:$8 sm:$0x3] %vm8582_vm11, %v1767_v24  ;;  %7439 = vst.msk [vmem:[%s8608_s6 + $0x41] ss:$8 sm:$0x3] %vm8582_vm11, %v1782_v14  ;;  %v1790_v4 = vrot.slane %v1783_v22, %v8464_v12  ;;  %v1839_v42 = vpop.permute.xlu0 %1838  ;;  %v1837_v63 = vpop.permute.xlu1 %1836  ;;  %v1902_v32 = vcombine.high %v1898_v60, %v11447_v30  ;;  %v1903_v55 = vcombine.high %v11450_v33, %v11447_v30 }
 0x21e   : > { %v2057_v47 = vrot.slane %v1839_v42, %v11445_v18  ;;  %v1997_v35 = vcombine.high %v8782_v13, %v11447_v30  ;;  %v1981_v43 = vrot.slane %v1967_v21, %v11446_v26  ;;  %v2050_v38 = vcombine.high %v1839_v42, %v11447_v30 }
 0x21f   : > { %v1797_v31 = vrot.slane %v1790_v4, %v8464_v12  ;;  %v1989_v37 = vrot.slane %v1966_v17, %v11446_v26  ;;  %v1982_v40 = vcombine.high %v1966_v17, %v11447_v30  ;;  %v8875_v0 = vrot.slane %v1910_v36, %v11446_v26 }
 0x220   : > { %v8799_v52 = vrot.slane %v2057_v47, %v11446_v26  ;;  %2252 = vrot.lane.b32.xlu1 %v1997_v35, %s7636_s25  ;;  %v2065_v61 = vcombine.high %v2057_v47, %v11447_v30  ;;  %v1998_v19 = vcombine.high %v1981_v43, %v11447_v30  ;;  %v2064_v15 = vrot.slane %v2050_v38, %v11445_v18 }
 0x221   : > { %7440 = vst.msk [vmem:[%s8608_s6 + $0x61] ss:$8 sm:$0x3] %vm8582_vm11, %v1797_v31  ;;  %v1843_v41 = vpop.permute.xlu0 %1842  ;;  %v1999_v28 = vcombine.high %v1989_v37, %v11447_v30  ;;  %v1996_v54 = vrot.slane %v1982_v40, %v11446_v26  ;;  %v1841_v48 = vpop.permute.xlu1 %1840  ;;  %v2008_v24 = vrot.slane %v1837_v63, %v11445_v18  ;;  %v1948_v31 = vcombine.high %v8875_v0, %v11447_v30 }
 0x222   : > { %v2155_v56 = vrot.slane %v1843_v41, %v11445_v18  ;;  %v2095_v45 = vcombine.high %v8799_v52, %v11447_v30  ;;  %v2079_v8 = vrot.slane %v2065_v61, %v11446_v26  ;;  %v2148_v50 = vcombine.high %v1843_v41, %v11447_v30 }
 0x223   : > { %v2087_v51 = vrot.slane %v2064_v15, %v11446_v26  ;;  %v2080_v23 = vcombine.high %v2064_v15, %v11447_v30  ;;  %v2106_v14 = vrot.slane %v1841_v48, %v11445_v18  ;;  %v2000_v4 = vcombine.high %v1996_v54, %v11447_v30 }
 0x224   : > { %v8808_v59 = vrot.slane %v2155_v56, %v11446_v26  ;;  %2254 = vrot.lane.b32.xlu0 %v2095_v45, %s7636_s25  ;;  %v2163_v2 = vcombine.high %v2155_v56, %v11447_v30  ;;  %v2096_v27 = vcombine.high %v2079_v8, %v11447_v30  ;;  %v2162_v9 = vrot.slane %v2148_v50, %v11445_v18 }
 0x225   : > { %v2097_v34 = vcombine.high %v2087_v51, %v11447_v30  ;;  %v2094_v11 = vrot.slane %v2080_v23, %v11446_v26  ;;  %v1845_v42 = vpop.permute.xlu1 %1844  ;;  %v8886_v47 = vrot.slane %v2008_v24, %v11446_v26  ;;  %v8889_v35 = vrot.slane %v2106_v14, %v11446_v26 }
 0x226   : > { %v2193_v16 = vcombine.high %v8808_v59, %v11447_v30  ;;  %v2177_v25 = vrot.slane %v2163_v2, %v11446_v26  ;;  %v2185_v5 = vrot.slane %v2162_v9, %v11446_v26  ;;  %v2178_v3 = vcombine.high %v2162_v9, %v11447_v30 }
 0x227   : > { %v2098_v22 = vcombine.high %v2094_v11, %v11447_v30  ;;  %v2204_v41 = vrot.slane %v1845_v42, %v11445_v18  ;;  %v1918_v39 = vcombine.high %v1910_v36, %v11447_v30  ;;  %v2144_v45 = vcombine.high %v8889_v35, %v11447_v30 }
 0x228   : > { %2266 = vrot.lane.b32.xlu0 %v1883_v49, %s7637_s26  ;;  %2256 = vrot.lane.b32.xlu1 %v2193_v16, %s7636_s25  ;;  %v2194_v58 = vcombine.high %v2177_v25, %v11447_v30  ;;  %v2195_v6 = vcombine.high %v2185_v5, %v11447_v30  ;;  %v2192_v10 = vrot.slane %v2178_v3, %v11446_v26 }
 0x229   : > { %v8897_v56 = vrot.slane %v2204_v41, %v11446_v26  ;;  %v2046_v21 = vcombine.high %v8886_v47, %v11447_v30  ;;  %v2016_v61 = vcombine.high %v2008_v24, %v11447_v30  ;;  %v2114_v49 = vcombine.high %v2106_v14, %v11447_v30 }
 0x22a   : > { %v2196_v53 = vcombine.high %v2192_v10, %v11447_v30  ;;  %v1932_v16 = vrot.slane %v1918_v39, %v11446_v26  ;;  %v1917_v62 = vrot.slane %v1903_v55, %v11445_v18  ;;  %v2001_v44 = vcombine.high %v1837_v63, %v11447_v30 }
 0x22b   : > { %v2242_v2 = vcombine.high %v8897_v56, %v11447_v30  ;;  %v2030_v46 = vrot.slane %v2016_v61, %v11446_v26  ;;  %v2099_v38 = vcombine.high %v1841_v48, %v11447_v30  ;;  %v2197_v50 = vcombine.high %v1845_v42, %v11447_v30  ;;  %v9000_v61 = vpop.permute.xlu0 %2250 }
 0x22c   : > { %2270 = vrot.lane.b32.xlu0 %v2079_v8, %s7637_s26  ;;  %2268 = vrot.lane.b32.xlu1 %v1981_v43, %s7637_s26  ;;  %v2212_v8 = vcombine.high %v2204_v41, %v11447_v30  ;;  %v2128_v43 = vrot.slane %v2114_v49, %v11446_v26  ;;  %v2015_v17 = vrot.slane %v2001_v44, %v11445_v18 }
 0x22d   : > { %v2113_v15 = vrot.slane %v2099_v38, %v11445_v18  ;;  %v2211_v9 = vrot.slane %v2197_v50, %v11445_v18  ;;  %v1933_v57 = vcombine.high %v1917_v62, %v11447_v30 }
 0x22e   : > { %v2031_v40 = vcombine.high %v2015_v17, %v11447_v30 }
 0x22f   : > { %v2129_v23 = vcombine.high %v2113_v15, %v11447_v30  ;;  %v2227_v63 = vcombine.high %v2211_v9, %v11447_v30 }
 0x230   : > { %2282 = vrot.lane.b32.xlu0 %v1900_v1, %s7639_s28  ;;  %2272 = vrot.lane.b32.xlu1 %v2177_v25, %s7637_s26  ;;  %v1949_v1 = vcombine.high %v1932_v16, %v11447_v30  ;;  %v2226_v25 = vrot.slane %v2212_v8, %v11446_v26 }
 0x231   : > { %v2143_v3 = vrot.slane %v2129_v23, %v11446_v26  ;;  %v2241_v36 = vrot.slane %v2227_v63, %v11446_v26 }
 0x233   : > { %v2147_v14 = vcombine.high %v2143_v3, %v11447_v30  ;;  %v2245_v39 = vcombine.high %v2241_v36, %v11447_v30 }
 0x234   : > { %2286 = vrot.lane.b32.xlu0 %v2096_v27, %s7639_s28  ;;  %2284 = vrot.lane.b32.xlu1 %v1998_v19, %s7639_s28  ;;  %v2145_v27 = vcombine.high %v2128_v43, %v11447_v30  ;;  %v2047_v19 = vcombine.high %v2030_v46, %v11447_v30 }
 0x238   : > { %2298 = vrot.lane.b32.xlu0 %v1891_v20, %s7638_s27  ;;  %2288 = vrot.lane.b32.xlu1 %v2194_v58, %s7639_s28  ;;  %v1940_v20 = vrot.slane %v1917_v62, %v11446_v26  ;;  %v2243_v58 = vcombine.high %v2226_v25, %v11447_v30 }
 0x23c   : > { %2302 = vrot.lane.b32.xlu0 %v2087_v51, %s7638_s27  ;;  %2300 = vrot.lane.b32.xlu1 %v1989_v37, %s7638_s27  ;;  %v2136_v51 = vrot.slane %v2113_v15, %v11446_v26  ;;  %v2038_v37 = vrot.slane %v2015_v17, %v11446_v26 }
 0x240   : > { %2314 = vrot.lane.b32.xlu0 %v1901_v7, %s7640_s29  ;;  %2304 = vrot.lane.b32.xlu1 %v2185_v5, %s7638_s27  ;;  %v1950_v7 = vcombine.high %v1940_v20, %v11447_v30  ;;  %v2234_v5 = vrot.slane %v2211_v9, %v11446_v26 }
 0x244   : > { %2318 = vrot.lane.b32.xlu0 %v2097_v34, %s7640_s29  ;;  %2316 = vrot.lane.b32.xlu1 %v1999_v28, %s7640_s29  ;;  %v2146_v34 = vcombine.high %v2136_v51, %v11447_v30  ;;  %v2048_v28 = vcombine.high %v2038_v37, %v11447_v30 }
 0x248   : > { %2330 = vrot.lane.b32.xlu0 %v1898_v60, %s7641_s30  ;;  %2320 = vrot.lane.b32.xlu1 %v2195_v6, %s7640_s29  ;;  %v1947_v60 = vrot.slane %v1933_v57, %v11446_v26  ;;  %v2244_v6 = vcombine.high %v2234_v5, %v11447_v30 }
 0x24a   : > { %v1951_v33 = vcombine.high %v1947_v60, %v11447_v30 }
 0x24c   : > { %2334 = vrot.lane.b32.xlu0 %v2094_v11, %s7641_s30  ;;  %2332 = vrot.lane.b32.xlu1 %v1996_v54, %s7641_s30  ;;  %v2045_v11 = vrot.slane %v2031_v40, %v11446_v26  ;;  %v8960_v54 = vld [vmem:[#allocation2 + $0x1] sm:$0xff] }
 0x24d   : > { %11451 = vst [vmem:[#allocation24_spill] sm:$0xff] %v8960_v54  ;;  %v2625_v48 = vrot.slane %v8960_v54, %v11445_v18  ;;  %v2618_v9 = vcombine.high %v8960_v54, %v11447_v30 }
 0x250   : > { %2346 = vrot.lane.b32.xlu0 %v1902_v32, %s7642_s2  ;;  %2336 = vrot.lane.b32.xlu1 %v2192_v10, %s7641_s30  ;;  %v8968_v32 = vld [vmem:[#allocation2 + $0x19] sm:$0xff]  ;;  %v8970_v10 = vld [vmem:[#allocation2 + $0x31] sm:$0xff] }
 0x251   : > { %11452 = vst [vmem:[#allocation18_spill] sm:$0xff] %v8968_v32  ;;  %11453 = vst [vmem:[#allocation19_spill] sm:$0xff] %v8970_v10  ;;  %v2723_v24 = vrot.slane %v8968_v32, %v11445_v18  ;;  %v2821_v42 = vrot.slane %v8970_v10, %v11445_v18 }
 0x253   : > { %v8988_v41 = vrot.slane %v2723_v24, %v11446_v26  ;;  %v2731_v62 = vcombine.high %v2723_v24, %v11447_v30 }
 0x254   : > { %2350 = vrot.lane.b32.xlu0 %v2098_v22, %s7642_s2  ;;  %2348 = vrot.lane.b32.xlu1 %v2000_v4, %s7642_s2  ;;  %v2049_v22 = vcombine.high %v2045_v11, %v11447_v30  ;;  %v8979_v4 = vrot.slane %v2625_v48, %v11446_v26 }
 0x255   : > { %11456 = vst [vmem:[#allocation9_spill] sm:$0xff] %v8988_v41 }
 0x256   : > { %11454 = vst [vmem:[#allocation22_spill] sm:$0xff] %v8979_v4 }
 0x258   : > { %2362 = vrot.lane.b32.xlu0 %v1948_v31, %s7636_s25  ;;  %2352 = vrot.lane.b32.xlu1 %v2196_v53, %s7642_s2  ;;  %v8983_v31 = vld [vmem:[#allocation2 + $0x49] sm:$0xff]  ;;  %v2663_v53 = vcombine.high %v8979_v4, %v11447_v30 }
 0x259   : > { %11455 = vst [vmem:[#allocation8_spill] sm:$0xff] %v8983_v31 }
 0x25c   : > { %2366 = vrot.lane.b32.xlu0 %v2144_v45, %s7636_s25  ;;  %2364 = vrot.lane.b32.xlu1 %v2046_v21, %s7636_s25  ;;  %v8994_v45 = vrot.slane %v2821_v42, %v11446_v26  ;;  %v2919_v21 = vrot.slane %v8983_v31, %v11445_v18 }
 0x25e   : > { %11457 = vst [vmem:[#allocation12_spill] sm:$0xff] %v8994_v45  ;;  %v2859_v49 = vcombine.high %v8994_v45, %v11447_v30  ;;  %v9008_v8 = vrot.slane %v2919_v21, %v11446_v26 }
 0x260   : > { %2378 = vrot.lane.b32.xlu0 %v1932_v16, %s7637_s26  ;;  %2368 = vrot.lane.b32.xlu1 %v2242_v2, %s7636_s25  ;;  %v2761_v16 = vcombine.high %v8988_v41, %v11447_v30  ;;  %v2633_v2 = vcombine.high %v2625_v48, %v11447_v30  ;;  %11458 = vst [vmem:[#allocation10_spill] sm:$0xff] %v9008_v8 }
 0x262   : > { %v2647_v55 = vrot.slane %v2633_v2, %v11446_v26 }
 0x264   : > { %2382 = vrot.lane.b32.xlu0 %v2128_v43, %s7637_s26  ;;  %2380 = vrot.lane.b32.xlu1 %v2030_v46, %s7637_s26  ;;  %v2664_v50 = vcombine.high %v2647_v55, %v11447_v30 }
 0x268   : > { %2394 = vrot.lane.b32.xlu0 %v1949_v1, %s7639_s28  ;;  %2384 = vrot.lane.b32.xlu1 %v2226_v25, %s7637_s26  ;;  %v2957_v1 = vcombine.high %v9008_v8, %v11447_v30  ;;  %v2829_v25 = vcombine.high %v2821_v42, %v11447_v30 }
 0x26c   : > { %2398 = vrot.lane.b32.xlu0 %v2145_v27, %s7639_s28  ;;  %2396 = vrot.lane.b32.xlu1 %v2047_v19, %s7639_s28  ;;  %v2843_v27 = vrot.slane %v2829_v25, %v11446_v26  ;;  %v2745_v19 = vrot.slane %v2731_v62, %v11446_v26 }
 0x26e   : > { %v2762_v57 = vcombine.high %v2745_v19, %v11447_v30 }
 0x270   : > { %2410 = vrot.lane.b32.xlu0 %v1940_v20, %s7638_s27  ;;  %2400 = vrot.lane.b32.xlu1 %v2243_v58, %s7639_s28  ;;  %v2927_v20 = vcombine.high %v2919_v21, %v11447_v30 }
 0x272   : > { %v2941_v58 = vrot.slane %v2927_v20, %v11446_v26 }
 0x274   : > { %2414 = vrot.lane.b32.xlu0 %v2136_v51, %s7638_s27  ;;  %2412 = vrot.lane.b32.xlu1 %v2038_v37, %s7638_s27  ;;  %v2716_v51 = vcombine.high %v8968_v32, %v11447_v30  ;;  %v2958_v63 = vcombine.high %v2941_v58, %v11447_v30 }
 0x276   : > { %v2730_v40 = vrot.slane %v2716_v51, %v11445_v18 }
 0x278   : > { %2426 = vrot.lane.b32.xlu0 %v1950_v7, %s7640_s29  ;;  %2416 = vrot.lane.b32.xlu1 %v2234_v5, %s7638_s27  ;;  %v2860_v5 = vcombine.high %v2843_v27, %v11447_v30  ;;  %v2753_v24 = vrot.slane %v2730_v40, %v11446_v26  ;;  %v2746_v20 = vcombine.high %v2730_v40, %v11447_v30 }
 0x27a   : > { %v2763_v2 = vcombine.high %v2753_v24, %v11447_v30  ;;  %v2760_v51 = vrot.slane %v2746_v20, %v11446_v26 }
 0x27c   : > { %2430 = vrot.lane.b32.xlu0 %v2146_v34, %s7640_s29  ;;  %2428 = vrot.lane.b32.xlu1 %v2048_v28, %s7640_s29  ;;  %v2632_v34 = vrot.slane %v2618_v9, %v11445_v18  ;;  %v2814_v28 = vcombine.high %v8970_v10, %v11447_v30 }
 0x280   : > { %2442 = vrot.lane.b32.xlu0 %v1947_v60, %s7641_s30  ;;  %2432 = vrot.lane.b32.xlu1 %v2244_v6, %s7640_s29  ;;  %v2655_v6 = vrot.slane %v2632_v34, %v11446_v26 }
 0x284   : > { %2446 = vrot.lane.b32.xlu0 %v2143_v3, %s7641_s30  ;;  %2444 = vrot.lane.b32.xlu1 %v2045_v11, %s7641_s30  ;;  %v2828_v3 = vrot.slane %v2814_v28, %v11445_v18  ;;  %v2912_v11 = vcombine.high %v8983_v31, %v11447_v30 }
 0x286   : > { %v2851_v48 = vrot.slane %v2828_v3, %v11446_v26 }
 0x288   : > { %2458 = vrot.lane.b32.xlu0 %v1951_v33, %s7642_s2  ;;  %2448 = vrot.lane.b32.xlu1 %v2241_v36, %s7641_s30 }
 0x28c   : > { %2462 = vrot.lane.b32.xlu0 %v2147_v14, %s7642_s2  ;;  %2460 = vrot.lane.b32.xlu1 %v2049_v22, %s7642_s2  ;;  %v2926_v14 = vrot.slane %v2912_v11, %v11445_v18  ;;  %v9124_v11 = vld [vmem:[#allocation2 + $0x21] sm:$0xff] }
 0x28d   : > { %11462 = vst [vmem:[#allocation15_spill] sm:$0xff] %v9124_v11 }
 0x290   : > { %3014 = vrot.lane.b32.xlu0 %v2663_v53, %s7636_s25  ;;  %2464 = vrot.lane.b32.xlu1 %v2245_v39, %s7642_s2  ;;  %v2665_v53 = vcombine.high %v2655_v6, %v11447_v30  ;;  %v2949_v39 = vrot.slane %v2926_v14, %v11446_v26 }
 0x292   : > { %v9012_v43 = vpop.permute.xlu1 %2252 }
 0x294   : > { %3018 = vrot.lane.b32.xlu0 %v2859_v49, %s7636_s25  ;;  %3016 = vrot.lane.b32.xlu1 %v2761_v16, %s7636_s25  ;;  %v2861_v16 = vcombine.high %v2851_v48, %v11447_v30 }
 0x296   : > { %v9014_v46 = vpop.permute.xlu0 %2254 }
 0x298   : > { %3030 = vrot.lane.b32.xlu0 %v2647_v55, %s7637_s26  ;;  %3020 = vrot.lane.b32.xlu1 %v2957_v1, %s7636_s25  ;;  %v2648_v55 = vcombine.high %v2632_v34, %v11447_v30 }
 0x29a   : > { %v9023_v44 = vpop.permute.xlu1 %2256  ;;  %v9025_v38 = vpop.permute.xlu0 %2266  ;;  %v2662_v62 = vrot.slane %v2648_v55, %v11446_v26  ;;  %v9141_v55 = vld [vmem:[#allocation2 + $0x51] sm:$0xff] }
 0x29b   : > { %11465 = vst [vmem:[#allocation20_spill] sm:$0xff] %v9141_v55 }
 0x29c   : > { %3034 = vrot.lane.b32.xlu0 %v2843_v27, %s7637_s26  ;;  %3032 = vrot.lane.b32.xlu1 %v2745_v19, %s7637_s26  ;;  %v2959_v27 = vcombine.high %v2949_v39, %v11447_v30  ;;  %v2844_v19 = vcombine.high %v2828_v3, %v11447_v30  ;;  %v2666_v40 = vcombine.high %v2662_v62, %v11447_v30  ;;  %v9122_v3 = vld [vmem:[#allocation2 + $0x39] sm:$0xff] }
 0x29d   : > { %11461 = vst [vmem:[#allocation14_spill] sm:$0xff] %v9122_v3  ;;  %v2863_v32 = vcombine.high %v9122_v3, %v11447_v30 }
 0x29e   : > { %v9032_v17 = vpop.permute.xlu1 %2268  ;;  %v9034_v15 = vpop.permute.xlu0 %2270  ;;  %v2858_v9 = vrot.slane %v2844_v19, %v11446_v26 }
 0x2a0   : > { %3046 = vrot.lane.b32.xlu0 %v2664_v50, %s7639_s28  ;;  %3036 = vrot.lane.b32.xlu1 %v2941_v58, %s7637_s26 }
 0x2a2   : > { %v9044_v37 = vpop.permute.xlu1 %2272  ;;  %v9046_v7 = vpop.permute.xlu0 %2282 }
 0x2a4   : > { %3050 = vrot.lane.b32.xlu0 %v2860_v5, %s7639_s28  ;;  %3048 = vrot.lane.b32.xlu1 %v2762_v57, %s7639_s28  ;;  %v2942_v5 = vcombine.high %v2926_v14, %v11447_v30  ;;  %v9110_v57 = vld [vmem:[#allocation2 + $0x9] sm:$0xff] }
 0x2a5   : > { %11460 = vst [vmem:[#allocation13_spill] sm:$0xff] %v9110_v57  ;;  %v2667_v31 = vcombine.high %v9110_v57, %v11447_v30 }
 0x2a6   : > { %v9056_v23 = vpop.permute.xlu1 %2284  ;;  %v9058_v60 = vpop.permute.xlu0 %2286 }
 0x2a8   : > { %3062 = vrot.lane.b32.xlu0 %v2655_v6, %s7638_s27  ;;  %3052 = vrot.lane.b32.xlu1 %v2958_v63, %s7639_s28  ;;  %v2956_v6 = vrot.slane %v2942_v5, %v11446_v26  ;;  %v2674_v63 = vrot.slane %v9110_v57, %v11445_v18  ;;  %v2968_v5 = vrot.slane %v9141_v55, %v11445_v18 }
 0x2aa   : > { %v9067_v33 = vpop.permute.xlu1 %2288  ;;  %v9069_v36 = vpop.permute.xlu0 %2298  ;;  %v9172_v8 = vrot.slane %v2968_v5, %v11446_v26 }
 0x2ac   : > { %3066 = vrot.lane.b32.xlu0 %v2851_v48, %s7638_s27  ;;  %3064 = vrot.lane.b32.xlu1 %v2753_v24, %s7638_s27  ;;  %v2870_v48 = vrot.slane %v9122_v3, %v11445_v18  ;;  %11470 = vst [vmem:[#allocation30_spill] sm:$0xff] %v9172_v8 }
 0x2ae   : > { %v9076_v22 = vpop.permute.xlu1 %2300  ;;  %v9078_v42 = vpop.permute.xlu0 %2302 }
 0x2b0   : > { %3078 = vrot.lane.b32.xlu0 %v2665_v53, %s7640_s29  ;;  %3068 = vrot.lane.b32.xlu1 %v2949_v39, %s7638_s27  ;;  %v2862_v53 = vcombine.high %v2858_v9, %v11447_v30  ;;  %v2764_v39 = vcombine.high %v2760_v51, %v11447_v30 }
 0x2b2   : > { %v9084_v21 = vpop.permute.xlu1 %2304  ;;  %v9086_v49 = vpop.permute.xlu0 %2314 }
 0x2b4   : > { %3082 = vrot.lane.b32.xlu0 %v2861_v16, %s7640_s29  ;;  %3080 = vrot.lane.b32.xlu1 %v2763_v2, %s7640_s29  ;;  %v9137_v16 = vrot.slane %v2674_v63, %v11446_v26  ;;  %v2772_v2 = vrot.slane %v9124_v11, %v11445_v18 }
 0x2b6   : > { %v9093_v1 = vpop.permute.xlu1 %2316  ;;  %v9095_v25 = vpop.permute.xlu0 %2318  ;;  %11464 = vst [vmem:[#allocation16_spill] sm:$0xff] %v9137_v16  ;;  %v2712_v20 = vcombine.high %v9137_v16, %v11447_v30  ;;  %v2682_v16 = vcombine.high %v2674_v63, %v11447_v30  ;;  %v2780_v63 = vcombine.high %v2772_v2, %v11447_v30 }
 0x2b8   : > { %3094 = vrot.lane.b32.xlu0 %v2662_v62, %s7641_s30  ;;  %3084 = vrot.lane.b32.xlu1 %v2959_v27, %s7640_s29  ;;  %v9146_v62 = vrot.slane %v2870_v48, %v11446_v26  ;;  %v2696_v45 = vrot.slane %v2682_v16, %v11446_v26  ;;  %v2794_v4 = vrot.slane %v2780_v63, %v11446_v26 }
 0x2b9   : > { %v2976_v16 = vcombine.high %v2968_v5, %v11447_v30 }
 0x2ba   : > { %v9103_v50 = vpop.permute.xlu1 %2320  ;;  %v9105_v58 = vpop.permute.xlu0 %2330  ;;  %11466 = vst [vmem:[#allocation26_spill] sm:$0xff] %v9146_v62 }
 0x2bb   : > { %11459 = vst [vmem:[#allocation11_spill] sm:$0xff] %v9103_v50 }
 0x2bc   : > { %3098 = vrot.lane.b32.xlu0 %v2858_v9, %s7641_s30  ;;  %3096 = vrot.lane.b32.xlu1 %v2760_v51, %s7641_s30  ;;  %v2960_v9 = vcombine.high %v2956_v6, %v11447_v30  ;;  %v9156_v51 = vrot.slane %v2772_v2, %v11446_v26 }
 0x2be   : > { %v9114_v34 = vpop.permute.xlu1 %2332  ;;  %v9116_v28 = vpop.permute.xlu0 %2334  ;;  %11468 = vst [vmem:[#allocation28_spill] sm:$0xff] %v9156_v51 }
 0x2c0   : > { %3110 = vrot.lane.b32.xlu0 %v2666_v40, %s7642_s2  ;;  %3100 = vrot.lane.b32.xlu1 %v2956_v6, %s7641_s30  ;;  %v2810_v6 = vcombine.high %v9156_v51, %v11447_v30  ;;  %v2878_v51 = vcombine.high %v2870_v48, %v11447_v30 }
 0x2c2   : > { %v9130_v24 = vpop.permute.xlu1 %2336  ;;  %v9132_v14 = vpop.permute.xlu0 %2346  ;;  %v2892_v41 = vrot.slane %v2878_v51, %v11446_v26  ;;  %v2765_v51 = vcombine.high %v9124_v11, %v11447_v30 }
 0x2c3   : > { %11463 = vst [vmem:[#allocation17_spill] sm:$0xff] %v9130_v24 }
 0x2c4   : > { %3114 = vrot.lane.b32.xlu0 %v2862_v53, %s7642_s2  ;;  %3112 = vrot.lane.b32.xlu1 %v2764_v39, %s7642_s2  ;;  %v2908_v39 = vcombine.high %v9146_v62, %v11447_v30  ;;  %v3006_v62 = vcombine.high %v9172_v8, %v11447_v30  ;;  %v2990_v8 = vrot.slane %v2976_v16, %v11446_v26 }
 0x2c5   : > { %v2909_v10 = vcombine.high %v2892_v41, %v11447_v30  ;;  %v2681_v16 = vrot.slane %v2667_v31, %v11445_v18  ;;  %v2961_v31 = vcombine.high %v9141_v55, %v11447_v30 }
 0x2c6   : > { %v9148_v27 = vpop.permute.xlu1 %2348  ;;  %v9150_v19 = vpop.permute.xlu0 %2350 }
 0x2c7   : > { %11467 = vst [vmem:[#allocation27_spill] sm:$0xff] %v9150_v19  ;;  %v2697_v24 = vcombine.high %v2681_v16, %v11447_v30 }
 0x2c8   : > { %3126 = vrot.lane.b32.xlu0 %v2712_v20, %s7636_s25  ;;  %3116 = vrot.lane.b32.xlu1 %v2960_v9, %s7642_s2 }
 0x2ca   : > { %v9162_v40 = vpop.permute.xlu1 %2352  ;;  %v9164_v53 = vpop.permute.xlu0 %2362 }
 0x2cb   : > { %11469 = vst [vmem:[#allocation29_spill] sm:$0xff] %v9162_v40  ;;  %v3007_v40 = vcombine.high %v2990_v8, %v11447_v30 }
 0x2cc   : > { %3130 = vrot.lane.b32.xlu0 %v2908_v39, %s7636_s25  ;;  %3128 = vrot.lane.b32.xlu1 %v2810_v6, %s7636_s25 }
 0x2ce   : > { %v9176_v20 = vpop.permute.xlu1 %2364  ;;  %v9178_v9 = vpop.permute.xlu0 %2366 }
 0x2d0   : > { %3142 = vrot.lane.b32.xlu0 %v2696_v45, %s7637_s26  ;;  %3132 = vrot.lane.b32.xlu1 %v3006_v62, %s7636_s25  ;;  %v2713_v62 = vcombine.high %v2696_v45, %v11447_v30  ;;  %v2811_v45 = vcombine.high %v2794_v4, %v11447_v30 }
 0x2d2   : > { %v9187_v39 = vpop.permute.xlu1 %2368  ;;  %v9189_v6 = vpop.permute.xlu0 %2378 }
 0x2d4   : > { %3146 = vrot.lane.b32.xlu0 %v2892_v41, %s7637_s26  ;;  %3144 = vrot.lane.b32.xlu1 %v2794_v4, %s7637_s26  ;;  %v2704_v41 = vrot.slane %v2681_v16, %v11446_v26  ;;  %v2877_v4 = vrot.slane %v2863_v32, %v11445_v18 }
 0x2d6   : > { %v9196_v48 = vpop.permute.xlu1 %2380  ;;  %v9198_v2 = vpop.permute.xlu0 %2382  ;;  %v2900_v3 = vrot.slane %v2877_v4, %v11446_v26  ;;  %v2714_v29 = vcombine.high %v2704_v41, %v11447_v30 }
 0x2d8   : > { %3158 = vrot.lane.b32.xlu0 %v2713_v62, %s7639_s28  ;;  %3148 = vrot.lane.b32.xlu1 %v2990_v8, %s7637_s26  ;;  %v2779_v62 = vrot.slane %v2765_v51, %v11445_v18  ;;  %v2975_v8 = vrot.slane %v2961_v31, %v11445_v18  ;;  %v2893_v18 = vcombine.high %v2877_v4, %v11447_v30 }
 0x2d9   : > { %v2910_v12 = vcombine.high %v2900_v3, %v11447_v30 }
 0x2da   : > { %v9208_v5 = vpop.permute.xlu1 %2384  ;;  %v9210_v63 = vpop.permute.xlu0 %2394  ;;  %v2795_v31 = vcombine.high %v2779_v62, %v11447_v30 }
 0x2dc   : > { %3162 = vrot.lane.b32.xlu0 %v2909_v10, %s7639_s28  ;;  %3160 = vrot.lane.b32.xlu1 %v2811_v45, %s7639_s28  ;;  %v2802_v45 = vrot.slane %v2779_v62, %v11446_v26  ;;  %v2809_v16 = vrot.slane %v2795_v31, %v11446_v26  ;;  %v2907_v62 = vrot.slane %v2893_v18, %v11446_v26  ;;  %v11472_v18 = vld [vmem:[#allocation21_spill] sm:$0xff] }
 0x2de   : > { %v9220_v11 = vpop.permute.xlu1 %2396  ;;  %v9222_v57 = vpop.permute.xlu0 %2398  ;;  %v2812_v19 = vcombine.high %v2802_v45, %v11447_v30 }
 0x2e0   : > { %3164 = vrot.lane.b32.xlu1 %v3007_v40, %s7639_s28  ;;  %3174 = vrot.lane.b32.xlu0 %v2704_v41, %s7638_s27  ;;  %v2998_v40 = vrot.slane %v2975_v8, %v11446_v26 }
 0x2e2   : > { %v9231_v10 = vpop.permute.xlu1 %2400  ;;  %v9233_v51 = vpop.permute.xlu0 %2410 }
 0x2e3   : > { %11471 = vst [vmem:[#allocation31_spill] sm:$0xff] %v9231_v10  ;;  %v2991_v10 = vcombine.high %v2975_v8, %v11447_v30  ;;  %v2470_v8 = vsel %vm868_vm4, %v11472_v18, %v9000_v61 }
 0x2e4   : > { %3176 = vrot.lane.b32.xlu1 %v2802_v45, %s7638_s27  ;;  %3178 = vrot.lane.b32.xlu0 %v2900_v3, %s7638_s27  ;;  %v3008_v45 = vcombine.high %v2998_v40, %v11447_v30  ;;  %v2474_v61 = vsel %vm873_vm5, %v2470_v8, %v9025_v38 }
 0x2e5   : > { %v3005_v3 = vrot.slane %v2991_v10, %v11446_v26  ;;  %v2472_v10 = vsel %vm868_vm4, %v8799_v52, %v9014_v46  ;;  %v2478_v46 = vsel %vm878_vm6, %v2474_v61, %v9046_v7  ;;  %v11476_v61 = vld [vmem:[#allocation24_spill] sm:$0xff] }
 0x2e6   : > { %v9240_v32 = vpop.permute.xlu1 %2412  ;;  %v9242_v55 = vpop.permute.xlu0 %2414  ;;  %v2482_v38 = vsel %vm883_vm7, %v2478_v46, %v9069_v36 }
 0x2e8   : > { %3180 = vrot.lane.b32.xlu1 %v2998_v40, %s7638_s27  ;;  %3190 = vrot.lane.b32.xlu0 %v2714_v29, %s7640_s29  ;;  %v2711_v29 = vrot.slane %v2697_v24, %v11446_v26  ;;  %v2813_v24 = vcombine.high %v2809_v16, %v11447_v30  ;;  %v2471_v40 = vsel %vm868_vm4, %v8782_v13, %v9012_v43 }
 0x2e9   : > { %v2473_v26 = vsel %vm868_vm4, %v8808_v59, %v9023_v44  ;;  %v2475_v13 = vsel %vm873_vm5, %v2471_v40, %v9032_v17  ;;  %v2476_v43 = vsel %vm873_vm5, %v2472_v10, %v9034_v15 }
 0x2ea   : > { %v9251_v50 = vpop.permute.xlu1 %2416  ;;  %v2427_v54 = vpop.permute.xlu0 %2426  ;;  %v2477_v52 = vsel %vm873_vm5, %v2473_v26, %v9044_v37  ;;  %v2479_v18 = vsel %vm878_vm6, %v2475_v13, %v9056_v23  ;;  %v2480_v59 = vsel %vm878_vm6, %v2476_v43, %v9058_v60  ;;  %v2498_v26 = vsel %vm868_vm4, %v8875_v0, %v9164_v53  ;;  %v11477_v13 = vld [vmem:[#allocation11_spill] sm:$0xff] }
 0x2eb   : > { %v2481_v44 = vsel %vm878_vm6, %v2477_v52, %v9067_v33  ;;  %v2483_v17 = vsel %vm883_vm7, %v2479_v18, %v9076_v22  ;;  %v2484_v15 = vsel %vm883_vm7, %v2480_v59, %v9078_v42  ;;  %v2502_v7 = vsel %vm873_vm5, %v2498_v26, %v9189_v6  ;;  %v11478_v52 = vld [vmem:[#allocation17_spill] sm:$0xff] }
 0x2ec   : > { %3192 = vrot.lane.b32.xlu1 %v2812_v19, %s7640_s29  ;;  %3194 = vrot.lane.b32.xlu0 %v2910_v12, %s7640_s29  ;;  %v2715_v12 = vcombine.high %v2711_v29, %v11447_v30  ;;  %v2911_v19 = vcombine.high %v2907_v62, %v11447_v30  ;;  %v2485_v37 = vsel %vm883_vm7, %v2481_v44, %v9084_v21 }
 0x2ed   : > { %v2486_v33 = vsel %vm888_vm8, %v2482_v38, %v9086_v49  ;;  %v2487_v0 = vsel %vm888_vm8, %v2483_v17, %v9093_v1  ;;  %v2488_v36 = vsel %vm888_vm8, %v2484_v15, %v9095_v25  ;;  %v2506_v22 = vsel %vm878_vm6, %v2502_v7, %v9210_v63  ;;  %v11480_v17 = vld [vmem:[#allocation29_spill] sm:$0xff] }
 0x2ee   : > { %v9261_v41 = vpop.permute.xlu1 %2428  ;;  %v9263_v4 = vpop.permute.xlu0 %2430  ;;  %v2490_v42 = vsel %vm893_vm9, %v2486_v33, %v9105_v58  ;;  %v2491_v21 = vsel %vm893_vm9, %v2487_v0, %v9114_v34  ;;  %v2510_v53 = vsel %vm883_vm7, %v2506_v22, %v9233_v51  ;;  %v2492_v49 = vsel %vm893_vm9, %v2488_v36, %v9116_v28  ;;  %v11482_v33 = vld [vmem:[#allocation18_spill] sm:$0xff] }
 0x2ef   : > { %v2499_v1 = vsel %vm868_vm4, %v8886_v47, %v9176_v20  ;;  %v2500_v25 = vsel %vm868_vm4, %v8889_v35, %v9178_v9  ;;  %v2514_v58 = vsel %vm888_vm8, %v2510_v53, %v2427_v54  ;;  %v2494_v34 = vsel %vm898_vm10, %v2490_v42, %v9132_v14  ;;  %v11484_v53 = vld [vmem:[#allocation19_spill] sm:$0xff] }
 0x2f0   : > { %3196 = vrot.lane.b32.xlu1 %v3008_v45, %s7640_s29  ;;  %3206 = vrot.lane.b32.xlu0 %v2711_v29, %s7641_s30  ;;  %v9284_v29 = vcombine.high %v3005_v3, %v11447_v30  ;;  %v2503_v6 = vsel %vm873_vm5, %v2499_v1, %v9196_v48  ;;  %v2504_v63 = vsel %vm873_vm5, %v2500_v25, %v9198_v2  ;;  %v11473_v2 = vld [vmem:[#allocation31_spill] sm:$0xff]  ;;  %v11485_v25 = vld [vmem:[#allocation14_spill] sm:$0xff] }
 0x2f1   : > { %v2501_v47 = vsel %vm868_vm4, %v8897_v56, %v9187_v39  ;;  %v2507_v35 = vsel %vm878_vm6, %v2503_v6, %v9220_v11  ;;  %v2508_v54 = vsel %vm878_vm6, %v2504_v63, %v9222_v57  ;;  %v2495_v56 = vsel %vm898_vm10, %v2491_v21, %v9148_v27  ;;  %v11483_v21 = vld [vmem:[#allocation15_spill] sm:$0xff]  ;;  %v11487_v63 = vld [vmem:[#allocation20_spill] sm:$0xff] }
 0x2f2   : > { %v9281_v31 = vpop.permute.xlu1 %2432  ;;  %v2443_v45 = vpop.permute.xlu0 %2442  ;;  %v2511_v20 = vsel %vm883_vm7, %v2507_v35, %v9240_v32  ;;  %v2512_v9 = vsel %vm883_vm7, %v2508_v54, %v9242_v55  ;;  %v2505_v11 = vsel %vm873_vm5, %v2501_v47, %v9208_v5  ;;  %v2489_v43 = vsel %vm888_vm8, %v2485_v37, %v11477_v13 }
 0x2f3   : > { %v2518_v28 = vsel %vm893_vm9, %v2514_v58, %v2443_v45  ;;  %v2515_v57 = vsel %vm888_vm8, %v2511_v20, %v9261_v41  ;;  %v2516_v39 = vsel %vm888_vm8, %v2512_v9, %v9263_v4  ;;  %v2509_v55 = vsel %vm878_vm6, %v2505_v11, %v11473_v2  ;;  %v11486_v58 = vld [vmem:[#allocation8_spill] sm:$0xff] }
 0x2f4   : > { %3208 = vrot.lane.b32.xlu1 %v2809_v16, %s7641_s30  ;;  %3210 = vrot.lane.b32.xlu0 %v2907_v62, %s7641_s30  ;;  %v2513_v41 = vsel %vm883_vm7, %v2509_v55, %v9251_v50  ;;  %v2493_v46 = vsel %vm893_vm9, %v2489_v43, %v11478_v52 }
 0x2f5   : > { %v2517_v50 = vsel %vm888_vm8, %v2513_v41, %v9281_v31  ;;  %v2497_v31 = vsel %vm898_vm10, %v2493_v46, %v11480_v17 }
 0x2f6   : > { %v2445_v23 = vpop.permute.xlu1 %2444  ;;  %v2447_v60 = vpop.permute.xlu0 %2446 }
 0x2f7   : > { %v2519_v32 = vsel %vm893_vm9, %v2515_v57, %v2445_v23  ;;  %v2520_v62 = vsel %vm893_vm9, %v2516_v39, %v2447_v60  ;;  %v11481_v60 = vld [vmem:[#allocation13_spill] sm:$0xff] }
 0x2f8   : > { %3212 = vrot.lane.b32.xlu1 %v3005_v3, %s7641_s30  ;;  %3222 = vrot.lane.b32.xlu0 %v2715_v12, %s7642_s2  ;;  %v11474_v3 = vld [vmem:[#allocation25_spill] sm:$0xff] }
 0x2fa   : > { %v2449_v51 = vpop.permute.xlu1 %2448  ;;  %v2459_v16 = vpop.permute.xlu0 %2458 }
 0x2fb   : > { %v2522_v14 = vsel %vm898_vm10, %v2518_v28, %v2459_v16  ;;  %v2521_v18 = vsel %vm893_vm9, %v2517_v50, %v2449_v51 }
 0x2fc   : > { %v2534_v48 = vcombine.low %v2494_v34, %v2522_v14  ;;  %3224 = vrot.lane.b32.xlu1 %v2813_v24, %s7642_s2  ;;  %3226 = vrot.lane.b32.xlu0 %v2911_v19, %s7642_s2  ;;  %v11475_v19 = vld [vmem:[#allocation27_spill] sm:$0xff] }
 0x2fd   : > { %v2496_v5 = vsel %vm898_vm10, %v2492_v49, %v11475_v19 }
 0x2fe   : > { %v2541_v12 = vrot.slane %v2534_v48, %v11474_v3  ;;  %v2461_v27 = vpop.permute.xlu1 %2460  ;;  %v2463_v24 = vpop.permute.xlu0 %2462 }
 0x2ff   : > { %v2523_v4 = vsel %vm898_vm10, %v2519_v32, %v2461_v27  ;;  %v2524_v8 = vsel %vm898_vm10, %v2520_v62, %v2463_v24 }
 0x300   : > { %v2548_v40 = vrot.slane %v2541_v12, %v11474_v3  ;;  %v2549_v10 = vcombine.low %v2495_v56, %v2523_v4  ;;  %v2564_v45 = vcombine.low %v2496_v5, %v2524_v8  ;;  %3228 = vrot.lane.b32.xlu1 %v9284_v29, %s7642_s2  ;;  %3390 = vrot.lane.b32.xlu0 %v11476_v61, %s7635_s24 }
 0x302   : > { %7441 = vst.msk [vmem:[%s8608_s6 + $0x2] ss:$8 sm:$0x3] %vm8582_vm11, %v2548_v40  ;;  %v2556_v29 = vrot.slane %v2549_v10, %v11474_v3  ;;  %v2571_v44 = vrot.slane %v2564_v45, %v11474_v3  ;;  %v2465_v38 = vpop.permute.xlu1 %2464  ;;  %v9402_v26 = vpop.permute.xlu0 %3014 }
 0x303   : > { %v2525_v15 = vsel %vm898_vm10, %v2521_v18, %v2465_v38 }
 0x304   : > { %v2563_v37 = vrot.slane %v2556_v29, %v11474_v3  ;;  %v2578_v7 = vrot.slane %v2571_v44, %v11474_v3  ;;  %v2579_v23 = vcombine.low %v2497_v31, %v2525_v15  ;;  %3392 = vrot.lane.b32.xlu1 %v11481_v60, %s7635_s24  ;;  %3394 = vrot.lane.b32.xlu0 %v11482_v33, %s7635_s24  ;;  %v11490_v33 = vld [vmem:[#allocation12_spill] sm:$0xff] }
 0x306   : > { %7442 = vst.msk [vmem:[%s8608_s6 + $0x22] ss:$8 sm:$0x3] %vm8582_vm11, %v2563_v37  ;;  %7443 = vst.msk [vmem:[%s8608_s6 + $0x42] ss:$8 sm:$0x3] %vm8582_vm11, %v2578_v7  ;;  %v2586_v0 = vrot.slane %v2579_v23, %v11474_v3  ;;  %v3017_v36 = vpop.permute.xlu1 %3016  ;;  %v3019_v22 = vpop.permute.xlu0 %3018 }
 0x307   : > { %v11488_v37 = vld [vmem:[#allocation22_spill] sm:$0xff]  ;;  %v11489_v23 = vld [vmem:[#allocation9_spill] sm:$0xff] }
 0x308   : > { %v2593_v42 = vrot.slane %v2586_v0, %v11474_v3  ;;  %3396 = vrot.lane.b32.xlu1 %v11483_v21, %s7635_s24  ;;  %3398 = vrot.lane.b32.xlu0 %v11484_v53, %s7635_s24  ;;  %v3234_v7 = vsel %vm868_vm4, %v11488_v37, %v9402_v26  ;;  %v3235_v60 = vsel %vm868_vm4, %v11489_v23, %v3017_v36  ;;  %v11492_v37 = vld [vmem:[#allocation16_spill] sm:$0xff] }
 0x309   : > { %v3236_v0 = vsel %vm868_vm4, %v11490_v33, %v3019_v22  ;;  %v11495_v33 = vld [vmem:[#allocation30_spill] sm:$0xff] }
 0x30a   : > { %7444 = vst.msk [vmem:[%s8608_s6 + $0x62] ss:$8 sm:$0x3] %vm8582_vm11, %v2593_v42  ;;  %v3021_v49 = vpop.permute.xlu1 %3020  ;;  %v3031_v1 = vpop.permute.xlu0 %3030  ;;  %v11491_v42 = vld [vmem:[#allocation10_spill] sm:$0xff] }
 0x30b   : > { %v3237_v53 = vsel %vm868_vm4, %v11491_v42, %v3021_v49 }
 0x30c   : > { %3400 = vrot.lane.b32.xlu1 %v11485_v25, %s7635_s24  ;;  %3402 = vrot.lane.b32.xlu0 %v11486_v58, %s7635_s24  ;;  %v3238_v25 = vsel %vm873_vm5, %v3234_v7, %v3031_v1 }
 0x30e   : > { %v3033_v34 = vpop.permute.xlu1 %3032  ;;  %v3035_v6 = vpop.permute.xlu0 %3034 }
 0x30f   : > { %v3239_v58 = vsel %vm873_vm5, %v3235_v60, %v3033_v34 }
 0x310   : > { %3404 = vrot.lane.b32.xlu1 %v11487_v63, %s7635_s24  ;;  %v3240_v63 = vsel %vm873_vm5, %v3236_v0, %v3035_v6 }
 0x312   : > { %v3037_v28 = vpop.permute.xlu1 %3036  ;;  %v3047_v51 = vpop.permute.xlu0 %3046 }
 0x313   : > { %v3241_v21 = vsel %vm873_vm5, %v3237_v53, %v3037_v28  ;;  %v3242_v30 = vsel %vm878_vm6, %v3238_v25, %v3047_v51 }
 0x316   : > { %v3049_v16 = vpop.permute.xlu1 %3048  ;;  %v3051_v47 = vpop.permute.xlu0 %3050 }
 0x317   : > { %v3243_v26 = vsel %vm878_vm6, %v3239_v58, %v3049_v16  ;;  %v3244_v22 = vsel %vm878_vm6, %v3240_v63, %v3051_v47 }
 0x31a   : > { %v3053_v35 = vpop.permute.xlu1 %3052  ;;  %v3063_v54 = vpop.permute.xlu0 %3062 }
 0x31b   : > { %v3245_v23 = vsel %vm878_vm6, %v3241_v21, %v3053_v35  ;;  %v3246_v49 = vsel %vm883_vm7, %v3242_v30, %v3063_v54  ;;  %v11493_v35 = vld [vmem:[#allocation28_spill] sm:$0xff] }
 0x31e   : > { %v3065_v14 = vpop.permute.xlu1 %3064  ;;  %v3067_v20 = vpop.permute.xlu0 %3066 }
 0x31f   : > { %v3247_v6 = vsel %vm883_vm7, %v3243_v26, %v3065_v14  ;;  %v3248_v28 = vsel %vm883_vm7, %v3244_v22, %v3067_v20  ;;  %v11494_v14 = vld [vmem:[#allocation26_spill] sm:$0xff] }
 0x322   : > { %v3069_v9 = vpop.permute.xlu1 %3068  ;;  %v3079_v48 = vpop.permute.xlu0 %3078 }
 0x323   : > { %v3249_v51 = vsel %vm883_vm7, %v3245_v23, %v3069_v9 }
 0x326   : > { %v3081_v56 = vpop.permute.xlu1 %3080  ;;  %v3083_v11 = vpop.permute.xlu0 %3082 }
 0x327   : > { %v3251_v63 = vsel %vm888_vm8, %v3247_v6, %v3081_v56  ;;  %v3252_v21 = vsel %vm888_vm8, %v3248_v28, %v3083_v11  ;;  %v11497_v28 = vld [vmem:[#allocation7_spill] sm:$0xff] }
 0x32a   : > { %v9434_v57 = vpop.permute.xlu1 %3084  ;;  %v3095_v39 = vpop.permute.xlu0 %3094 }
 0x32e   : > { %v3097_v2 = vpop.permute.xlu1 %3096  ;;  %v9436_v55 = vpop.permute.xlu0 %3098 }
 0x332   : > { %v9438_v32 = vpop.permute.xlu1 %3100  ;;  %v3111_v62 = vpop.permute.xlu0 %3110 }
 0x336   : > { %v9440_v12 = vpop.permute.xlu1 %3112  ;;  %v9442_v27 = vpop.permute.xlu0 %3114 }
 0x33a   : > { %v9444_v24 = vpop.permute.xlu1 %3116  ;;  %v3127_v19 = vpop.permute.xlu0 %3126 }
 0x33b   : > { %v3262_v36 = vsel %vm868_vm4, %v11492_v37, %v3127_v19  ;;  %v3250_v19 = vsel %vm888_vm8, %v3246_v49, %v3079_v48  ;;  %v3253_v37 = vsel %vm888_vm8, %v3249_v51, %v9434_v57 }
 0x33c   : > { %v3254_v47 = vsel %vm893_vm9, %v3250_v19, %v3095_v39 }
 0x33d   : > { %v3258_v39 = vsel %vm898_vm10, %v3254_v47, %v3111_v62 }
 0x33e   : > { %v3129_v5 = vpop.permute.xlu1 %3128  ;;  %v3131_v41 = vpop.permute.xlu0 %3130 }
 0x33f   : > { %v3263_v54 = vsel %vm868_vm4, %v11493_v35, %v3129_v5  ;;  %v3264_v20 = vsel %vm868_vm4, %v11494_v14, %v3131_v41 }
 0x342   : > { %v9446_v4 = vpop.permute.xlu1 %3132  ;;  %v3143_v8 = vpop.permute.xlu0 %3142 }
 0x343   : > { %v3266_v1 = vsel %vm873_vm5, %v3262_v36, %v3143_v8  ;;  %v3255_v8 = vsel %vm893_vm9, %v3251_v63, %v3097_v2  ;;  %v3265_v62 = vsel %vm868_vm4, %v11495_v33, %v9446_v4 }
 0x346   : > { %v3145_v40 = vpop.permute.xlu1 %3144  ;;  %v3147_v10 = vpop.permute.xlu0 %3146 }
 0x347   : > { %v3267_v48 = vsel %vm873_vm5, %v3263_v54, %v3145_v40  ;;  %v3268_v56 = vsel %vm873_vm5, %v3264_v20, %v3147_v10 }
 0x34a   : > { %v3149_v45 = vpop.permute.xlu1 %3148  ;;  %v3159_v61 = vpop.permute.xlu0 %3158 }
 0x34b   : > { %v3270_v16 = vsel %vm878_vm6, %v3266_v1, %v3159_v61  ;;  %v3269_v0 = vsel %vm873_vm5, %v3265_v62, %v3149_v45  ;;  %v11496_v1 = vld [vmem:[#allocation6_spill] sm:$0xff] }
 0x34e   : > { %v3161_v13 = vpop.permute.xlu1 %3160  ;;  %v3163_v43 = vpop.permute.xlu0 %3162 }
 0x34f   : > { %v3271_v60 = vsel %vm878_vm6, %v3267_v48, %v3161_v13  ;;  %v3272_v5 = vsel %vm878_vm6, %v3268_v56, %v3163_v43 }
 0x352   : > { %v9448_v50 = vpop.permute.xlu1 %3164  ;;  %v3175_v52 = vpop.permute.xlu0 %3174 }
 0x353   : > { %v3274_v30 = vsel %vm883_vm7, %v3270_v16, %v3175_v52  ;;  %v3273_v4 = vsel %vm878_vm6, %v3269_v0, %v9448_v50  ;;  %v3257_v50 = vsel %vm893_vm9, %v3253_v37, %v9438_v32 }
 0x354   : > { %v3261_v49 = vsel %vm898_vm10, %v3257_v50, %v9444_v24 }
 0x356   : > { %v3177_v46 = vpop.permute.xlu1 %3176  ;;  %v3179_v18 = vpop.permute.xlu0 %3178 }
 0x357   : > { %v3275_v2 = vsel %vm883_vm7, %v3271_v60, %v3177_v46  ;;  %v3276_v40 = vsel %vm883_vm7, %v3272_v5, %v3179_v18 }
 0x35a   : > { %v9450_v29 = vpop.permute.xlu1 %3180  ;;  %v3191_v44 = vpop.permute.xlu0 %3190 }
 0x35b   : > { %v3278_v9 = vsel %vm888_vm8, %v3274_v30, %v3191_v44  ;;  %v3256_v44 = vsel %vm893_vm9, %v3252_v21, %v9436_v55  ;;  %v3277_v45 = vsel %vm883_vm7, %v3273_v4, %v9450_v29  ;;  %v11498_v21 = vmov 0.0  }
 0x35e   : > { %v3193_v38 = vpop.permute.xlu1 %3192  ;;  %v3195_v17 = vpop.permute.xlu0 %3194 }
 0x35f   : > { %v3279_v13 = vsel %vm888_vm8, %v3275_v2, %v3193_v38  ;;  %v3280_v43 = vsel %vm888_vm8, %v3276_v40, %v3195_v17 }
 0x362   : > { %v9452_v31 = vpop.permute.xlu1 %3196  ;;  %v3207_v15 = vpop.permute.xlu0 %3206 }
 0x363   : > { %v3282_v11 = vsel %vm893_vm9, %v3278_v9, %v3207_v15  ;;  %v3259_v15 = vsel %vm898_vm10, %v3255_v8, %v9440_v12  ;;  %v3260_v12 = vsel %vm898_vm10, %v3256_v44, %v9442_v27  ;;  %v3281_v27 = vsel %vm888_vm8, %v3277_v45, %v9452_v31 }
 0x366   : > { %v3209_v34 = vpop.permute.xlu1 %3208  ;;  %v3211_v7 = vpop.permute.xlu0 %3210 }
 0x367   : > { %v3283_v55 = vsel %vm893_vm9, %v3279_v13, %v3209_v34  ;;  %v3284_v46 = vsel %vm893_vm9, %v3280_v43, %v3211_v7 }
 0x36a   : > { %v3213_v61 = vpop.permute.xlu1 %3212  ;;  %v3223_v52 = vpop.permute.xlu0 %3222 }
 0x36b   : > { %v3286_v41 = vsel %vm898_vm10, %v3282_v11, %v3223_v52  ;;  %v3285_v36 = vsel %vm893_vm9, %v3281_v27, %v3213_v61 }
 0x36c   : > { %v3298_v10 = vcombine.low %v3258_v39, %v3286_v41 }
 0x36e   : > { %v3305_v18 = vrot.slane %v3298_v10, %v11474_v3  ;;  %v3225_v42 = vpop.permute.xlu1 %3224  ;;  %v3227_v53 = vpop.permute.xlu0 %3226 }
 0x36f   : > { %v3287_v38 = vsel %vm898_vm10, %v3283_v55, %v3225_v42  ;;  %v3288_v17 = vsel %vm898_vm10, %v3284_v46, %v3227_v53 }
 0x370   : > { %v3312_v25 = vrot.slane %v3305_v18, %v11474_v3  ;;  %v3313_v58 = vcombine.low %v3259_v15, %v3287_v38  ;;  %v3328_v26 = vcombine.low %v3260_v12, %v3288_v17 }
 0x372   : > { %7445 = vst.msk [vmem:[%s8608_s6 + $0x3] ss:$8 sm:$0x3] %vm8582_vm11, %v3312_v25  ;;  %v3320_v29 = vrot.slane %v3313_v58, %v11474_v3  ;;  %v3335_v22 = vrot.slane %v3328_v26, %v11474_v3  ;;  %v3229_v23 = vpop.permute.xlu1 %3228  ;;  %v3391_v57 = vpop.permute.xlu0 %3390 }
 0x373   : > { %v3289_v31 = vsel %vm898_vm10, %v3285_v36, %v3229_v23  ;;  %v3421_v34 = vrot.slane %v3391_v57, %v11496_v1  ;;  %v3414_v2 = vcombine.high %v3391_v57, %v11498_v21 }
 0x374   : > { %v3327_v32 = vrot.slane %v3320_v29, %v11474_v3  ;;  %v3342_v7 = vrot.slane %v3335_v22, %v11474_v3  ;;  %v3343_v6 = vcombine.low %v3261_v49, %v3289_v31 }
 0x375   : > { %v9540_v51 = vrot.slane %v3421_v34, %v11497_v28  ;;  %v3429_v8 = vcombine.high %v3421_v34, %v11498_v21  ;;  %v3428_v33 = vrot.slane %v3414_v2, %v11496_v1 }
 0x376   : > { %7446 = vst.msk [vmem:[%s8608_s6 + $0x23] ss:$8 sm:$0x3] %vm8582_vm11, %v3327_v32  ;;  %7447 = vst.msk [vmem:[%s8608_s6 + $0x43] ss:$8 sm:$0x3] %vm8582_vm11, %v3342_v7  ;;  %v3350_v24 = vrot.slane %v3343_v6, %v11474_v3  ;;  %v3395_v16 = vpop.permute.xlu0 %3394  ;;  %v3393_v45 = vpop.permute.xlu1 %3392 }
 0x377   : > { %v3519_v63 = vrot.slane %v3395_v16, %v11496_v1  ;;  %v3459_v30 = vcombine.high %v9540_v51, %v11498_v21  ;;  %v3443_v39 = vrot.slane %v3429_v8, %v11497_v28  ;;  %v3512_v15 = vcombine.high %v3395_v16, %v11498_v21 }
 0x378   : > { %v3357_v19 = vrot.slane %v3350_v24, %v11474_v3  ;;  %v3451_v18 = vrot.slane %v3428_v33, %v11497_v28  ;;  %v3444_v25 = vcombine.high %v3428_v33, %v11498_v21  ;;  %v3470_v31 = vrot.slane %v3393_v45, %v11496_v1 }
 0x379   : > { %v9557_v47 = vrot.slane %v3519_v63, %v11497_v28  ;;  %3810 = vrot.lane.b32.xlu0 %v3459_v30, %s7636_s25  ;;  %v3527_v61 = vcombine.high %v3519_v63, %v11498_v21  ;;  %v3460_v40 = vcombine.high %v3443_v39, %v11498_v21  ;;  %v3526_v0 = vrot.slane %v3512_v15, %v11496_v1 }
 0x37a   : > { %7448 = vst.msk [vmem:[%s8608_s6 + $0x63] ss:$8 sm:$0x3] %vm8582_vm11, %v3357_v19  ;;  %v3399_v35 = vpop.permute.xlu0 %3398  ;;  %v3461_v38 = vcombine.high %v3451_v18, %v11498_v21  ;;  %v3458_v50 = vrot.slane %v3444_v25, %v11497_v28  ;;  %v3397_v29 = vpop.permute.xlu1 %3396  ;;  %v9638_v6 = vrot.slane %v3470_v31, %v11497_v28  ;;  %v3478_v8 = vcombine.high %v3470_v31, %v11498_v21 }
 0x37b   : > { %v3617_v54 = vrot.slane %v3399_v35, %v11496_v1  ;;  %v3557_v14 = vcombine.high %v9557_v47, %v11498_v21  ;;  %v3541_v44 = vrot.slane %v3527_v61, %v11497_v28  ;;  %v3610_v62 = vcombine.high %v3399_v35, %v11498_v21 }
 0x37c   : > { %v3549_v4 = vrot.slane %v3526_v0, %v11497_v28  ;;  %v3542_v37 = vcombine.high %v3526_v0, %v11498_v21  ;;  %v3462_v34 = vcombine.high %v3458_v50, %v11498_v21  ;;  %v3568_v7 = vrot.slane %v3397_v29, %v11496_v1 }
 0x37d   : > { %v9564_v20 = vrot.slane %v3617_v54, %v11497_v28  ;;  %3812 = vrot.lane.b32.xlu1 %v3557_v14, %s7636_s25  ;;  %v3625_v52 = vcombine.high %v3617_v54, %v11498_v21  ;;  %v3558_v43 = vcombine.high %v3541_v44, %v11498_v21  ;;  %v3624_v55 = vrot.slane %v3610_v62, %v11496_v1 }
 0x37e   : > { %v3403_v9 = vpop.permute.xlu0 %3402  ;;  %v3559_v26 = vcombine.high %v3549_v4, %v11498_v21  ;;  %v3556_v57 = vrot.slane %v3542_v37, %v11497_v28  ;;  %v3401_v49 = vpop.permute.xlu1 %3400  ;;  %v9646_v30 = vrot.slane %v3568_v7, %v11497_v28  ;;  %v3508_v14 = vcombine.high %v9638_v6, %v11498_v21 }
 0x37f   : > { %v3715_v48 = vrot.slane %v3403_v9, %v11496_v1  ;;  %v3655_v56 = vcombine.high %v9564_v20, %v11498_v21  ;;  %v3639_v41 = vrot.slane %v3625_v52, %v11497_v28  ;;  %v3708_v46 = vcombine.high %v3403_v9, %v11498_v21 }
 0x380   : > { %v3647_v12 = vrot.slane %v3624_v55, %v11497_v28  ;;  %v3640_v27 = vcombine.high %v3624_v55, %v11498_v21  ;;  %v3666_v24 = vrot.slane %v3401_v49, %v11496_v1  ;;  %v3560_v19 = vcombine.high %v3556_v57, %v11498_v21 }
 0x381   : > { %v9572_v11 = vrot.slane %v3715_v48, %v11497_v28  ;;  %3814 = vrot.lane.b32.xlu0 %v3655_v56, %s7636_s25  ;;  %v3723_v5 = vcombine.high %v3715_v48, %v11498_v21  ;;  %v3656_v13 = vcombine.high %v3639_v41, %v11498_v21  ;;  %v3722_v53 = vrot.slane %v3708_v46, %v11496_v1 }
 0x382   : > { %v3657_v58 = vcombine.high %v3647_v12, %v11498_v21  ;;  %v3654_v23 = vrot.slane %v3640_v27, %v11497_v28  ;;  %v3405_v63 = vpop.permute.xlu1 %3404  ;;  %v9649_v35 = vrot.slane %v3666_v24, %v11497_v28  ;;  %v3606_v61 = vcombine.high %v9646_v30, %v11498_v21 }
 0x383   : > { %v3753_v60 = vcombine.high %v9572_v11, %v11498_v21  ;;  %v3737_v10 = vrot.slane %v3723_v5, %v11497_v28  ;;  %v3745_v17 = vrot.slane %v3722_v53, %v11497_v28  ;;  %v3738_v22 = vcombine.high %v3722_v53, %v11498_v21 }
 0x384   : > { %v3658_v16 = vcombine.high %v3654_v23, %v11498_v21  ;;  %v3764_v54 = vrot.slane %v3405_v63, %v11496_v1  ;;  %v3704_v56 = vcombine.high %v9649_v35, %v11498_v21  ;;  %v3576_v52 = vcombine.high %v3568_v7, %v11498_v21  ;;  %v4170_v7 = vld [vmem:[#allocation2 + $0x1] sm:$0xff] }
 0x385   : > { %3826 = vrot.lane.b32.xlu0 %v3443_v39, %s7637_s26  ;;  %3816 = vrot.lane.b32.xlu1 %v3753_v60, %s7636_s25  ;;  %v3754_v42 = vcombine.high %v3737_v10, %v11498_v21  ;;  %v3755_v36 = vcombine.high %v3745_v17, %v11498_v21  ;;  %v3752_v32 = vrot.slane %v3738_v22, %v11497_v28 }
 0x386   : > { %v9659_v48 = vrot.slane %v3764_v54, %v11497_v28  ;;  %v3674_v39 = vcombine.high %v3666_v24, %v11498_v21  ;;  %v3492_v60 = vrot.slane %v3478_v8, %v11497_v28  ;;  %v3590_v2 = vrot.slane %v3576_v52, %v11497_v28  ;;  %v7545_v52 = vld [vmem:[#allocation2 + $0x39] sm:$0xff] }
 0x387   : > { %v3756_v9 = vcombine.high %v3752_v32, %v11498_v21  ;;  %v3561_v33 = vcombine.high %v3397_v29, %v11498_v21 }
 0x388   : > { %v3802_v5 = vcombine.high %v9659_v48, %v11498_v21  ;;  %v3607_v0 = vcombine.high %v3590_v2, %v11498_v21 }
 0x389   : > { %3830 = vrot.lane.b32.xlu0 %v3639_v41, %s7637_s26  ;;  %3828 = vrot.lane.b32.xlu1 %v3541_v44, %s7637_s26  ;;  %v3772_v41 = vcombine.high %v3764_v54, %v11498_v21  ;;  %v3688_v44 = vrot.slane %v3674_v39, %v11497_v28  ;;  %v3575_v55 = vrot.slane %v3561_v33, %v11496_v1 }
 0x38b   : > { %v3786_v15 = vrot.slane %v3772_v41, %v11497_v28  ;;  %v3591_v37 = vcombine.high %v3575_v55, %v11498_v21 }
 0x38d   : > { %3842 = vrot.lane.b32.xlu0 %v3460_v40, %s7639_s28  ;;  %3832 = vrot.lane.b32.xlu1 %v3737_v10, %s7637_s26  ;;  %v3463_v40 = vcombine.high %v3393_v45, %v11498_v21  ;;  %v3509_v10 = vcombine.high %v3492_v60, %v11498_v21  ;;  %v3803_v53 = vcombine.high %v3786_v15, %v11498_v21 }
 0x38f   : > { %v3477_v62 = vrot.slane %v3463_v40, %v11496_v1 }
 0x391   : > { %3846 = vrot.lane.b32.xlu0 %v3656_v13, %s7639_s28  ;;  %3844 = vrot.lane.b32.xlu1 %v3558_v43, %s7639_s28  ;;  %v3659_v13 = vcombine.high %v3401_v49, %v11498_v21  ;;  %v3705_v43 = vcombine.high %v3688_v44, %v11498_v21  ;;  %v3493_v25 = vcombine.high %v3477_v62, %v11498_v21 }
 0x393   : > { %v3673_v46 = vrot.slane %v3659_v13, %v11496_v1 }
 0x395   : > { %3858 = vrot.lane.b32.xlu0 %v3451_v18, %s7638_s27  ;;  %3848 = vrot.lane.b32.xlu1 %v3754_v42, %s7639_s28  ;;  %v3757_v18 = vcombine.high %v3405_v63, %v11498_v21  ;;  %v3500_v42 = vrot.slane %v3477_v62, %v11497_v28  ;;  %v3689_v27 = vcombine.high %v3673_v46, %v11498_v21 }
 0x397   : > { %v3703_v22 = vrot.slane %v3689_v27, %v11497_v28 }
 0x399   : > { %3862 = vrot.lane.b32.xlu0 %v3647_v12, %s7638_s27  ;;  %3860 = vrot.lane.b32.xlu1 %v3549_v4, %s7638_s27  ;;  %v3771_v12 = vrot.slane %v3757_v18, %v11496_v1  ;;  %v3696_v4 = vrot.slane %v3673_v46, %v11497_v28  ;;  %v3707_v31 = vcombine.high %v3703_v22, %v11498_v21 }
 0x39b   : > { %v3794_v45 = vrot.slane %v3771_v12, %v11497_v28  ;;  %v3787_v29 = vcombine.high %v3771_v12, %v11498_v21 }
 0x39d   : > { %3874 = vrot.lane.b32.xlu0 %v3461_v38, %s7640_s29  ;;  %3864 = vrot.lane.b32.xlu1 %v3745_v17, %s7638_s27  ;;  %v3598_v38 = vrot.slane %v3575_v55, %v11497_v28  ;;  %v3510_v17 = vcombine.high %v3500_v42, %v11498_v21  ;;  %v3801_v49 = vrot.slane %v3787_v29, %v11497_v28 }
 0x3a1   : > { %3878 = vrot.lane.b32.xlu0 %v3657_v58, %s7640_s29  ;;  %3876 = vrot.lane.b32.xlu1 %v3559_v26, %s7640_s29  ;;  %v3706_v58 = vcombine.high %v3696_v4, %v11498_v21  ;;  %v3608_v26 = vcombine.high %v3598_v38, %v11498_v21 }
 0x3a5   : > { %3890 = vrot.lane.b32.xlu0 %v3458_v50, %s7641_s30  ;;  %3880 = vrot.lane.b32.xlu1 %v3755_v36, %s7640_s29  ;;  %v3507_v50 = vrot.slane %v3493_v25, %v11497_v28  ;;  %v3804_v36 = vcombine.high %v3794_v45, %v11498_v21 }
 0x3a9   : > { %3894 = vrot.lane.b32.xlu0 %v3654_v23, %s7641_s30  ;;  %3892 = vrot.lane.b32.xlu1 %v3556_v57, %s7641_s30  ;;  %v3605_v23 = vrot.slane %v3591_v37, %v11497_v28  ;;  %v3511_v57 = vcombine.high %v3507_v50, %v11498_v21 }
 0x3ad   : > { %3906 = vrot.lane.b32.xlu0 %v3462_v34, %s7642_s2  ;;  %3896 = vrot.lane.b32.xlu1 %v3752_v32, %s7641_s30  ;;  %v3609_v34 = vcombine.high %v3605_v23, %v11498_v21  ;;  %v3805_v32 = vcombine.high %v3801_v49, %v11498_v21 }
 0x3b1   : > { %3910 = vrot.lane.b32.xlu0 %v3658_v16, %s7642_s2  ;;  %3908 = vrot.lane.b32.xlu1 %v3560_v19, %s7642_s2  ;;  %v4172_v16 = vld [vmem:[#allocation2 + $0x19] sm:$0xff]  ;;  %v7544_v19 = vld [vmem:[#allocation2 + $0x9] sm:$0xff] }
 0x3b5   : > { %3922 = vrot.lane.b32.xlu0 %v3508_v14, %s7636_s25  ;;  %3912 = vrot.lane.b32.xlu1 %v3756_v9, %s7642_s2  ;;  %v4174_v14 = vld [vmem:[#allocation2 + $0x31] sm:$0xff]  ;;  %v11499_v9 = vld [vmem:[#allocation15_spill] sm:$0xff] }
 0x3b9   : > { %3926 = vrot.lane.b32.xlu0 %v3704_v56, %s7636_s25  ;;  %3924 = vrot.lane.b32.xlu1 %v3606_v61, %s7636_s25  ;;  %v4176_v61 = vld [vmem:[#allocation2 + $0x49] sm:$0xff] }
 0x3bd   : > { %3938 = vrot.lane.b32.xlu0 %v3492_v60, %s7637_s26  ;;  %3928 = vrot.lane.b32.xlu1 %v3802_v5, %s7636_s25  ;;  %v11500_v5 = vld [vmem:[#allocation20_spill] sm:$0xff] }
 0x3c1   : > { %3942 = vrot.lane.b32.xlu0 %v3688_v44, %s7637_s26  ;;  %3940 = vrot.lane.b32.xlu1 %v3590_v2, %s7637_s26 }
 0x3c5   : > { %3954 = vrot.lane.b32.xlu0 %v3509_v10, %s7639_s28  ;;  %3944 = vrot.lane.b32.xlu1 %v3786_v15, %s7637_s26 }
 0x3c9   : > { %3958 = vrot.lane.b32.xlu0 %v3705_v43, %s7639_s28  ;;  %3956 = vrot.lane.b32.xlu1 %v3607_v0, %s7639_s28 }
 0x3cd   : > { %3970 = vrot.lane.b32.xlu0 %v3500_v42, %s7638_s27  ;;  %3960 = vrot.lane.b32.xlu1 %v3803_v53, %s7639_s28 }
 0x3d1   : > { %3974 = vrot.lane.b32.xlu0 %v3696_v4, %s7638_s27  ;;  %3972 = vrot.lane.b32.xlu1 %v3598_v38, %s7638_s27 }
 0x3d5   : > { %3986 = vrot.lane.b32.xlu0 %v3510_v17, %s7640_s29  ;;  %3976 = vrot.lane.b32.xlu1 %v3794_v45, %s7638_s27 }
 0x3d9   : > { %3990 = vrot.lane.b32.xlu0 %v3706_v58, %s7640_s29  ;;  %3988 = vrot.lane.b32.xlu1 %v3608_v26, %s7640_s29 }
 0x3dd   : > { %4002 = vrot.lane.b32.xlu0 %v3507_v50, %s7641_s30  ;;  %3992 = vrot.lane.b32.xlu1 %v3804_v36, %s7640_s29 }
 0x3e1   : > { %4006 = vrot.lane.b32.xlu0 %v3703_v22, %s7641_s30  ;;  %4004 = vrot.lane.b32.xlu1 %v3605_v23, %s7641_s30 }
 0x3e5   : > { %4018 = vrot.lane.b32.xlu0 %v3511_v57, %s7642_s2  ;;  %4008 = vrot.lane.b32.xlu1 %v3801_v49, %s7641_s30 }
 0x3e9   : > { %4022 = vrot.lane.b32.xlu0 %v3707_v31, %s7642_s2  ;;  %4020 = vrot.lane.b32.xlu1 %v3609_v34, %s7642_s2 }
 0x3eb   : > { %v3811_v24 = vpop.permute.xlu0 %3810 }
 0x3ed   : > { %4186 = vrot.lane.b32.xlu0 %v4170_v7, %s7643_s3  ;;  %4024 = vrot.lane.b32.xlu1 %v3805_v32, %s7642_s2 }
 0x3ef   : > { %v3813_v63 = vpop.permute.xlu1 %3812 }
 0x3f1   : > { %4190 = vrot.lane.b32.xlu0 %v4172_v16, %s7643_s3  ;;  %4188 = vrot.lane.b32.xlu1 %v7544_v19, %s7643_s3 }
 0x3f3   : > { %v3815_v54 = vpop.permute.xlu0 %3814 }
 0x3f4   : > { %v4032_v21 = vsel %vm868_vm4, %v9564_v20, %v3815_v54 }
 0x3f5   : > { %4194 = vrot.lane.b32.xlu0 %v4174_v14, %s7643_s3  ;;  %4192 = vrot.lane.b32.xlu1 %v11499_v9, %s7643_s3 }
 0x3f7   : > { %v3817_v8 = vpop.permute.xlu1 %3816  ;;  %v3827_v56 = vpop.permute.xlu0 %3826 }
 0x3f8   : > { %v4033_v28 = vsel %vm868_vm4, %v9572_v11, %v3817_v8 }
 0x3f9   : > { %4198 = vrot.lane.b32.xlu0 %v4176_v61, %s7643_s3  ;;  %4196 = vrot.lane.b32.xlu1 %v7545_v52, %s7643_s3  ;;  %v4030_v52 = vsel %vm868_vm4, %v9540_v51, %v3811_v24 }
 0x3fa   : > { %v4034_v1 = vsel %vm873_vm5, %v4030_v52, %v3827_v56 }
 0x3fb   : > { %v3829_v39 = vpop.permute.xlu1 %3828  ;;  %v3831_v60 = vpop.permute.xlu0 %3830 }
 0x3fc   : > { %v4036_v59 = vsel %vm873_vm5, %v4032_v21, %v3831_v60 }
 0x3fd   : > { %4200 = vrot.lane.b32.xlu1 %v11500_v5, %s7643_s3  ;;  %v4031_v5 = vsel %vm868_vm4, %v9557_v47, %v3813_v63 }
 0x3ff   : > { %v3833_v41 = vpop.permute.xlu1 %3832  ;;  %v3843_v44 = vpop.permute.xlu0 %3842 }
 0x403   : > { %v3845_v2 = vpop.permute.xlu1 %3844  ;;  %v3847_v40 = vpop.permute.xlu0 %3846 }
 0x404   : > { %v4040_v20 = vsel %vm878_vm6, %v4036_v59, %v3847_v40 }
 0x407   : > { %v3849_v10 = vpop.permute.xlu1 %3848  ;;  %v3859_v15 = vpop.permute.xlu0 %3858 }
 0x40b   : > { %v3861_v33 = vpop.permute.xlu1 %3860  ;;  %v3863_v62 = vpop.permute.xlu0 %3862 }
 0x40f   : > { %v3865_v13 = vpop.permute.xlu1 %3864  ;;  %v3875_v43 = vpop.permute.xlu0 %3874 }
 0x413   : > { %v3877_v0 = vpop.permute.xlu1 %3876  ;;  %v3879_v55 = vpop.permute.xlu0 %3878 }
 0x417   : > { %v9743_v46 = vpop.permute.xlu1 %3880  ;;  %v3891_v18 = vpop.permute.xlu0 %3890 }
 0x41b   : > { %v3893_v42 = vpop.permute.xlu1 %3892  ;;  %v9745_v53 = vpop.permute.xlu0 %3894 }
 0x41f   : > { %v9747_v12 = vpop.permute.xlu1 %3896  ;;  %v3907_v4 = vpop.permute.xlu0 %3906 }
 0x420   : > { %11501 = vst [vmem:[#allocation21_spill] sm:$0xff] %v9747_v12  ;;  %v4037_v12 = vsel %vm873_vm5, %v4033_v28, %v3833_v41  ;;  %v4044_v28 = vsel %vm883_vm7, %v4040_v20, %v3863_v62 }
 0x421   : > { %v4041_v24 = vsel %vm878_vm6, %v4037_v12, %v3849_v10 }
 0x423   : > { %v9749_v38 = vpop.permute.xlu1 %3908  ;;  %v9751_v17 = vpop.permute.xlu0 %3910 }
 0x427   : > { %v9753_v45 = vpop.permute.xlu1 %3912  ;;  %v3923_v25 = vpop.permute.xlu0 %3922 }
 0x428   : > { %11502 = vst [vmem:[#allocation31_spill] sm:$0xff] %v9753_v45  ;;  %v4035_v45 = vsel %vm873_vm5, %v4031_v5, %v3829_v39  ;;  %v4058_v47 = vsel %vm868_vm4, %v9638_v6, %v3923_v25  ;;  %v4048_v39 = vsel %vm888_vm8, %v4044_v28, %v3879_v55 }
 0x429   : > { %v4039_v51 = vsel %vm878_vm6, %v4035_v45, %v3845_v2 }
 0x42a   : > { %v4043_v21 = vsel %vm883_vm7, %v4039_v51, %v3861_v33 }
 0x42b   : > { %v3925_v58 = vpop.permute.xlu1 %3924  ;;  %v3927_v26 = vpop.permute.xlu0 %3926  ;;  %v4047_v59 = vsel %vm888_vm8, %v4043_v21, %v3877_v0  ;;  %v11509_v21 = vld [vmem:[#allocation7_spill] sm:$0xff] }
 0x42c   : > { %v4060_v2 = vsel %vm868_vm4, %v9649_v35, %v3927_v26  ;;  %v4051_v10 = vsel %vm893_vm9, %v4047_v59, %v3893_v42 }
 0x42d   : > { %v4055_v25 = vsel %vm898_vm10, %v4051_v10, %v9749_v38 }
 0x42f   : > { %v9755_v37 = vpop.permute.xlu1 %3928  ;;  %v3939_v27 = vpop.permute.xlu0 %3938  ;;  %v11507_v51 = vld [vmem:[#allocation31_spill] sm:$0xff] }
 0x430   : > { %v4062_v63 = vsel %vm873_vm5, %v4058_v47, %v3939_v27 }
 0x433   : > { %v3941_v50 = vpop.permute.xlu1 %3940  ;;  %v3943_v36 = vpop.permute.xlu0 %3942 }
 0x434   : > { %v4064_v33 = vsel %vm873_vm5, %v4060_v2, %v3943_v36 }
 0x437   : > { %v3945_v29 = vpop.permute.xlu1 %3944  ;;  %v3955_v22 = vpop.permute.xlu0 %3954 }
 0x438   : > { %v4066_v56 = vsel %vm878_vm6, %v4062_v63, %v3955_v22 }
 0x43b   : > { %v3957_v23 = vpop.permute.xlu1 %3956  ;;  %v3959_v57 = vpop.permute.xlu0 %3958 }
 0x43f   : > { %v9757_v49 = vpop.permute.xlu1 %3960  ;;  %v3971_v31 = vpop.permute.xlu0 %3970 }
 0x440   : > { %v4070_v60 = vsel %vm883_vm7, %v4066_v56, %v3971_v31 }
 0x443   : > { %v3973_v34 = vpop.permute.xlu1 %3972  ;;  %v3975_v32 = vpop.permute.xlu0 %3974 }
 0x447   : > { %v9759_v7 = vpop.permute.xlu1 %3976  ;;  %v3987_v16 = vpop.permute.xlu0 %3986 }
 0x448   : > { %v4074_v40 = vsel %vm888_vm8, %v4070_v60, %v3987_v16 }
 0x44b   : > { %v3989_v19 = vpop.permute.xlu1 %3988  ;;  %v3991_v14 = vpop.permute.xlu0 %3990 }
 0x44f   : > { %v9761_v9 = vpop.permute.xlu1 %3992  ;;  %v4003_v61 = vpop.permute.xlu0 %4002 }
 0x450   : > { %11503 = vst [vmem:[#allocation27_spill] sm:$0xff] %v9761_v9  ;;  %v4038_v9 = vsel %vm878_vm6, %v4034_v1, %v3843_v44  ;;  %v4045_v1 = vsel %vm883_vm7, %v4041_v24, %v3865_v13  ;;  %v4059_v44 = vsel %vm868_vm4, %v9646_v30, %v3925_v58  ;;  %v4078_v62 = vsel %vm893_vm9, %v4074_v40, %v4003_v61  ;;  %v11508_v24 = vld [vmem:[#allocation6_spill] sm:$0xff] }
 0x451   : > { %v4042_v11 = vsel %vm883_vm7, %v4038_v9, %v3859_v15  ;;  %v4063_v15 = vsel %vm873_vm5, %v4059_v44, %v3941_v50  ;;  %v4068_v30 = vsel %vm878_vm6, %v4064_v33, %v3959_v57  ;;  %v4049_v16 = vsel %vm888_vm8, %v4045_v1, %v9743_v46 }
 0x452   : > { %v4046_v6 = vsel %vm888_vm8, %v4042_v11, %v3875_v43  ;;  %v4067_v55 = vsel %vm878_vm6, %v4063_v15, %v3957_v23  ;;  %v4072_v12 = vsel %vm883_vm7, %v4068_v30, %v3975_v32 }
 0x453   : > { %v4005_v54 = vpop.permute.xlu1 %4004  ;;  %v4007_v8 = vpop.permute.xlu0 %4006  ;;  %v4050_v41 = vsel %vm893_vm9, %v4046_v6, %v3891_v18  ;;  %v4052_v18 = vsel %vm893_vm9, %v4048_v39, %v9745_v53  ;;  %v4071_v42 = vsel %vm883_vm7, %v4067_v55, %v3973_v34  ;;  %v4076_v26 = vsel %vm888_vm8, %v4072_v12, %v3991_v14  ;;  %v11505_v14 = vld [vmem:[#allocation21_spill] sm:$0xff] }
 0x454   : > { %v4054_v0 = vsel %vm898_vm10, %v4050_v41, %v3907_v4  ;;  %v4061_v4 = vsel %vm868_vm4, %v9659_v48, %v9755_v37  ;;  %v4075_v58 = vsel %vm888_vm8, %v4071_v42, %v3989_v19  ;;  %v4080_v50 = vsel %vm893_vm9, %v4076_v26, %v4007_v8 }
 0x455   : > { %v4065_v27 = vsel %vm873_vm5, %v4061_v4, %v3945_v29  ;;  %v4079_v53 = vsel %vm893_vm9, %v4075_v58, %v4005_v54  ;;  %v4056_v38 = vsel %vm898_vm10, %v4052_v18, %v9751_v17  ;;  %v11510_v39 = vmov 0.0  }
 0x456   : > { %v4069_v48 = vsel %vm878_vm6, %v4065_v27, %v9757_v49  ;;  %v4053_v49 = vsel %vm893_vm9, %v4049_v16, %v11505_v14 }
 0x457   : > { %v4009_v13 = vpop.permute.xlu1 %4008  ;;  %v4019_v43 = vpop.permute.xlu0 %4018  ;;  %v4073_v29 = vsel %vm883_vm7, %v4069_v48, %v9759_v7  ;;  %v11504_v19 = vld [vmem:[#allocation27_spill] sm:$0xff]  ;;  %v4057_v47 = vsel %vm898_vm10, %v4053_v49, %v11507_v51 }
 0x458   : > { %v4082_v35 = vsel %vm898_vm10, %v4078_v62, %v4019_v43  ;;  %v4077_v17 = vsel %vm888_vm8, %v4073_v29, %v11504_v19 }
 0x459   : > { %v4094_v45 = vcombine.low %v4054_v0, %v4082_v35  ;;  %v4081_v9 = vsel %vm893_vm9, %v4077_v17, %v4009_v13 }
 0x45b   : > { %v4101_v36 = vrot.slane %v4094_v45, %v11474_v3  ;;  %v4021_v22 = vpop.permute.xlu1 %4020  ;;  %v4023_v23 = vpop.permute.xlu0 %4022 }
 0x45c   : > { %v4083_v37 = vsel %vm898_vm10, %v4079_v53, %v4021_v22  ;;  %v4084_v57 = vsel %vm898_vm10, %v4080_v50, %v4023_v23 }
 0x45d   : > { %v4108_v31 = vrot.slane %v4101_v36, %v11474_v3  ;;  %v4109_v34 = vcombine.low %v4055_v25, %v4083_v37  ;;  %v4124_v32 = vcombine.low %v4056_v38, %v4084_v57 }
 0x45f   : > { %7449 = vst.msk [vmem:[%s8608_s6 + $0x4] ss:$8 sm:$0x3] %vm8582_vm11, %v4108_v31  ;;  %v4116_v7 = vrot.slane %v4109_v34, %v11474_v3  ;;  %v4131_v52 = vrot.slane %v4124_v32, %v11474_v3  ;;  %v4025_v5 = vpop.permute.xlu1 %4024  ;;  %v4187_v46 = vpop.permute.xlu0 %4186 }
 0x460   : > { %v4085_v20 = vsel %vm898_vm10, %v4081_v9, %v4025_v5  ;;  %v4217_v11 = vrot.slane %v4187_v46, %v11508_v24  ;;  %v4210_v45 = vcombine.high %v4187_v46, %v11510_v39 }
 0x461   : > { %v4123_v63 = vrot.slane %v4116_v7, %v11474_v3  ;;  %v4138_v54 = vrot.slane %v4131_v52, %v11474_v3  ;;  %v4139_v8 = vcombine.low %v4057_v47, %v4085_v20 }
 0x462   : > { %v9848_v28 = vrot.slane %v4217_v11, %v11509_v21  ;;  %v4225_v33 = vcombine.high %v4217_v11, %v11510_v39  ;;  %v4224_v26 = vrot.slane %v4210_v45, %v11508_v24 }
 0x463   : > { %7450 = vst.msk [vmem:[%s8608_s6 + $0x24] ss:$8 sm:$0x3] %vm8582_vm11, %v4123_v63  ;;  %7451 = vst.msk [vmem:[%s8608_s6 + $0x44] ss:$8 sm:$0x3] %vm8582_vm11, %v4138_v54  ;;  %v4146_v1 = vrot.slane %v4139_v8, %v11474_v3  ;;  %v4191_v56 = vpop.permute.xlu0 %4190  ;;  %v4189_v32 = vpop.permute.xlu1 %4188 }
 0x464   : > { %v4315_v59 = vrot.slane %v4191_v56, %v11508_v24  ;;  %v4255_v60 = vcombine.high %v9848_v28, %v11510_v39  ;;  %v4239_v30 = vrot.slane %v4225_v33, %v11509_v21  ;;  %v4308_v58 = vcombine.high %v4191_v56, %v11510_v39 }
 0x465   : > { %v4153_v6 = vrot.slane %v4146_v1, %v11474_v3  ;;  %v4247_v38 = vrot.slane %v4224_v26, %v11509_v21  ;;  %v4240_v16 = vcombine.high %v4224_v26, %v11510_v39  ;;  %v4266_v20 = vrot.slane %v4189_v32, %v11508_v24 }
 0x466   : > { %v9865_v41 = vrot.slane %v4315_v59, %v11509_v21  ;;  %4606 = vrot.lane.b32.xlu0 %v4255_v60, %s7636_s25  ;;  %v4323_v0 = vcombine.high %v4315_v59, %v11510_v39  ;;  %v4256_v25 = vcombine.high %v4239_v30, %v11510_v39  ;;  %v4322_v36 = vrot.slane %v4308_v58, %v11508_v24 }
 0x467   : > { %7452 = vst.msk [vmem:[%s8608_s6 + $0x64] ss:$8 sm:$0x3] %vm8582_vm11, %v4153_v6  ;;  %v4195_v44 = vpop.permute.xlu0 %4194  ;;  %v4257_v31 = vcombine.high %v4247_v38, %v11510_v39  ;;  %v4254_v9 = vrot.slane %v4240_v16, %v11509_v21  ;;  %v4193_v52 = vpop.permute.xlu1 %4192  ;;  %v9946_v8 = vrot.slane %v4266_v20, %v11509_v21  ;;  %v4274_v33 = vcombine.high %v4266_v20, %v11510_v39 }
 0x468   : > { %v4413_v2 = vrot.slane %v4195_v44, %v11508_v24  ;;  %v4353_v40 = vcombine.high %v9865_v41, %v11510_v39  ;;  %v4337_v12 = vrot.slane %v4323_v0, %v11509_v21  ;;  %v4406_v27 = vcombine.high %v4195_v44, %v11510_v39 }
 0x469   : > { %v4345_v29 = vrot.slane %v4322_v36, %v11509_v21  ;;  %v4338_v14 = vcombine.high %v4322_v36, %v11510_v39  ;;  %v4258_v11 = vcombine.high %v4254_v9, %v11510_v39  ;;  %v4364_v54 = vrot.slane %v4193_v52, %v11508_v24 }
 0x46a   : > { %v9872_v10 = vrot.slane %v4413_v2, %v11509_v21  ;;  %4608 = vrot.lane.b32.xlu1 %v4353_v40, %s7636_s25  ;;  %v4421_v55 = vcombine.high %v4413_v2, %v11510_v39  ;;  %v4354_v50 = vcombine.high %v4337_v12, %v11510_v39  ;;  %v4420_v22 = vrot.slane %v4406_v27, %v11508_v24 }
 0x46b   : > { %v4199_v15 = vpop.permute.xlu0 %4198  ;;  %v4355_v17 = vcombine.high %v4345_v29, %v11510_v39  ;;  %v4352_v51 = vrot.slane %v4338_v14, %v11509_v21  ;;  %v4197_v47 = vpop.permute.xlu1 %4196  ;;  %v9954_v60 = vrot.slane %v4364_v54, %v11509_v21  ;;  %v4304_v40 = vcombine.high %v9946_v8, %v11510_v39 }
 0x46c   : > { %v4511_v62 = vrot.slane %v4199_v15, %v11508_v24  ;;  %v4451_v13 = vcombine.high %v9872_v10, %v11510_v39  ;;  %v4435_v42 = vrot.slane %v4421_v55, %v11509_v21  ;;  %v4504_v23 = vcombine.high %v4199_v15, %v11510_v39 }
 0x46d   : > { %v4443_v57 = vrot.slane %v4420_v22, %v11509_v21  ;;  %v4436_v49 = vcombine.high %v4420_v22, %v11510_v39  ;;  %v4462_v1 = vrot.slane %v4197_v47, %v11508_v24  ;;  %v4356_v6 = vcombine.high %v4352_v51, %v11510_v39 }
 0x46e   : > { %v9880_v43 = vrot.slane %v4511_v62, %v11509_v21  ;;  %4610 = vrot.lane.b32.xlu0 %v4451_v13, %s7636_s25  ;;  %v4519_v18 = vcombine.high %v4511_v62, %v11510_v39  ;;  %v4452_v53 = vcombine.high %v4435_v42, %v11510_v39  ;;  %v4518_v37 = vrot.slane %v4504_v23, %v11508_v24 }
 0x46f   : > { %v4453_v19 = vcombine.high %v4443_v57, %v11510_v39  ;;  %v4450_v46 = vrot.slane %v4436_v49, %v11509_v21  ;;  %v4201_v59 = vpop.permute.xlu1 %4200  ;;  %v9957_v44 = vrot.slane %v4462_v1, %v11509_v21  ;;  %v4402_v0 = vcombine.high %v9954_v60, %v11510_v39 }
 0x470   : > { %v4549_v35 = vcombine.high %v9880_v43, %v11510_v39  ;;  %v4533_v4 = vrot.slane %v4519_v18, %v11509_v21  ;;  %v4541_v34 = vrot.slane %v4518_v37, %v11509_v21  ;;  %v4534_v5 = vcombine.high %v4518_v37, %v11510_v39 }
 0x471   : > { %v4454_v56 = vcombine.high %v4450_v46, %v11510_v39  ;;  %v4560_v2 = vrot.slane %v4201_v59, %v11508_v24  ;;  %v4500_v13 = vcombine.high %v9957_v44, %v11510_v39  ;;  %v4372_v55 = vcombine.high %v4364_v54, %v11510_v39  ;;  %v10039_v54 = vld [vmem:[#allocation2 + $0x1a] sm:$0xff] }
 0x472   : > { %4622 = vrot.lane.b32.xlu0 %v4239_v30, %s7637_s26  ;;  %4612 = vrot.lane.b32.xlu1 %v4549_v35, %s7636_s25  ;;  %v4550_v48 = vcombine.high %v4533_v4, %v11510_v39  ;;  %v4551_v7 = vcombine.high %v4541_v34, %v11510_v39  ;;  %v4548_v63 = vrot.slane %v4534_v5, %v11509_v21 }
 0x473   : > { %v9967_v62 = vrot.slane %v4560_v2, %v11509_v21  ;;  %v4470_v30 = vcombine.high %v4462_v1, %v11510_v39  ;;  %v4288_v35 = vrot.slane %v4274_v33, %v11509_v21  ;;  %v4386_v45 = vrot.slane %v4372_v55, %v11509_v21  ;;  %11513 = vst [vmem:[#allocation17_spill] sm:$0xff] %v10039_v54 }
 0x474   : > { %v4552_v15 = vcombine.high %v4548_v63, %v11510_v39  ;;  %v4357_v26 = vcombine.high %v4193_v52, %v11510_v39 }
 0x475   : > { %v4598_v18 = vcombine.high %v9967_v62, %v11510_v39  ;;  %v4403_v36 = vcombine.high %v4386_v45, %v11510_v39 }
 0x476   : > { %4626 = vrot.lane.b32.xlu0 %v4435_v42, %s7637_s26  ;;  %4624 = vrot.lane.b32.xlu1 %v4337_v12, %s7637_s26  ;;  %v4568_v42 = vcombine.high %v4560_v2, %v11510_v39  ;;  %v4484_v12 = vrot.slane %v4470_v30, %v11509_v21  ;;  %v4371_v22 = vrot.slane %v4357_v26, %v11508_v24 }
 0x477   : > { %v5079_v2 = vrot.slane %v10039_v54, %v11508_v24 }
 0x478   : > { %v4582_v58 = vrot.slane %v4568_v42, %v11509_v21  ;;  %v4387_v14 = vcombine.high %v4371_v22, %v11510_v39 }
 0x47a   : > { %4638 = vrot.lane.b32.xlu0 %v4256_v25, %s7639_s28  ;;  %4628 = vrot.lane.b32.xlu1 %v4533_v4, %s7637_s26  ;;  %v4259_v25 = vcombine.high %v4189_v32, %v11510_v39  ;;  %v4305_v4 = vcombine.high %v4288_v35, %v11510_v39  ;;  %v4599_v37 = vcombine.high %v4582_v58, %v11510_v39 }
 0x47c   : > { %v4273_v27 = vrot.slane %v4259_v25, %v11508_v24 }
 0x47e   : > { %4642 = vrot.lane.b32.xlu0 %v4452_v53, %s7639_s28  ;;  %4640 = vrot.lane.b32.xlu1 %v4354_v50, %s7639_s28  ;;  %v4455_v53 = vcombine.high %v4197_v47, %v11510_v39  ;;  %v4501_v50 = vcombine.high %v4484_v12, %v11510_v39  ;;  %v4289_v16 = vcombine.high %v4273_v27, %v11510_v39 }
 0x480   : > { %v4469_v23 = vrot.slane %v4455_v53, %v11508_v24 }
 0x482   : > { %4654 = vrot.lane.b32.xlu0 %v4247_v38, %s7638_s27  ;;  %4644 = vrot.lane.b32.xlu1 %v4550_v48, %s7639_s28  ;;  %v4553_v38 = vcombine.high %v4201_v59, %v11510_v39  ;;  %v4296_v48 = vrot.slane %v4273_v27, %v11509_v21  ;;  %v4485_v49 = vcombine.high %v4469_v23, %v11510_v39 }
 0x483   : > { %v5087_v27 = vcombine.high %v5079_v2, %v11510_v39 }
 0x484   : > { %v4499_v5 = vrot.slane %v4485_v49, %v11509_v21 }
 0x486   : > { %4658 = vrot.lane.b32.xlu0 %v4443_v57, %s7638_s27  ;;  %4656 = vrot.lane.b32.xlu1 %v4345_v29, %s7638_s27  ;;  %v4567_v57 = vrot.slane %v4553_v38, %v11508_v24  ;;  %v4492_v29 = vrot.slane %v4469_v23, %v11509_v21 }
 0x488   : > { %v4590_v32 = vrot.slane %v4567_v57, %v11509_v21  ;;  %v4583_v52 = vcombine.high %v4567_v57, %v11510_v39 }
 0x48a   : > { %4670 = vrot.lane.b32.xlu0 %v4257_v31, %s7640_s29  ;;  %4660 = vrot.lane.b32.xlu1 %v4541_v34, %s7638_s27  ;;  %v4394_v31 = vrot.slane %v4371_v22, %v11509_v21  ;;  %v4306_v34 = vcombine.high %v4296_v48, %v11510_v39  ;;  %v5101_v22 = vrot.slane %v5087_v27, %v11509_v21 }
 0x48e   : > { %4674 = vrot.lane.b32.xlu0 %v4453_v19, %s7640_s29  ;;  %4672 = vrot.lane.b32.xlu1 %v4355_v17, %s7640_s29  ;;  %v4502_v19 = vcombine.high %v4492_v29, %v11510_v39  ;;  %v4404_v17 = vcombine.high %v4394_v31, %v11510_v39 }
 0x492   : > { %4686 = vrot.lane.b32.xlu0 %v4254_v9, %s7641_s30  ;;  %4676 = vrot.lane.b32.xlu1 %v4551_v7, %s7640_s29  ;;  %v4303_v9 = vrot.slane %v4289_v16, %v11509_v21  ;;  %v4600_v7 = vcombine.high %v4590_v32, %v11510_v39 }
 0x494   : > { %v4307_v20 = vcombine.high %v4303_v9, %v11510_v39 }
 0x496   : > { %4690 = vrot.lane.b32.xlu0 %v4450_v46, %s7641_s30  ;;  %4688 = vrot.lane.b32.xlu1 %v4352_v51, %s7641_s30  ;;  %v4401_v46 = vrot.slane %v4387_v14, %v11509_v21  ;;  %v10029_v51 = vld [vmem:[#allocation2 + $0x2] sm:$0xff]  ;;  %v5072_v14 = vcombine.high %v10039_v54, %v11510_v39 }
 0x497   : > { %11511 = vst [vmem:[#allocation24_spill] sm:$0xff] %v10029_v51  ;;  %v4981_v47 = vrot.slane %v10029_v51, %v11508_v24  ;;  %v4974_v38 = vcombine.high %v10029_v51, %v11510_v39 }
 0x499   : > { %v10044_v1 = vrot.slane %v4981_v47, %v11509_v21  ;;  %v4989_v42 = vcombine.high %v4981_v47, %v11510_v39 }
 0x49a   : > { %4702 = vrot.lane.b32.xlu0 %v4258_v11, %s7642_s2  ;;  %4692 = vrot.lane.b32.xlu1 %v4548_v63, %s7641_s30  ;;  %v4597_v11 = vrot.slane %v4583_v52, %v11509_v21  ;;  %v10037_v63 = vld [vmem:[#allocation2 + $0x32] sm:$0xff] }
 0x49b   : > { %11512 = vst [vmem:[#allocation11_spill] sm:$0xff] %v10037_v63  ;;  %11514 = vst [vmem:[#allocation29_spill] sm:$0xff] %v10044_v1  ;;  %v5177_v59 = vrot.slane %v10037_v63, %v11508_v24 }
 0x49c   : > { %v4601_v33 = vcombine.high %v4597_v11, %v11510_v39 }
 0x49d   : > { %v5185_v26 = vcombine.high %v5177_v59, %v11510_v39 }
 0x49e   : > { %4706 = vrot.lane.b32.xlu0 %v4454_v56, %s7642_s2  ;;  %4704 = vrot.lane.b32.xlu1 %v4356_v6, %s7642_s2  ;;  %v4503_v56 = vcombine.high %v4499_v5, %v11510_v39  ;;  %v4405_v6 = vcombine.high %v4401_v46, %v11510_v39 }
 0x4a2   : > { %4718 = vrot.lane.b32.xlu0 %v4304_v40, %s7636_s25  ;;  %4708 = vrot.lane.b32.xlu1 %v4552_v15, %s7642_s2  ;;  %v10052_v40 = vld [vmem:[#allocation2 + $0x4a] sm:$0xff]  ;;  %v5019_v15 = vcombine.high %v10044_v1, %v11510_v39 }
 0x4a3   : > { %11515 = vst [vmem:[#allocation13_spill] sm:$0xff] %v10052_v40  ;;  %v5275_v55 = vrot.slane %v10052_v40, %v11508_v24  ;;  %v5268_v47 = vcombine.high %v10052_v40, %v11510_v39 }
 0x4a5   : > { %v5283_v23 = vcombine.high %v5275_v55, %v11510_v39 }
 0x4a6   : > { %4722 = vrot.lane.b32.xlu0 %v4500_v13, %s7636_s25  ;;  %4720 = vrot.lane.b32.xlu1 %v4402_v0, %s7636_s25  ;;  %v10060_v13 = vrot.slane %v5177_v59, %v11509_v21  ;;  %v10063_v0 = vrot.slane %v5079_v2, %v11509_v21  ;;  %v5282_v59 = vrot.slane %v5268_v47, %v11508_v24  ;;  %v10191_v47 = vld [vmem:[#allocation2 + $0x3a] sm:$0xff] }
 0x4a7   : > { %11521 = vst [vmem:[#allocation9_spill] sm:$0xff] %v10191_v47 }
 0x4a8   : > { %11516 = vst [vmem:[#allocation18_spill] sm:$0xff] %v10060_v13  ;;  %11517 = vst [vmem:[#allocation19_spill] sm:$0xff] %v10063_v0 }
 0x4aa   : > { %4734 = vrot.lane.b32.xlu0 %v4288_v35, %s7637_s26  ;;  %4724 = vrot.lane.b32.xlu1 %v4598_v18, %s7636_s25  ;;  %v5215_v35 = vcombine.high %v10060_v13, %v11510_v39  ;;  %v5117_v18 = vcombine.high %v10063_v0, %v11510_v39 }
 0x4ae   : > { %4738 = vrot.lane.b32.xlu0 %v4484_v12, %s7637_s26  ;;  %4736 = vrot.lane.b32.xlu1 %v4386_v45, %s7637_s26  ;;  %v10077_v12 = vrot.slane %v5275_v55, %v11509_v21  ;;  %v5305_v55 = vrot.slane %v5282_v59, %v11509_v21 }
 0x4b0   : > { %11518 = vst [vmem:[#allocation14_spill] sm:$0xff] %v10077_v12 }
 0x4b2   : > { %4750 = vrot.lane.b32.xlu0 %v4305_v4, %s7639_s28  ;;  %4740 = vrot.lane.b32.xlu1 %v4582_v58, %s7637_s26  ;;  %v5003_v4 = vrot.slane %v4989_v42, %v11509_v21  ;;  %v5313_v58 = vcombine.high %v10077_v12, %v11510_v39 }
 0x4b4   : > { %v5020_v57 = vcombine.high %v5003_v4, %v11510_v39 }
 0x4b6   : > { %4754 = vrot.lane.b32.xlu0 %v4501_v50, %s7639_s28  ;;  %4752 = vrot.lane.b32.xlu1 %v4403_v36, %s7639_s28  ;;  %v5199_v36 = vrot.slane %v5185_v26, %v11509_v21 }
 0x4b8   : > { %v5216_v16 = vcombine.high %v5199_v36, %v11510_v39 }
 0x4ba   : > { %4766 = vrot.lane.b32.xlu0 %v4296_v48, %s7638_s27  ;;  %4756 = vrot.lane.b32.xlu1 %v4599_v37, %s7639_s28 }
 0x4be   : > { %4770 = vrot.lane.b32.xlu0 %v4492_v29, %s7638_s27  ;;  %4768 = vrot.lane.b32.xlu1 %v4394_v31, %s7638_s27  ;;  %v5297_v29 = vrot.slane %v5283_v23, %v11509_v21  ;;  %v4988_v31 = vrot.slane %v4974_v38, %v11508_v24 }
 0x4c0   : > { %v5011_v49 = vrot.slane %v4988_v31, %v11509_v21  ;;  %v5314_v52 = vcombine.high %v5297_v29, %v11510_v39 }
 0x4c2   : > { %4782 = vrot.lane.b32.xlu0 %v4306_v34, %s7640_s29  ;;  %4772 = vrot.lane.b32.xlu1 %v4590_v32, %s7638_s27 }
 0x4c6   : > { %4786 = vrot.lane.b32.xlu0 %v4502_v19, %s7640_s29  ;;  %4784 = vrot.lane.b32.xlu1 %v4404_v17, %s7640_s29  ;;  %v5118_v19 = vcombine.high %v5101_v22, %v11510_v39  ;;  %v5170_v17 = vcombine.high %v10037_v63, %v11510_v39 }
 0x4ca   : > { %4798 = vrot.lane.b32.xlu0 %v4303_v9, %s7641_s30  ;;  %4788 = vrot.lane.b32.xlu1 %v4600_v7, %s7640_s29 }
 0x4ce   : > { %4802 = vrot.lane.b32.xlu0 %v4499_v5, %s7641_s30  ;;  %4800 = vrot.lane.b32.xlu1 %v4401_v46, %s7641_s30  ;;  %v5184_v5 = vrot.slane %v5170_v17, %v11508_v24  ;;  %v5086_v46 = vrot.slane %v5072_v14, %v11508_v24  ;;  %v10179_v17 = vld [vmem:[#allocation2 + $0xa] sm:$0xff] }
 0x4cf   : > { %11520 = vst [vmem:[#allocation22_spill] sm:$0xff] %v10179_v17  ;;  %v5030_v14 = vrot.slane %v10179_v17, %v11508_v24  ;;  %v5023_v63 = vcombine.high %v10179_v17, %v11510_v39 }
 0x4d0   : > { %v5200_v23 = vcombine.high %v5184_v5, %v11510_v39  ;;  %v5102_v38 = vcombine.high %v5086_v46, %v11510_v39 }
 0x4d1   : > { %v5038_v12 = vcombine.high %v5030_v14, %v11510_v39 }
 0x4d2   : > { %4814 = vrot.lane.b32.xlu0 %v4307_v20, %s7642_s2  ;;  %4804 = vrot.lane.b32.xlu1 %v4597_v11, %s7641_s30 }
 0x4d3   : > { %v5052_v0 = vrot.slane %v5038_v12, %v11509_v21 }
 0x4d6   : > { %4818 = vrot.lane.b32.xlu0 %v4503_v56, %s7642_s2  ;;  %4816 = vrot.lane.b32.xlu1 %v4405_v6, %s7642_s2  ;;  %v5207_v56 = vrot.slane %v5184_v5, %v11509_v21  ;;  %v5109_v6 = vrot.slane %v5086_v46, %v11509_v21 }
 0x4d8   : > { %v10069_v30 = vpop.permute.xlu0 %4606  ;;  %v5217_v42 = vcombine.high %v5207_v56, %v11510_v39 }
 0x4da   : > { %5370 = vrot.lane.b32.xlu0 %v5019_v15, %s7636_s25  ;;  %4820 = vrot.lane.b32.xlu1 %v4601_v33, %s7642_s2  ;;  %v5021_v33 = vcombine.high %v5011_v49, %v11510_v39 }
 0x4dc   : > { %v10081_v45 = vpop.permute.xlu1 %4608 }
 0x4de   : > { %5374 = vrot.lane.b32.xlu0 %v5215_v35, %s7636_s25  ;;  %5372 = vrot.lane.b32.xlu1 %v5117_v18, %s7636_s25 }
 0x4e0   : > { %v10083_v25 = vpop.permute.xlu0 %4610 }
 0x4e2   : > { %5386 = vrot.lane.b32.xlu0 %v5003_v4, %s7637_s26  ;;  %5376 = vrot.lane.b32.xlu1 %v5313_v58, %s7636_s25  ;;  %v5119_v4 = vcombine.high %v5109_v6, %v11510_v39  ;;  %v5004_v58 = vcombine.high %v4988_v31, %v11510_v39  ;;  %v5214_v31 = vrot.slane %v5200_v23, %v11509_v21 }
 0x4e4   : > { %v10092_v53 = vpop.permute.xlu1 %4612  ;;  %v10094_v50 = vpop.permute.xlu0 %4622 }
 0x4e6   : > { %5390 = vrot.lane.b32.xlu0 %v5199_v36, %s7637_s26  ;;  %5388 = vrot.lane.b32.xlu1 %v5101_v22, %s7637_s26  ;;  %v5018_v36 = vrot.slane %v5004_v58, %v11509_v21  ;;  %v5315_v22 = vcombine.high %v5305_v55, %v11510_v39 }
 0x4e8   : > { %v10103_v48 = vpop.permute.xlu1 %4624  ;;  %v10105_v37 = vpop.permute.xlu0 %4626  ;;  %v5022_v5 = vcombine.high %v5018_v36, %v11510_v39 }
 0x4ea   : > { %5402 = vrot.lane.b32.xlu0 %v5020_v57, %s7639_s28  ;;  %5392 = vrot.lane.b32.xlu1 %v5297_v29, %s7637_s26 }
 0x4ec   : > { %v10112_v34 = vpop.permute.xlu1 %4628  ;;  %v10114_v32 = vpop.permute.xlu0 %4638 }
 0x4ee   : > { %5406 = vrot.lane.b32.xlu0 %v5216_v16, %s7639_s28  ;;  %5404 = vrot.lane.b32.xlu1 %v5118_v19, %s7639_s28  ;;  %v5116_v16 = vrot.slane %v5102_v38, %v11509_v21  ;;  %v5298_v19 = vcombine.high %v5282_v59, %v11510_v39 }
 0x4f0   : > { %v10125_v9 = vpop.permute.xlu1 %4640  ;;  %v10127_v7 = vpop.permute.xlu0 %4642  ;;  %v5312_v46 = vrot.slane %v5298_v19, %v11509_v21 }
 0x4f2   : > { %5418 = vrot.lane.b32.xlu0 %v5011_v49, %s7638_s27  ;;  %5408 = vrot.lane.b32.xlu1 %v5314_v52, %s7639_s28 }
 0x4f4   : > { %v10136_v20 = vpop.permute.xlu1 %4644  ;;  %v10138_v11 = vpop.permute.xlu0 %4654 }
 0x4f6   : > { %5422 = vrot.lane.b32.xlu0 %v5207_v56, %s7638_s27  ;;  %5420 = vrot.lane.b32.xlu1 %v5109_v6, %s7638_s27  ;;  %v10193_v56 = vld [vmem:[#allocation2 + $0x22] sm:$0xff]  ;;  %v10198_v6 = vrot.slane %v5030_v14, %v11509_v21 }
 0x4f7   : > { %11522 = vst [vmem:[#allocation12_spill] sm:$0xff] %v10193_v56  ;;  %v5128_v58 = vrot.slane %v10193_v56, %v11508_v24 }
 0x4f8   : > { %v10145_v2 = vpop.permute.xlu1 %4656  ;;  %v10147_v15 = vpop.permute.xlu0 %4658  ;;  %11523 = vst [vmem:[#allocation10_spill] sm:$0xff] %v10198_v6 }
 0x4f9   : > { %v10225_v19 = vrot.slane %v5128_v58, %v11509_v21  ;;  %v5136_v14 = vcombine.high %v5128_v58, %v11510_v39 }
 0x4fa   : > { %5434 = vrot.lane.b32.xlu0 %v5021_v33, %s7640_s29  ;;  %5424 = vrot.lane.b32.xlu1 %v5305_v55, %s7638_s27  ;;  %v5218_v55 = vcombine.high %v5214_v31, %v11510_v39 }
 0x4fb   : > { %11528 = vst [vmem:[#allocation15_spill] sm:$0xff] %v10225_v19  ;;  %v5150_v40 = vrot.slane %v5136_v14, %v11509_v21 }
 0x4fc   : > { %v10153_v35 = vpop.permute.xlu1 %4660  ;;  %v10155_v18 = vpop.permute.xlu0 %4670 }
 0x4fd   : > { %v5167_v54 = vcombine.high %v5150_v40, %v11510_v39 }
 0x4fe   : > { %5438 = vrot.lane.b32.xlu0 %v5217_v42, %s7640_s29  ;;  %5436 = vrot.lane.b32.xlu1 %v5119_v4, %s7640_s29  ;;  %v5120_v42 = vcombine.high %v5116_v16, %v11510_v39  ;;  %v5226_v4 = vrot.slane %v10191_v47, %v11508_v24 }
 0x500   : > { %v10162_v26 = vpop.permute.xlu1 %4672  ;;  %v10164_v27 = vpop.permute.xlu0 %4674 }
 0x502   : > { %5450 = vrot.lane.b32.xlu0 %v5018_v36, %s7641_s30  ;;  %5440 = vrot.lane.b32.xlu1 %v5315_v22, %s7640_s29  ;;  %v10210_v36 = vld [vmem:[#allocation2 + $0x52] sm:$0xff]  ;;  %v5068_v22 = vcombine.high %v10198_v6, %v11510_v39  ;;  %v5166_v6 = vcombine.high %v10225_v19, %v11510_v39  ;;  %v5234_v19 = vcombine.high %v5226_v4, %v11510_v39 }
 0x503   : > { %11525 = vst [vmem:[#allocation28_spill] sm:$0xff] %v10210_v36 }
 0x504   : > { %v10172_v57 = vpop.permute.xlu1 %4676  ;;  %v10174_v29 = vpop.permute.xlu0 %4686  ;;  %v5248_v1 = vrot.slane %v5234_v19, %v11509_v21 }
 0x505   : > { %11519 = vst [vmem:[#allocation8_spill] sm:$0xff] %v10172_v57 }
 0x506   : > { %5454 = vrot.lane.b32.xlu0 %v5214_v31, %s7641_s30  ;;  %5452 = vrot.lane.b32.xlu1 %v5116_v16, %s7641_s30  ;;  %v5316_v31 = vcombine.high %v5312_v46, %v11510_v39  ;;  %v10222_v16 = vrot.slane %v5226_v4, %v11509_v21  ;;  %v5265_v19 = vcombine.high %v5248_v1, %v11510_v39 }
 0x508   : > { %v10185_v49 = vpop.permute.xlu1 %4688  ;;  %v10187_v52 = vpop.permute.xlu0 %4690  ;;  %11527 = vst [vmem:[#allocation30_spill] sm:$0xff] %v10222_v16 }
 0x50a   : > { %5466 = vrot.lane.b32.xlu0 %v5022_v5, %s7642_s2  ;;  %5456 = vrot.lane.b32.xlu1 %v5312_v46, %s7641_s30  ;;  %v5324_v5 = vrot.slane %v10210_v36, %v11508_v24  ;;  %v5264_v46 = vcombine.high %v10222_v16, %v11510_v39 }
 0x50c   : > { %v10200_v59 = vpop.permute.xlu1 %4692  ;;  %v10202_v33 = vpop.permute.xlu0 %4702  ;;  %v10241_v13 = vrot.slane %v5324_v5, %v11509_v21  ;;  %v5332_v12 = vcombine.high %v5324_v5, %v11510_v39 }
 0x50d   : > { %11524 = vst [vmem:[#allocation16_spill] sm:$0xff] %v10200_v59 }
 0x50e   : > { %5470 = vrot.lane.b32.xlu0 %v5218_v55, %s7642_s2  ;;  %5468 = vrot.lane.b32.xlu1 %v5120_v42, %s7642_s2  ;;  %11530 = vst [vmem:[#allocation27_spill] sm:$0xff] %v10241_v13  ;;  %v5362_v16 = vcombine.high %v10241_v13, %v11510_v39  ;;  %v5346_v13 = vrot.slane %v5332_v12, %v11509_v21 }
 0x50f   : > { %v5219_v12 = vcombine.high %v10191_v47, %v11510_v39 }
 0x510   : > { %v10216_v23 = vpop.permute.xlu1 %4704  ;;  %v10218_v38 = vpop.permute.xlu0 %4706 }
 0x511   : > { %11526 = vst [vmem:[#allocation26_spill] sm:$0xff] %v10218_v38  ;;  %v5233_v61 = vrot.slane %v5219_v12, %v11508_v24 }
 0x512   : > { %5482 = vrot.lane.b32.xlu0 %v5068_v22, %s7636_s25  ;;  %5472 = vrot.lane.b32.xlu1 %v5316_v31, %s7642_s2 }
 0x513   : > { %v5256_v47 = vrot.slane %v5233_v61, %v11509_v21 }
 0x514   : > { %v10231_v55 = vpop.permute.xlu1 %4708  ;;  %v10233_v42 = vpop.permute.xlu0 %4718 }
 0x515   : > { %11529 = vst [vmem:[#allocation20_spill] sm:$0xff] %v10231_v55  ;;  %v5037_v55 = vrot.slane %v5023_v63, %v11508_v24 }
 0x516   : > { %5486 = vrot.lane.b32.xlu0 %v5264_v46, %s7636_s25  ;;  %5484 = vrot.lane.b32.xlu1 %v5166_v6, %s7636_s25 }
 0x517   : > { %v5053_v57 = vcombine.high %v5037_v55, %v11510_v39 }
 0x518   : > { %v10245_v22 = vpop.permute.xlu1 %4720  ;;  %v10247_v31 = vpop.permute.xlu0 %4722 }
 0x51a   : > { %5498 = vrot.lane.b32.xlu0 %v5052_v0, %s7637_s26  ;;  %5488 = vrot.lane.b32.xlu1 %v5362_v16, %s7636_s25  ;;  %v5069_v16 = vcombine.high %v5052_v0, %v11510_v39  ;;  %v5121_v0 = vcombine.high %v10193_v56, %v11510_v39  ;;  %v5317_v56 = vcombine.high %v10210_v36, %v11510_v39 }
 0x51c   : > { %v10256_v46 = vpop.permute.xlu1 %4724  ;;  %v10258_v6 = vpop.permute.xlu0 %4734  ;;  %v5135_v63 = vrot.slane %v5121_v0, %v11508_v24  ;;  %v5331_v59 = vrot.slane %v5317_v56, %v11508_v24  ;;  %v5249_v24 = vcombine.high %v5233_v61, %v11510_v39 }
 0x51e   : > { %5502 = vrot.lane.b32.xlu0 %v5248_v1, %s7637_s26  ;;  %5500 = vrot.lane.b32.xlu1 %v5150_v40, %s7637_s26  ;;  %v5363_v1 = vcombine.high %v5346_v13, %v11510_v39  ;;  %v5060_v40 = vrot.slane %v5037_v55, %v11509_v21  ;;  %v5151_v56 = vcombine.high %v5135_v63, %v11510_v39 }
 0x520   : > { %v10265_v4 = vpop.permute.xlu1 %4736  ;;  %v10267_v58 = vpop.permute.xlu0 %4738  ;;  %v5070_v36 = vcombine.high %v5060_v40, %v11510_v39  ;;  %v5165_v55 = vrot.slane %v5151_v56, %v11509_v21 }
 0x522   : > { %5514 = vrot.lane.b32.xlu0 %v5069_v16, %s7639_s28  ;;  %5504 = vrot.lane.b32.xlu1 %v5346_v13, %s7637_s26 }
 0x524   : > { %v10276_v5 = vpop.permute.xlu1 %4740  ;;  %v10278_v14 = vpop.permute.xlu0 %4750 }
 0x525   : > { %11531 = vst [vmem:[#allocation21_spill] sm:$0xff] %v10276_v5  ;;  %v5347_v5 = vcombine.high %v5331_v59, %v11510_v39 }
 0x526   : > { %5518 = vrot.lane.b32.xlu0 %v5265_v19, %s7639_s28  ;;  %5516 = vrot.lane.b32.xlu1 %v5167_v54, %s7639_s28  ;;  %v5158_v19 = vrot.slane %v5135_v63, %v11509_v21 }
 0x528   : > { %v10289_v16 = vpop.permute.xlu1 %4752  ;;  %v10291_v17 = vpop.permute.xlu0 %4754  ;;  %v5168_v3 = vcombine.high %v5158_v19, %v11510_v39 }
 0x52a   : > { %5520 = vrot.lane.b32.xlu1 %v5363_v1, %s7639_s28  ;;  %5530 = vrot.lane.b32.xlu0 %v5060_v40, %s7638_s27  ;;  %v5354_v1 = vrot.slane %v5331_v59, %v11509_v21  ;;  %v5263_v40 = vrot.slane %v5249_v24, %v11509_v21  ;;  %v4826_v24 = vsel %vm868_vm4, %v9848_v28, %v10069_v30 }
 0x52b   : > { %v4830_v28 = vsel %vm873_vm5, %v4826_v24, %v10094_v50 }
 0x52c   : > { %v10300_v54 = vpop.permute.xlu1 %4756  ;;  %v10302_v13 = vpop.permute.xlu0 %4766  ;;  %v5267_v59 = vcombine.high %v5263_v40, %v11510_v39 }
 0x52d   : > { %11532 = vst [vmem:[#allocation31_spill] sm:$0xff] %v10300_v54  ;;  %v5266_v54 = vcombine.high %v5256_v47, %v11510_v39 }
 0x52e   : > { %5532 = vrot.lane.b32.xlu1 %v5158_v19, %s7638_s27  ;;  %5534 = vrot.lane.b32.xlu0 %v5256_v47, %s7638_s27  ;;  %v5364_v19 = vcombine.high %v5354_v1, %v11510_v39  ;;  %v5361_v47 = vrot.slane %v5347_v5, %v11509_v21  ;;  %v4828_v5 = vsel %vm868_vm4, %v9872_v10, %v10083_v25 }
 0x52f   : > { %v4832_v30 = vsel %vm873_vm5, %v4828_v5, %v10105_v37 }
 0x530   : > { %v10309_v0 = vpop.permute.xlu1 %4768  ;;  %v10311_v12 = vpop.permute.xlu0 %4770 }
 0x532   : > { %5536 = vrot.lane.b32.xlu1 %v5354_v1, %s7638_s27  ;;  %5546 = vrot.lane.b32.xlu0 %v5070_v36, %s7640_s29  ;;  %v5067_v36 = vrot.slane %v5053_v57, %v11509_v21  ;;  %v5169_v57 = vcombine.high %v5165_v55, %v11510_v39 }
 0x534   : > { %v10320_v51 = vpop.permute.xlu1 %4772  ;;  %v4783_v38 = vpop.permute.xlu0 %4782 }
 0x536   : > { %5548 = vrot.lane.b32.xlu1 %v5168_v3, %s7640_s29  ;;  %5550 = vrot.lane.b32.xlu0 %v5266_v54, %s7640_s29  ;;  %v5071_v3 = vcombine.high %v5067_v36, %v11510_v39  ;;  %v4827_v54 = vsel %vm868_vm4, %v9865_v41, %v10081_v45  ;;  %v4834_v45 = vsel %vm878_vm6, %v4830_v28, %v10114_v32 }
 0x537   : > { %v4831_v41 = vsel %vm873_vm5, %v4827_v54, %v10103_v48  ;;  %v4838_v50 = vsel %vm883_vm7, %v4834_v45, %v10138_v11  ;;  %v4854_v48 = vsel %vm868_vm4, %v9946_v8, %v10233_v42  ;;  %v11536_v54 = vld [vmem:[#allocation26_spill] sm:$0xff] }
 0x538   : > { %v10330_v61 = vpop.permute.xlu1 %4784  ;;  %v10332_v63 = vpop.permute.xlu0 %4786  ;;  %v4835_v25 = vsel %vm878_vm6, %v4831_v41, %v10125_v9  ;;  %v4858_v9 = vsel %vm873_vm5, %v4854_v48, %v10258_v6  ;;  %v4842_v11 = vsel %vm888_vm8, %v4838_v50, %v10155_v18 }
 0x539   : > { %v4839_v37 = vsel %vm883_vm7, %v4835_v25, %v10145_v2  ;;  %v11539_v25 = vld [vmem:[#allocation16_spill] sm:$0xff] }
 0x53a   : > { %5552 = vrot.lane.b32.xlu1 %v5364_v19, %s7640_s29  ;;  %5562 = vrot.lane.b32.xlu0 %v5067_v36, %s7641_s30  ;;  %v10353_v36 = vcombine.high %v5361_v47, %v11510_v39  ;;  %v4829_v19 = vsel %vm868_vm4, %v9880_v43, %v10092_v53  ;;  %v4836_v43 = vsel %vm878_vm6, %v4832_v30, %v10127_v7  ;;  %v11537_v30 = vld [vmem:[#allocation24_spill] sm:$0xff] }
 0x53b   : > { %v4833_v10 = vsel %vm873_vm5, %v4829_v19, %v10112_v34  ;;  %v4840_v34 = vsel %vm883_vm7, %v4836_v43, %v10147_v15  ;;  %v4843_v8 = vsel %vm888_vm8, %v4839_v37, %v10162_v26  ;;  %v4862_v15 = vsel %vm878_vm6, %v4858_v9, %v10278_v14 }
 0x53c   : > { %v10350_v1 = vpop.permute.xlu1 %4788  ;;  %v4799_v56 = vpop.permute.xlu0 %4798  ;;  %v4837_v53 = vsel %vm878_vm6, %v4833_v10, %v10136_v20  ;;  %v4844_v2 = vsel %vm888_vm8, %v4840_v34, %v10164_v27  ;;  %v4847_v42 = vsel %vm893_vm9, %v4843_v8, %v10185_v49  ;;  %v4866_v6 = vsel %vm883_vm7, %v4862_v15, %v10302_v13  ;;  %v11538_v10 = vld [vmem:[#allocation8_spill] sm:$0xff]  ;;  %v11542_v8 = vld [vmem:[#allocation22_spill] sm:$0xff] }
 0x53d   : > { %v4841_v32 = vsel %vm883_vm7, %v4837_v53, %v10153_v35  ;;  %v4846_v35 = vsel %vm893_vm9, %v4842_v11, %v10174_v29  ;;  %v4848_v18 = vsel %vm893_vm9, %v4844_v2, %v10187_v52  ;;  %v4855_v26 = vsel %vm868_vm4, %v9954_v60, %v10245_v22  ;;  %v11543_v2 = vld [vmem:[#allocation17_spill] sm:$0xff] }
 0x53e   : > { %5564 = vrot.lane.b32.xlu1 %v5165_v55, %s7641_s30  ;;  %5566 = vrot.lane.b32.xlu0 %v5263_v40, %s7641_s30  ;;  %v4856_v27 = vsel %vm868_vm4, %v9957_v44, %v10247_v31  ;;  %v4870_v29 = vsel %vm888_vm8, %v4866_v6, %v4783_v38  ;;  %v4850_v49 = vsel %vm898_vm10, %v4846_v35, %v10202_v33 }
 0x53f   : > { %v4859_v14 = vsel %vm873_vm5, %v4855_v26, %v10265_v4  ;;  %v4860_v13 = vsel %vm873_vm5, %v4856_v27, %v10267_v58  ;;  %v4874_v52 = vsel %vm893_vm9, %v4870_v29, %v4799_v56  ;;  %v4857_v60 = vsel %vm868_vm4, %v9967_v62, %v10256_v46  ;;  %v11533_v46 = vld [vmem:[#allocation21_spill] sm:$0xff]  ;;  %v11545_v26 = vld [vmem:[#allocation11_spill] sm:$0xff] }
 0x540   : > { %v4801_v7 = vpop.permute.xlu1 %4800  ;;  %v4803_v20 = vpop.permute.xlu0 %4802  ;;  %v4863_v44 = vsel %vm878_vm6, %v4859_v14, %v10289_v16  ;;  %v4864_v33 = vsel %vm878_vm6, %v4860_v13, %v10291_v17  ;;  %v4851_v62 = vsel %vm898_vm10, %v4847_v42, %v10216_v23  ;;  %v4861_v58 = vsel %vm873_vm5, %v4857_v60, %v11533_v46  ;;  %v11547_v14 = vld [vmem:[#allocation13_spill] sm:$0xff] }
 0x541   : > { %v4867_v22 = vsel %vm883_vm7, %v4863_v44, %v10309_v0  ;;  %v4868_v31 = vsel %vm883_vm7, %v4864_v33, %v10311_v12  ;;  %v11534_v0 = vld [vmem:[#allocation31_spill] sm:$0xff]  ;;  %v4852_v5 = vsel %vm898_vm10, %v4848_v18, %v11536_v54  ;;  %v4845_v45 = vsel %vm888_vm8, %v4841_v32, %v11538_v10  ;;  %v11541_v32 = vld [vmem:[#allocation20_spill] sm:$0xff] }
 0x542   : > { %5568 = vrot.lane.b32.xlu1 %v5361_v47, %s7641_s30  ;;  %5578 = vrot.lane.b32.xlu0 %v5071_v3, %s7642_s2  ;;  %v4871_v17 = vsel %vm888_vm8, %v4867_v22, %v10330_v61  ;;  %v4872_v16 = vsel %vm888_vm8, %v4868_v31, %v10332_v63  ;;  %v4865_v12 = vsel %vm878_vm6, %v4861_v58, %v11534_v0  ;;  %v11544_v18 = vld [vmem:[#allocation12_spill] sm:$0xff] }
 0x543   : > { %v4875_v47 = vsel %vm893_vm9, %v4871_v17, %v4801_v7  ;;  %v4876_v3 = vsel %vm893_vm9, %v4872_v16, %v4803_v20  ;;  %v4869_v61 = vsel %vm883_vm7, %v4865_v12, %v10320_v51  ;;  %v4849_v43 = vsel %vm893_vm9, %v4845_v45, %v11539_v25 }
 0x544   : > { %v4805_v55 = vpop.permute.xlu1 %4804  ;;  %v4815_v40 = vpop.permute.xlu0 %4814  ;;  %v4873_v51 = vsel %vm888_vm8, %v4869_v61, %v10350_v1  ;;  %v4853_v1 = vsel %vm898_vm10, %v4849_v43, %v11541_v32 }
 0x545   : > { %v4878_v38 = vsel %vm898_vm10, %v4874_v52, %v4815_v40  ;;  %v4877_v53 = vsel %vm893_vm9, %v4873_v51, %v4805_v55  ;;  %v11548_v55 = vld [vmem:[#allocation28_spill] sm:$0xff] }
 0x546   : > { %v4890_v4 = vcombine.low %v4850_v49, %v4878_v38  ;;  %5580 = vrot.lane.b32.xlu1 %v5169_v57, %s7642_s2  ;;  %5582 = vrot.lane.b32.xlu0 %v5267_v59, %s7642_s2  ;;  %v11535_v57 = vld [vmem:[#allocation25_spill] sm:$0xff] }
 0x547   : > { %v11546_v49 = vld [vmem:[#allocation9_spill] sm:$0xff] }
 0x548   : > { %v4897_v59 = vrot.slane %v4890_v4, %v11535_v57  ;;  %v4817_v23 = vpop.permute.xlu1 %4816  ;;  %v4819_v24 = vpop.permute.xlu0 %4818 }
 0x549   : > { %v4879_v63 = vsel %vm898_vm10, %v4875_v47, %v4817_v23  ;;  %v4880_v56 = vsel %vm898_vm10, %v4876_v3, %v4819_v24 }
 0x54a   : > { %v4904_v19 = vrot.slane %v4897_v59, %v11535_v57  ;;  %v4905_v28 = vcombine.low %v4851_v62, %v4879_v63  ;;  %v4920_v41 = vcombine.low %v4852_v5, %v4880_v56  ;;  %5584 = vrot.lane.b32.xlu1 %v10353_v36, %s7642_s2  ;;  %5746 = vrot.lane.b32.xlu0 %v11537_v30, %s7635_s24 }
 0x54c   : > { %7453 = vst.msk [vmem:[%s8608_s6 + $0x5] ss:$8 sm:$0x3] %vm8582_vm11, %v4904_v19  ;;  %v4912_v36 = vrot.slane %v4905_v28, %v11535_v57  ;;  %v4927_v48 = vrot.slane %v4920_v41, %v11535_v57  ;;  %v4821_v37 = vpop.permute.xlu1 %4820  ;;  %v10471_v34 = vpop.permute.xlu0 %5370 }
 0x54d   : > { %v4881_v9 = vsel %vm898_vm10, %v4877_v53, %v4821_v37 }
 0x54e   : > { %v4919_v7 = vrot.slane %v4912_v36, %v11535_v57  ;;  %v4934_v20 = vrot.slane %v4927_v48, %v11535_v57  ;;  %v4935_v11 = vcombine.low %v4853_v1, %v4881_v9  ;;  %5748 = vrot.lane.b32.xlu1 %v11542_v8, %s7635_s24  ;;  %5750 = vrot.lane.b32.xlu0 %v11543_v2, %s7635_s24  ;;  %v11550_v2 = vld [vmem:[#allocation19_spill] sm:$0xff] }
 0x550   : > { %7454 = vst.msk [vmem:[%s8608_s6 + $0x25] ss:$8 sm:$0x3] %vm8582_vm11, %v4919_v7  ;;  %7455 = vst.msk [vmem:[%s8608_s6 + $0x45] ss:$8 sm:$0x3] %vm8582_vm11, %v4934_v20  ;;  %v4942_v15 = vrot.slane %v4935_v11, %v11535_v57  ;;  %v5373_v35 = vpop.permute.xlu1 %5372  ;;  %v5375_v42 = vpop.permute.xlu0 %5374 }
 0x551   : > { %v11549_v20 = vld [vmem:[#allocation29_spill] sm:$0xff] }
 0x552   : > { %v4949_v6 = vrot.slane %v4942_v15, %v11535_v57  ;;  %5752 = vrot.lane.b32.xlu1 %v11544_v18, %s7635_s24  ;;  %5754 = vrot.lane.b32.xlu0 %v11545_v26, %s7635_s24  ;;  %v5590_v11 = vsel %vm868_vm4, %v11549_v20, %v10471_v34  ;;  %v5591_v15 = vsel %vm868_vm4, %v11550_v2, %v5373_v35  ;;  %v11553_v20 = vld [vmem:[#allocation10_spill] sm:$0xff] }
 0x554   : > { %7456 = vst.msk [vmem:[%s8608_s6 + $0x65] ss:$8 sm:$0x3] %vm8582_vm11, %v4949_v6  ;;  %v5377_v27 = vpop.permute.xlu1 %5376  ;;  %v5387_v29 = vpop.permute.xlu0 %5386  ;;  %v11551_v6 = vld [vmem:[#allocation18_spill] sm:$0xff] }
 0x555   : > { %v5592_v26 = vsel %vm868_vm4, %v11551_v6, %v5375_v42 }
 0x556   : > { %5756 = vrot.lane.b32.xlu1 %v11546_v49, %s7635_s24  ;;  %5758 = vrot.lane.b32.xlu0 %v11547_v14, %s7635_s24  ;;  %v11552_v14 = vld [vmem:[#allocation14_spill] sm:$0xff]  ;;  %v5594_v49 = vsel %vm873_vm5, %v5590_v11, %v5387_v29 }
 0x558   : > { %v5389_v13 = vpop.permute.xlu1 %5388  ;;  %v5391_v52 = vpop.permute.xlu0 %5390 }
 0x559   : > { %v5595_v18 = vsel %vm873_vm5, %v5591_v15, %v5389_v13  ;;  %v5596_v8 = vsel %vm873_vm5, %v5592_v26, %v5391_v52 }
 0x55a   : > { %5760 = vrot.lane.b32.xlu1 %v11548_v55, %s7635_s24  ;;  %v5593_v55 = vsel %vm868_vm4, %v11552_v14, %v5377_v27 }
 0x55c   : > { %v5393_v40 = vpop.permute.xlu1 %5392  ;;  %v5403_v60 = vpop.permute.xlu0 %5402 }
 0x55d   : > { %v5597_v39 = vsel %vm873_vm5, %v5593_v55, %v5393_v40  ;;  %v5598_v21 = vsel %vm878_vm6, %v5594_v49, %v5403_v60 }
 0x560   : > { %v5405_v44 = vpop.permute.xlu1 %5404  ;;  %v5407_v33 = vpop.permute.xlu0 %5406 }
 0x561   : > { %v5599_v34 = vsel %vm878_vm6, %v5595_v18, %v5405_v44  ;;  %v5600_v42 = vsel %vm878_vm6, %v5596_v8, %v5407_v33  ;;  %v11554_v44 = vld [vmem:[#allocation15_spill] sm:$0xff] }
 0x564   : > { %v5409_v38 = vpop.permute.xlu1 %5408  ;;  %v5419_v22 = vpop.permute.xlu0 %5418 }
 0x565   : > { %v5601_v2 = vsel %vm878_vm6, %v5597_v39, %v5409_v38  ;;  %v5602_v27 = vsel %vm883_vm7, %v5598_v21, %v5419_v22  ;;  %v11555_v38 = vld [vmem:[#allocation30_spill] sm:$0xff] }
 0x568   : > { %v5421_v31 = vpop.permute.xlu1 %5420  ;;  %v5423_v4 = vpop.permute.xlu0 %5422 }
 0x569   : > { %v5603_v52 = vsel %vm883_vm7, %v5599_v34, %v5421_v31  ;;  %v5604_v55 = vsel %vm883_vm7, %v5600_v42, %v5423_v4 }
 0x56c   : > { %v5425_v62 = vpop.permute.xlu1 %5424  ;;  %v5435_v46 = vpop.permute.xlu0 %5434 }
 0x56d   : > { %v5605_v49 = vsel %vm883_vm7, %v5601_v2, %v5425_v62  ;;  %v5606_v40 = vsel %vm888_vm8, %v5602_v27, %v5435_v46 }
 0x570   : > { %v5437_v58 = vpop.permute.xlu1 %5436  ;;  %v5439_v17 = vpop.permute.xlu0 %5438 }
 0x571   : > { %v5607_v8 = vsel %vm888_vm8, %v5603_v52, %v5437_v58  ;;  %v5608_v39 = vsel %vm888_vm8, %v5604_v55, %v5439_v17  ;;  %v11558_v55 = vld [vmem:[#allocation7_spill] sm:$0xff] }
 0x574   : > { %v10503_v16 = vpop.permute.xlu1 %5440  ;;  %v5451_v0 = vpop.permute.xlu0 %5450 }
 0x575   : > { %v5610_v60 = vsel %vm893_vm9, %v5606_v40, %v5451_v0 }
 0x578   : > { %v5453_v12 = vpop.permute.xlu1 %5452  ;;  %v10505_v47 = vpop.permute.xlu0 %5454 }
 0x579   : > { %v5611_v4 = vsel %vm893_vm9, %v5607_v8, %v5453_v12 }
 0x57c   : > { %v10507_v3 = vpop.permute.xlu1 %5456  ;;  %v5467_v59 = vpop.permute.xlu0 %5466 }
 0x57d   : > { %v5614_v0 = vsel %vm898_vm10, %v5610_v60, %v5467_v59 }
 0x580   : > { %v10509_v23 = vpop.permute.xlu1 %5468  ;;  %v10511_v24 = vpop.permute.xlu0 %5470 }
 0x584   : > { %v10513_v54 = vpop.permute.xlu1 %5472  ;;  %v5483_v5 = vpop.permute.xlu0 %5482 }
 0x585   : > { %v5618_v35 = vsel %vm868_vm4, %v11553_v20, %v5483_v5  ;;  %v5609_v20 = vsel %vm888_vm8, %v5605_v49, %v10503_v16 }
 0x588   : > { %v5485_v61 = vpop.permute.xlu1 %5484  ;;  %v5487_v63 = vpop.permute.xlu0 %5486 }
 0x589   : > { %v5619_v33 = vsel %vm868_vm4, %v11554_v44, %v5485_v61  ;;  %v5620_v22 = vsel %vm868_vm4, %v11555_v38, %v5487_v63 }
 0x58c   : > { %v10515_v56 = vpop.permute.xlu1 %5488  ;;  %v5499_v19 = vpop.permute.xlu0 %5498 }
 0x58d   : > { %v5622_v29 = vsel %vm873_vm5, %v5618_v35, %v5499_v19 }
 0x590   : > { %v5501_v28 = vpop.permute.xlu1 %5500  ;;  %v5503_v41 = vpop.permute.xlu0 %5502 }
 0x591   : > { %v5623_v62 = vsel %vm873_vm5, %v5619_v33, %v5501_v28  ;;  %v5624_v46 = vsel %vm873_vm5, %v5620_v22, %v5503_v41 }
 0x594   : > { %v5505_v30 = vpop.permute.xlu1 %5504  ;;  %v5515_v10 = vpop.permute.xlu0 %5514 }
 0x595   : > { %v5626_v18 = vsel %vm878_vm6, %v5622_v29, %v5515_v10  ;;  %v5612_v10 = vsel %vm893_vm9, %v5608_v39, %v10505_v47  ;;  %v11557_v29 = vld [vmem:[#allocation6_spill] sm:$0xff]  ;;  %v11559_v39 = vmov 0.0  }
 0x598   : > { %v5517_v45 = vpop.permute.xlu1 %5516  ;;  %v5519_v51 = vpop.permute.xlu0 %5518 }
 0x599   : > { %v5627_v19 = vsel %vm878_vm6, %v5623_v62, %v5517_v45  ;;  %v5628_v61 = vsel %vm878_vm6, %v5624_v46, %v5519_v51 }
 0x59c   : > { %v10517_v25 = vpop.permute.xlu1 %5520  ;;  %v5531_v43 = vpop.permute.xlu0 %5530 }
 0x59d   : > { %v5630_v21 = vsel %vm883_vm7, %v5626_v18, %v5531_v43  ;;  %v5615_v43 = vsel %vm898_vm10, %v5611_v4, %v10509_v23  ;;  %v5616_v23 = vsel %vm898_vm10, %v5612_v10, %v10511_v24 }
 0x5a0   : > { %v5533_v53 = vpop.permute.xlu1 %5532  ;;  %v5535_v36 = vpop.permute.xlu0 %5534 }
 0x5a1   : > { %v5631_v12 = vsel %vm883_vm7, %v5627_v19, %v5533_v53  ;;  %v5632_v28 = vsel %vm883_vm7, %v5628_v61, %v5535_v36 }
 0x5a4   : > { %v10519_v48 = vpop.permute.xlu1 %5536  ;;  %v5547_v37 = vpop.permute.xlu0 %5546 }
 0x5a5   : > { %v5634_v31 = vsel %vm888_vm8, %v5630_v21, %v5547_v37  ;;  %v11556_v37 = vld [vmem:[#allocation27_spill] sm:$0xff] }
 0x5a6   : > { %v5621_v59 = vsel %vm868_vm4, %v11556_v37, %v10515_v56 }
 0x5a8   : > { %v5549_v32 = vpop.permute.xlu1 %5548  ;;  %v5551_v1 = vpop.permute.xlu0 %5550 }
 0x5a9   : > { %v5635_v45 = vsel %vm888_vm8, %v5631_v12, %v5549_v32  ;;  %v5636_v51 = vsel %vm888_vm8, %v5632_v28, %v5551_v1 }
 0x5ac   : > { %v10521_v9 = vpop.permute.xlu1 %5552  ;;  %v5563_v7 = vpop.permute.xlu0 %5562 }
 0x5ad   : > { %v5638_v58 = vsel %vm893_vm9, %v5634_v31, %v5563_v7  ;;  %v5625_v7 = vsel %vm873_vm5, %v5621_v59, %v5505_v30 }
 0x5ae   : > { %v5629_v56 = vsel %vm878_vm6, %v5625_v7, %v10517_v25  ;;  %v5613_v25 = vsel %vm893_vm9, %v5609_v20, %v10507_v3 }
 0x5af   : > { %v5633_v30 = vsel %vm883_vm7, %v5629_v56, %v10519_v48  ;;  %v5617_v27 = vsel %vm898_vm10, %v5613_v25, %v10513_v54 }
 0x5b0   : > { %v5565_v13 = vpop.permute.xlu1 %5564  ;;  %v5567_v11 = vpop.permute.xlu0 %5566  ;;  %v5637_v24 = vsel %vm888_vm8, %v5633_v30, %v10521_v9 }
 0x5b1   : > { %v5639_v47 = vsel %vm893_vm9, %v5635_v45, %v5565_v13  ;;  %v5640_v53 = vsel %vm893_vm9, %v5636_v51, %v5567_v11 }
 0x5b4   : > { %v5569_v17 = vpop.permute.xlu1 %5568  ;;  %v5579_v5 = vpop.permute.xlu0 %5578 }
 0x5b5   : > { %v5642_v63 = vsel %vm898_vm10, %v5638_v58, %v5579_v5  ;;  %v5641_v35 = vsel %vm893_vm9, %v5637_v24, %v5569_v17 }
 0x5b6   : > { %v5654_v41 = vcombine.low %v5614_v0, %v5642_v63 }
 0x5b8   : > { %v5661_v36 = vrot.slane %v5654_v41, %v11535_v57  ;;  %v5581_v15 = vpop.permute.xlu1 %5580  ;;  %v5583_v6 = vpop.permute.xlu0 %5582 }
 0x5b9   : > { %v5643_v32 = vsel %vm898_vm10, %v5639_v47, %v5581_v15  ;;  %v5644_v1 = vsel %vm898_vm10, %v5640_v53, %v5583_v6 }
 0x5ba   : > { %v5668_v26 = vrot.slane %v5661_v36, %v11535_v57  ;;  %v5669_v14 = vcombine.low %v5615_v43, %v5643_v32  ;;  %v5684_v34 = vcombine.low %v5616_v23, %v5644_v1 }
 0x5bc   : > { %7457 = vst.msk [vmem:[%s8608_s6 + $0x6] ss:$8 sm:$0x3] %vm8582_vm11, %v5668_v26  ;;  %v5676_v48 = vrot.slane %v5669_v14, %v11535_v57  ;;  %v5691_v42 = vrot.slane %v5684_v34, %v11535_v57  ;;  %v5585_v2 = vpop.permute.xlu1 %5584  ;;  %v5747_v16 = vpop.permute.xlu0 %5746 }
 0x5bd   : > { %v5645_v9 = vsel %vm898_vm10, %v5641_v35, %v5585_v2  ;;  %v5777_v13 = vrot.slane %v5747_v16, %v11557_v29  ;;  %v5770_v12 = vcombine.high %v5747_v16, %v11559_v39 }
 0x5be   : > { %v5683_v3 = vrot.slane %v5676_v48, %v11535_v57  ;;  %v5698_v11 = vrot.slane %v5691_v42, %v11535_v57  ;;  %v5699_v52 = vcombine.low %v5617_v27, %v5645_v9 }
 0x5bf   : > { %v10609_v49 = vrot.slane %v5777_v13, %v11558_v55  ;;  %v5785_v4 = vcombine.high %v5777_v13, %v11559_v39  ;;  %v5784_v37 = vrot.slane %v5770_v12, %v11557_v29 }
 0x5c0   : > { %7458 = vst.msk [vmem:[%s8608_s6 + $0x26] ss:$8 sm:$0x3] %vm8582_vm11, %v5683_v3  ;;  %7459 = vst.msk [vmem:[%s8608_s6 + $0x46] ss:$8 sm:$0x3] %vm8582_vm11, %v5698_v11  ;;  %v5706_v54 = vrot.slane %v5699_v52, %v11535_v57  ;;  %v5751_v18 = vpop.permute.xlu0 %5750  ;;  %v5749_v30 = vpop.permute.xlu1 %5748 }
 0x5c1   : > { %v5875_v8 = vrot.slane %v5751_v18, %v11557_v29  ;;  %v5815_v21 = vcombine.high %v10609_v49, %v11559_v39  ;;  %v5799_v0 = vrot.slane %v5785_v4, %v11558_v55  ;;  %v5868_v43 = vcombine.high %v5751_v18, %v11559_v39 }
 0x5c2   : > { %v5713_v40 = vrot.slane %v5706_v54, %v11535_v57  ;;  %v5807_v36 = vrot.slane %v5784_v37, %v11558_v55  ;;  %v5800_v26 = vcombine.high %v5784_v37, %v11559_v39  ;;  %v5826_v9 = vrot.slane %v5749_v30, %v11557_v29 }
 0x5c3   : > { %v10626_v60 = vrot.slane %v5875_v8, %v11558_v55  ;;  %6166 = vrot.lane.b32.xlu0 %v5815_v21, %s7636_s25  ;;  %v5883_v17 = vcombine.high %v5875_v8, %v11559_v39  ;;  %v5816_v28 = vcombine.high %v5799_v0, %v11559_v39  ;;  %v5882_v7 = vrot.slane %v5868_v43, %v11557_v29 }
 0x5c4   : > { %7460 = vst.msk [vmem:[%s8608_s6 + $0x66] ss:$8 sm:$0x3] %vm8582_vm11, %v5713_v40  ;;  %v5755_v44 = vpop.permute.xlu0 %5754  ;;  %v5817_v32 = vcombine.high %v5807_v36, %v11559_v39  ;;  %v5814_v25 = vrot.slane %v5800_v26, %v11558_v55  ;;  %v5753_v48 = vpop.permute.xlu1 %5752  ;;  %v10707_v52 = vrot.slane %v5826_v9, %v11558_v55  ;;  %v5834_v4 = vcombine.high %v5826_v9, %v11559_v39  ;;  %v6526_v9 = vld [vmem:[#allocation2 + $0x2] sm:$0xff] }
 0x5c5   : > { %v5973_v33 = vrot.slane %v5755_v44, %v11557_v29  ;;  %v5913_v38 = vcombine.high %v10626_v60, %v11559_v39  ;;  %v5897_v10 = vrot.slane %v5883_v17, %v11558_v55  ;;  %v5966_v59 = vcombine.high %v5755_v44, %v11559_v39 }
 0x5c6   : > { %v5905_v56 = vrot.slane %v5882_v7, %v11558_v55  ;;  %v5898_v20 = vcombine.high %v5882_v7, %v11559_v39  ;;  %v5818_v13 = vcombine.high %v5814_v25, %v11559_v39  ;;  %v5924_v11 = vrot.slane %v5753_v48, %v11557_v29 }
 0x5c7   : > { %v10633_v22 = vrot.slane %v5973_v33, %v11558_v55  ;;  %6168 = vrot.lane.b32.xlu1 %v5913_v38, %s7636_s25  ;;  %v5981_v5 = vcombine.high %v5973_v33, %v11559_v39  ;;  %v5914_v51 = vcombine.high %v5897_v10, %v11559_v39  ;;  %v5980_v47 = vrot.slane %v5966_v59, %v11557_v29 }
 0x5c8   : > { %v5759_v31 = vpop.permute.xlu0 %5758  ;;  %v5915_v34 = vcombine.high %v5905_v56, %v11559_v39  ;;  %v5912_v16 = vrot.slane %v5898_v20, %v11558_v55  ;;  %v5757_v27 = vpop.permute.xlu1 %5756  ;;  %v10715_v21 = vrot.slane %v5924_v11, %v11558_v55  ;;  %v5864_v38 = vcombine.high %v10707_v52, %v11559_v39 }
 0x5c9   : > { %v6071_v62 = vrot.slane %v5759_v31, %v11557_v29  ;;  %v6011_v46 = vcombine.high %v10633_v22, %v11559_v39  ;;  %v5995_v63 = vrot.slane %v5981_v5, %v11558_v55  ;;  %v6064_v53 = vcombine.high %v5759_v31, %v11559_v39 }
 0x5ca   : > { %v6003_v23 = vrot.slane %v5980_v47, %v11558_v55  ;;  %v5996_v24 = vcombine.high %v5980_v47, %v11559_v39  ;;  %v6022_v54 = vrot.slane %v5757_v27, %v11557_v29  ;;  %v5916_v40 = vcombine.high %v5912_v16, %v11559_v39 }
 0x5cb   : > { %v10641_v58 = vrot.slane %v6071_v62, %v11558_v55  ;;  %6170 = vrot.lane.b32.xlu0 %v6011_v46, %s7636_s25  ;;  %v6079_v61 = vcombine.high %v6071_v62, %v11559_v39  ;;  %v6012_v45 = vcombine.high %v5995_v63, %v11559_v39  ;;  %v6078_v6 = vrot.slane %v6064_v53, %v11557_v29 }
 0x5cc   : > { %v6013_v14 = vcombine.high %v6003_v23, %v11559_v39  ;;  %v6010_v2 = vrot.slane %v5996_v24, %v11558_v55  ;;  %v5761_v8 = vpop.permute.xlu1 %5760  ;;  %v10718_v44 = vrot.slane %v6022_v54, %v11558_v55  ;;  %v5962_v17 = vcombine.high %v10715_v21, %v11559_v39 }
 0x5cd   : > { %v6109_v19 = vcombine.high %v10641_v58, %v11559_v39  ;;  %v6093_v41 = vrot.slane %v6079_v61, %v11558_v55  ;;  %v6101_v1 = vrot.slane %v6078_v6, %v11558_v55  ;;  %v6094_v42 = vcombine.high %v6078_v6, %v11559_v39 }
 0x5ce   : > { %v6014_v18 = vcombine.high %v6010_v2, %v11559_v39  ;;  %v6120_v33 = vrot.slane %v5761_v8, %v11557_v29  ;;  %v6060_v46 = vcombine.high %v10718_v44, %v11559_v39  ;;  %v5932_v5 = vcombine.high %v5924_v11, %v11559_v39  ;;  %v11561_v11 = vld [vmem:[#allocation12_spill] sm:$0xff] }
 0x5cf   : > { %6182 = vrot.lane.b32.xlu0 %v5799_v0, %s7637_s26  ;;  %6172 = vrot.lane.b32.xlu1 %v6109_v19, %s7636_s25  ;;  %v6110_v15 = vcombine.high %v6093_v41, %v11559_v39  ;;  %v6111_v35 = vcombine.high %v6101_v1, %v11559_v39  ;;  %v6108_v3 = vrot.slane %v6094_v42, %v11558_v55 }
 0x5d0   : > { %v10728_v62 = vrot.slane %v6120_v33, %v11558_v55  ;;  %v6030_v0 = vcombine.high %v6022_v54, %v11559_v39  ;;  %v5848_v19 = vrot.slane %v5834_v4, %v11558_v55  ;;  %v5946_v12 = vrot.slane %v5932_v5, %v11558_v55 }
 0x5d1   : > { %v6112_v31 = vcombine.high %v6108_v3, %v11559_v39  ;;  %v5917_v37 = vcombine.high %v5753_v48, %v11559_v39 }
 0x5d2   : > { %v6158_v61 = vcombine.high %v10728_v62, %v11559_v39  ;;  %v5963_v7 = vcombine.high %v5946_v12, %v11559_v39 }
 0x5d3   : > { %6186 = vrot.lane.b32.xlu0 %v5995_v63, %s7637_s26  ;;  %6184 = vrot.lane.b32.xlu1 %v5897_v10, %s7637_s26  ;;  %v6128_v63 = vcombine.high %v6120_v33, %v11559_v39  ;;  %v6044_v10 = vrot.slane %v6030_v0, %v11558_v55  ;;  %v5931_v47 = vrot.slane %v5917_v37, %v11557_v29 }
 0x5d5   : > { %v6142_v43 = vrot.slane %v6128_v63, %v11558_v55  ;;  %v5947_v20 = vcombine.high %v5931_v47, %v11559_v39 }
 0x5d7   : > { %6198 = vrot.lane.b32.xlu0 %v5816_v28, %s7639_s28  ;;  %6188 = vrot.lane.b32.xlu1 %v6093_v41, %s7637_s26  ;;  %v5819_v28 = vcombine.high %v5749_v30, %v11559_v39  ;;  %v5865_v41 = vcombine.high %v5848_v19, %v11559_v39  ;;  %v6159_v6 = vcombine.high %v6142_v43, %v11559_v39 }
 0x5d9   : > { %v5833_v59 = vrot.slane %v5819_v28, %v11557_v29 }
 0x5db   : > { %6202 = vrot.lane.b32.xlu0 %v6012_v45, %s7639_s28  ;;  %6200 = vrot.lane.b32.xlu1 %v5914_v51, %s7639_s28  ;;  %v6015_v45 = vcombine.high %v5757_v27, %v11559_v39  ;;  %v6061_v51 = vcombine.high %v6044_v10, %v11559_v39  ;;  %v5849_v26 = vcombine.high %v5833_v59, %v11559_v39 }
 0x5dd   : > { %v6029_v53 = vrot.slane %v6015_v45, %v11557_v29 }
 0x5df   : > { %6214 = vrot.lane.b32.xlu0 %v5807_v36, %s7638_s27  ;;  %6204 = vrot.lane.b32.xlu1 %v6110_v15, %s7639_s28  ;;  %v6113_v36 = vcombine.high %v5761_v8, %v11559_v39  ;;  %v5856_v15 = vrot.slane %v5833_v59, %v11558_v55  ;;  %v6045_v24 = vcombine.high %v6029_v53, %v11559_v39 }
 0x5e1   : > { %v6059_v42 = vrot.slane %v6045_v24, %v11558_v55 }
 0x5e3   : > { %6218 = vrot.lane.b32.xlu0 %v6003_v23, %s7638_s27  ;;  %6216 = vrot.lane.b32.xlu1 %v5905_v56, %s7638_s27  ;;  %v6127_v23 = vrot.slane %v6113_v36, %v11557_v29  ;;  %v6052_v56 = vrot.slane %v6029_v53, %v11558_v55 }
 0x5e5   : > { %v6150_v30 = vrot.slane %v6127_v23, %v11558_v55  ;;  %v6143_v48 = vcombine.high %v6127_v23, %v11559_v39 }
 0x5e7   : > { %6230 = vrot.lane.b32.xlu0 %v5817_v32, %s7640_s29  ;;  %6220 = vrot.lane.b32.xlu1 %v6101_v1, %s7638_s27  ;;  %v5954_v32 = vrot.slane %v5931_v47, %v11558_v55  ;;  %v5866_v1 = vcombine.high %v5856_v15, %v11559_v39  ;;  %v6157_v27 = vrot.slane %v6143_v48, %v11558_v55 }
 0x5eb   : > { %6234 = vrot.lane.b32.xlu0 %v6013_v14, %s7640_s29  ;;  %6232 = vrot.lane.b32.xlu1 %v5915_v34, %s7640_s29  ;;  %v6062_v14 = vcombine.high %v6052_v56, %v11559_v39  ;;  %v5964_v34 = vcombine.high %v5954_v32, %v11559_v39 }
 0x5ef   : > { %6246 = vrot.lane.b32.xlu0 %v5814_v25, %s7641_s30  ;;  %6236 = vrot.lane.b32.xlu1 %v6111_v35, %s7640_s29  ;;  %v5863_v25 = vrot.slane %v5849_v26, %v11558_v55  ;;  %v6160_v35 = vcombine.high %v6150_v30, %v11559_v39 }
 0x5f3   : > { %6250 = vrot.lane.b32.xlu0 %v6010_v2, %s7641_s30  ;;  %6248 = vrot.lane.b32.xlu1 %v5912_v16, %s7641_s30  ;;  %v5961_v2 = vrot.slane %v5947_v20, %v11558_v55  ;;  %v5867_v16 = vcombine.high %v5863_v25, %v11559_v39 }
 0x5f5   : > { %v5965_v5 = vcombine.high %v5961_v2, %v11559_v39 }
 0x5f7   : > { %6262 = vrot.lane.b32.xlu0 %v5818_v13, %s7642_s2  ;;  %6252 = vrot.lane.b32.xlu1 %v6108_v3, %s7641_s30  ;;  %v11560_v13 = vld [vmem:[#allocation22_spill] sm:$0xff] }
 0x5f8   : > { %v6528_v3 = vld [vmem:[#allocation2 + $0x1a] sm:$0xff] }
 0x5fb   : > { %6266 = vrot.lane.b32.xlu0 %v6014_v18, %s7642_s2  ;;  %6264 = vrot.lane.b32.xlu1 %v5916_v40, %s7642_s2  ;;  %v6530_v18 = vld [vmem:[#allocation2 + $0x32] sm:$0xff] }
 0x5fc   : > { %v11562_v40 = vld [vmem:[#allocation9_spill] sm:$0xff] }
 0x5ff   : > { %6278 = vrot.lane.b32.xlu0 %v5864_v38, %s7636_s25  ;;  %6268 = vrot.lane.b32.xlu1 %v6112_v31, %s7642_s2  ;;  %v6532_v38 = vld [vmem:[#allocation2 + $0x4a] sm:$0xff] }
 0x600   : > { %v11563_v31 = vld [vmem:[#allocation28_spill] sm:$0xff] }
 0x603   : > { %6282 = vrot.lane.b32.xlu0 %v6060_v46, %s7636_s25  ;;  %6280 = vrot.lane.b32.xlu1 %v5962_v17, %s7636_s25  ;;  %v6063_v17 = vcombine.high %v6059_v42, %v11559_v39 }
 0x607   : > { %6294 = vrot.lane.b32.xlu0 %v5848_v19, %s7637_s26  ;;  %6284 = vrot.lane.b32.xlu1 %v6158_v61, %s7636_s25  ;;  %v6161_v61 = vcombine.high %v6157_v27, %v11559_v39 }
 0x60b   : > { %6298 = vrot.lane.b32.xlu0 %v6044_v10, %s7637_s26  ;;  %6296 = vrot.lane.b32.xlu1 %v5946_v12, %s7637_s26 }
 0x60f   : > { %6310 = vrot.lane.b32.xlu0 %v5865_v41, %s7639_s28  ;;  %6300 = vrot.lane.b32.xlu1 %v6142_v43, %s7637_s26 }
 0x613   : > { %6314 = vrot.lane.b32.xlu0 %v6061_v51, %s7639_s28  ;;  %6312 = vrot.lane.b32.xlu1 %v5963_v7, %s7639_s28 }
 0x617   : > { %6326 = vrot.lane.b32.xlu0 %v5856_v15, %s7638_s27  ;;  %6316 = vrot.lane.b32.xlu1 %v6159_v6, %s7639_s28 }
 0x61b   : > { %6330 = vrot.lane.b32.xlu0 %v6052_v56, %s7638_s27  ;;  %6328 = vrot.lane.b32.xlu1 %v5954_v32, %s7638_s27 }
 0x61f   : > { %6342 = vrot.lane.b32.xlu0 %v5866_v1, %s7640_s29  ;;  %6332 = vrot.lane.b32.xlu1 %v6150_v30, %s7638_s27 }
 0x623   : > { %6346 = vrot.lane.b32.xlu0 %v6062_v14, %s7640_s29  ;;  %6344 = vrot.lane.b32.xlu1 %v5964_v34, %s7640_s29 }
 0x627   : > { %6358 = vrot.lane.b32.xlu0 %v5863_v25, %s7641_s30  ;;  %6348 = vrot.lane.b32.xlu1 %v6160_v35, %s7640_s29 }
 0x62b   : > { %6362 = vrot.lane.b32.xlu0 %v6059_v42, %s7641_s30  ;;  %6360 = vrot.lane.b32.xlu1 %v5961_v2, %s7641_s30 }
 0x62f   : > { %6374 = vrot.lane.b32.xlu0 %v5867_v16, %s7642_s2  ;;  %6364 = vrot.lane.b32.xlu1 %v6157_v27, %s7641_s30 }
 0x633   : > { %6544 = vrot.lane.b32.xlu0 %v11560_v13, %s7643_s3  ;;  %6542 = vrot.lane.b32.xlu1 %v6526_v9, %s7643_s3 }
 0x635   : > { %v10802_v54 = vpop.permute.xlu0 %6166 }
 0x637   : > { %6548 = vrot.lane.b32.xlu0 %v11561_v11, %s7643_s3  ;;  %6546 = vrot.lane.b32.xlu1 %v6528_v3, %s7643_s3 }
 0x639   : > { %v10807_v8 = vpop.permute.xlu1 %6168 }
 0x63b   : > { %6552 = vrot.lane.b32.xlu0 %v11562_v40, %s7643_s3  ;;  %6550 = vrot.lane.b32.xlu1 %v6530_v18, %s7643_s3 }
 0x63d   : > { %v6171_v33 = vpop.permute.xlu0 %6170 }
 0x63e   : > { %v6388_v23 = vsel %vm868_vm4, %v10633_v22, %v6171_v33 }
 0x63f   : > { %6556 = vrot.lane.b32.xlu0 %v11563_v31, %s7643_s3  ;;  %6554 = vrot.lane.b32.xlu1 %v6532_v38, %s7643_s3 }
 0x641   : > { %v6173_v4 = vpop.permute.xlu1 %6172  ;;  %v10812_v46 = vpop.permute.xlu0 %6182 }
 0x642   : > { %v6389_v14 = vsel %vm868_vm4, %v10641_v58, %v6173_v4 }
 0x643   : > { %6378 = vrot.lane.b32.xlu0 %v6063_v17, %s7642_s2  ;;  %6376 = vrot.lane.b32.xlu1 %v5965_v5, %s7642_s2 }
 0x645   : > { %v10818_v0 = vpop.permute.xlu1 %6184  ;;  %v6187_v19 = vpop.permute.xlu0 %6186 }
 0x646   : > { %v6392_v56 = vsel %vm873_vm5, %v6388_v23, %v6187_v19 }
 0x647   : > { %6380 = vrot.lane.b32.xlu1 %v6161_v61, %s7642_s2 }
 0x649   : > { %v6189_v63 = vpop.permute.xlu1 %6188  ;;  %v6199_v10 = vpop.permute.xlu0 %6198 }
 0x64a   : > { %v6393_v20 = vsel %vm873_vm5, %v6389_v14, %v6189_v63 }
 0x64d   : > { %v10822_v12 = vpop.permute.xlu1 %6200  ;;  %v6203_v28 = vpop.permute.xlu0 %6202 }
 0x64e   : > { %v6396_v30 = vsel %vm878_vm6, %v6392_v56, %v6203_v28 }
 0x651   : > { %v6205_v41 = vpop.permute.xlu1 %6204  ;;  %v6215_v43 = vpop.permute.xlu0 %6214 }
 0x652   : > { %v6397_v35 = vsel %vm878_vm6, %v6393_v20, %v6205_v41 }
 0x655   : > { %v10824_v37 = vpop.permute.xlu1 %6216  ;;  %v6219_v59 = vpop.permute.xlu0 %6218 }
 0x656   : > { %v6400_v26 = vsel %vm883_vm7, %v6396_v30, %v6219_v59 }
 0x659   : > { %v6221_v45 = vpop.permute.xlu1 %6220  ;;  %v6231_v51 = vpop.permute.xlu0 %6230 }
 0x65a   : > { %v6401_v42 = vsel %vm883_vm7, %v6397_v35, %v6221_v45 }
 0x65d   : > { %v10826_v7 = vpop.permute.xlu1 %6232  ;;  %v6235_v47 = vpop.permute.xlu0 %6234 }
 0x65e   : > { %v6404_v34 = vsel %vm888_vm8, %v6400_v26, %v6235_v47 }
 0x661   : > { %v6237_v53 = vpop.permute.xlu1 %6236  ;;  %v6247_v36 = vpop.permute.xlu0 %6246 }
 0x662   : > { %v6405_v2 = vsel %vm888_vm8, %v6401_v42, %v6237_v53 }
 0x665   : > { %v10828_v15 = vpop.permute.xlu1 %6248  ;;  %v6251_v6 = vpop.permute.xlu0 %6250 }
 0x666   : > { %v6408_v24 = vsel %vm893_vm9, %v6404_v34, %v6251_v6  ;;  %v6386_v6 = vsel %vm868_vm4, %v10609_v49, %v10802_v54 }
 0x667   : > { %v6390_v56 = vsel %vm873_vm5, %v6386_v6, %v10812_v46 }
 0x668   : > { %v6394_v14 = vsel %vm878_vm6, %v6390_v56, %v6199_v10 }
 0x669   : > { %v6253_v32 = vpop.permute.xlu1 %6252  ;;  %v6263_v1 = vpop.permute.xlu0 %6262  ;;  %v6398_v20 = vsel %vm883_vm7, %v6394_v14, %v6215_v43 }
 0x66a   : > { %v6409_v58 = vsel %vm893_vm9, %v6405_v2, %v6253_v32 }
 0x66d   : > { %v10840_v25 = vpop.permute.xlu1 %6264  ;;  %v6267_v22 = vpop.permute.xlu0 %6266 }
 0x66e   : > { %v10844_v48 = vsel %vm898_vm10, %v6408_v24, %v6267_v22 }
 0x671   : > { %v6269_v16 = vpop.permute.xlu1 %6268  ;;  %v6279_v27 = vpop.permute.xlu0 %6278 }
 0x672   : > { %v10850_v9 = vsel %vm898_vm10, %v6409_v58, %v6269_v16  ;;  %v6414_v23 = vsel %vm868_vm4, %v10707_v52, %v6279_v27  ;;  %v6402_v52 = vsel %vm888_vm8, %v6398_v20, %v6231_v51 }
 0x673   : > { %v6406_v46 = vsel %vm893_vm9, %v6402_v52, %v6247_v36 }
 0x674   : > { %v6410_v42 = vsel %vm898_vm10, %v6406_v46, %v6263_v1 }
 0x675   : > { %v10852_v13 = vpop.permute.xlu1 %6280  ;;  %v10854_v3 = vpop.permute.xlu0 %6282 }
 0x679   : > { %v10856_v11 = vpop.permute.xlu1 %6284  ;;  %v6295_v18 = vpop.permute.xlu0 %6294 }
 0x67a   : > { %v6418_v32 = vsel %vm873_vm5, %v6414_v23, %v6295_v18  ;;  %v6387_v23 = vsel %vm868_vm4, %v10626_v60, %v10807_v8  ;;  %v6415_v60 = vsel %vm868_vm4, %v10715_v21, %v10852_v13 }
 0x67d   : > { %v10858_v40 = vpop.permute.xlu1 %6296  ;;  %v10860_v33 = vpop.permute.xlu0 %6298 }
 0x681   : > { %v10862_v38 = vpop.permute.xlu1 %6300  ;;  %v6311_v31 = vpop.permute.xlu0 %6310 }
 0x682   : > { %v6422_v34 = vsel %vm878_vm6, %v6418_v32, %v6311_v31  ;;  %v6391_v32 = vsel %vm873_vm5, %v6387_v23, %v10818_v0  ;;  %v6416_v0 = vsel %vm868_vm4, %v10718_v44, %v10854_v3 }
 0x683   : > { %v6420_v21 = vsel %vm873_vm5, %v6416_v0, %v10860_v33 }
 0x685   : > { %v10864_v4 = vpop.permute.xlu1 %6312  ;;  %v10866_v17 = vpop.permute.xlu0 %6314 }
 0x689   : > { %v10868_v5 = vpop.permute.xlu1 %6316  ;;  %v6327_v19 = vpop.permute.xlu0 %6326 }
 0x68a   : > { %v6426_v49 = vsel %vm883_vm7, %v6422_v34, %v6327_v19  ;;  %v6395_v34 = vsel %vm878_vm6, %v6391_v32, %v10822_v12  ;;  %v6417_v12 = vsel %vm868_vm4, %v10728_v62, %v10856_v11  ;;  %v6424_v11 = vsel %vm878_vm6, %v6420_v21, %v10866_v17 }
 0x68b   : > { %v6399_v52 = vsel %vm883_vm7, %v6395_v34, %v10824_v37  ;;  %v6419_v37 = vsel %vm873_vm5, %v6415_v60, %v10858_v40  ;;  %v6421_v13 = vsel %vm873_vm5, %v6417_v12, %v10862_v38 }
 0x68c   : > { %v6403_v62 = vsel %vm888_vm8, %v6399_v52, %v10826_v7  ;;  %v6423_v3 = vsel %vm878_vm6, %v6419_v37, %v10864_v4  ;;  %v6425_v40 = vsel %vm878_vm6, %v6421_v13, %v10868_v5 }
 0x68d   : > { %v10870_v61 = vpop.permute.xlu1 %6328  ;;  %v10872_v63 = vpop.permute.xlu0 %6330  ;;  %v6407_v4 = vsel %vm893_vm9, %v6403_v62, %v10828_v15 }
 0x68e   : > { %v6427_v38 = vsel %vm883_vm7, %v6423_v3, %v10870_v61  ;;  %v6411_v15 = vsel %vm898_vm10, %v6407_v4, %v10840_v25 }
 0x691   : > { %v10874_v28 = vpop.permute.xlu1 %6332  ;;  %v6343_v41 = vpop.permute.xlu0 %6342 }
 0x692   : > { %v6430_v54 = vsel %vm888_vm8, %v6426_v49, %v6343_v41 }
 0x695   : > { %v10876_v59 = vpop.permute.xlu1 %6344  ;;  %v10878_v45 = vpop.permute.xlu0 %6346 }
 0x696   : > { %v6431_v17 = vsel %vm888_vm8, %v6427_v38, %v10876_v59 }
 0x699   : > { %v10880_v47 = vpop.permute.xlu1 %6348  ;;  %v6359_v53 = vpop.permute.xlu0 %6358 }
 0x69a   : > { %v6434_v24 = vsel %vm893_vm9, %v6430_v54, %v6359_v53 }
 0x69d   : > { %v10890_v30 = vpop.permute.xlu1 %6360  ;;  %v10892_v26 = vpop.permute.xlu0 %6362 }
 0x69e   : > { %v6435_v59 = vsel %vm893_vm9, %v6431_v17, %v10890_v30 }
 0x6a1   : > { %v6365_v22 = vpop.permute.xlu1 %6364  ;;  %v6375_v35 = vpop.permute.xlu0 %6374 }
 0x6a2   : > { %v6438_v10 = vsel %vm898_vm10, %v6434_v24, %v6375_v35  ;;  %v6428_v24 = vsel %vm883_vm7, %v6424_v11, %v10872_v63  ;;  %v6429_v35 = vsel %vm883_vm7, %v6425_v40, %v10874_v28 }
 0x6a3   : > { %v6450_v2 = vcombine.low %v6410_v42, %v6438_v10  ;;  %v6432_v5 = vsel %vm888_vm8, %v6428_v24, %v10878_v45  ;;  %v6433_v61 = vsel %vm888_vm8, %v6429_v35, %v10880_v47 }
 0x6a4   : > { %v6436_v45 = vsel %vm893_vm9, %v6432_v5, %v10892_v26  ;;  %v6437_v47 = vsel %vm893_vm9, %v6433_v61, %v6365_v22 }
 0x6a5   : > { %v6457_v43 = vrot.slane %v6450_v2, %v11535_v57  ;;  %v10905_v58 = vpop.permute.xlu1 %6542  ;;  %v10907_v16 = vpop.permute.xlu0 %6544 }
 0x6a6   : > { %v6573_v51 = vrot.slane %v10905_v58, %v11557_v29  ;;  %v6622_v38 = vrot.slane %v10907_v16, %v11557_v29 }
 0x6a7   : > { %v6464_v36 = vrot.slane %v6457_v43, %v11535_v57 }
 0x6a8   : > { %v10913_v27 = vrot.slane %v6573_v51, %v11558_v55  ;;  %v6581_v46 = vcombine.high %v6573_v51, %v11559_v39  ;;  %v11091_v17 = vrot.slane %v6622_v38, %v11558_v55 }
 0x6a9   : > { %7461 = vst.msk [vmem:[%s8608_s6 + $0x7] ss:$8 sm:$0x3] %vm8582_vm11, %v6464_v36  ;;  %v10918_v1 = vpop.permute.xlu1 %6546  ;;  %v10920_v18 = vpop.permute.xlu0 %6548 }
 0x6aa   : > { %v6611_v31 = vcombine.high %v10913_v27, %v11559_v39  ;;  %v6671_v19 = vrot.slane %v10918_v1, %v11557_v29  ;;  %v6595_v28 = vrot.slane %v6581_v46, %v11558_v55  ;;  %v6664_v12 = vcombine.high %v10918_v1, %v11559_v39 }
 0x6ab   : > { %v6720_v24 = vrot.slane %v10920_v18, %v11557_v29 }
 0x6ac   : > { %6962 = vrot.lane.b32.xlu0 %v6611_v31, %s7636_s25  ;;  %v10932_v6 = vrot.slane %v6671_v19, %v11558_v55  ;;  %v6679_v42 = vcombine.high %v6671_v19, %v11559_v39  ;;  %v6612_v0 = vcombine.high %v6595_v28, %v11559_v39  ;;  %v11057_v46 = vrot.slane %v6664_v12, %v11557_v29 }
 0x6ad   : > { %v10927_v41 = vpop.permute.xlu1 %6550  ;;  %v10929_v53 = vpop.permute.xlu0 %6552  ;;  %v11097_v61 = vrot.slane %v6720_v24, %v11558_v55 }
 0x6ae   : > { %v6769_v56 = vrot.slane %v10927_v41, %v11557_v29  ;;  %v6709_v14 = vcombine.high %v10932_v6, %v11559_v39  ;;  %v6693_v30 = vrot.slane %v6679_v42, %v11558_v55  ;;  %v6762_v37 = vcombine.high %v10927_v41, %v11559_v39 }
 0x6af   : > { %v6701_v62 = vrot.slane %v11057_v46, %v11558_v55 }
 0x6b0   : > { %v10955_v8 = vrot.slane %v6769_v56, %v11558_v55  ;;  %6964 = vrot.lane.b32.xlu1 %v6709_v14, %s7636_s25  ;;  %v6777_v10 = vcombine.high %v6769_v56, %v11559_v39  ;;  %v6710_v21 = vcombine.high %v6693_v30, %v11559_v39 }
 0x6b1   : > { %v10945_v20 = vpop.permute.xlu1 %6554  ;;  %v10947_v49 = vpop.permute.xlu0 %6556  ;;  %v6711_v4 = vcombine.high %v6701_v62, %v11559_v39 }
 0x6b2   : > { %v6867_v54 = vrot.slane %v10945_v20, %v11557_v29  ;;  %v6807_v44 = vcombine.high %v10955_v8, %v11559_v39  ;;  %v6791_v26 = vrot.slane %v6777_v10, %v11558_v55  ;;  %v6860_v1 = vcombine.high %v10945_v20, %v11559_v39 }
 0x6b3   : > { %v6660_v10 = vcombine.high %v11091_v17, %v11559_v39 }
 0x6b4   : > { %v10990_v7 = vrot.slane %v6867_v54, %v11558_v55  ;;  %6966 = vrot.lane.b32.xlu0 %v6807_v44, %s7636_s25  ;;  %v6875_v22 = vcombine.high %v6867_v54, %v11559_v39  ;;  %v6808_v54 = vcombine.high %v6791_v26, %v11559_v39  ;;  %v11060_v44 = vrot.slane %v6762_v37, %v11557_v29 }
 0x6b5   : > { %v6377_v33 = vpop.permute.xlu1 %6376  ;;  %v6379_v63 = vpop.permute.xlu0 %6378  ;;  %v11072_v11 = vrot.slane %v6860_v1, %v11557_v29 }
 0x6b6   : > { %v6905_v2 = vcombine.high %v10990_v7, %v11559_v39  ;;  %v6439_v51 = vsel %vm898_vm10, %v6435_v59, %v6377_v33  ;;  %v6440_v36 = vsel %vm898_vm10, %v6436_v45, %v6379_v63  ;;  %v6889_v60 = vrot.slane %v6875_v22, %v11558_v55 }
 0x6b7   : > { %v6465_v25 = vcombine.low %v6411_v15, %v6439_v51  ;;  %v6480_v19 = vcombine.low %v10844_v48, %v6440_v36  ;;  %v6566_v48 = vcombine.high %v10905_v58, %v11559_v39  ;;  %v6799_v3 = vrot.slane %v11060_v44, %v11558_v55 }
 0x6b8   : > { %6978 = vrot.lane.b32.xlu0 %v6595_v28, %s7637_s26  ;;  %6968 = vrot.lane.b32.xlu1 %v6905_v2, %s7636_s25  ;;  %v6906_v41 = vcombine.high %v6889_v60, %v11559_v39  ;;  %v6897_v20 = vrot.slane %v11072_v11, %v11558_v55  ;;  %v6818_v63 = vrot.slane %v10929_v53, %v11557_v29 }
 0x6b9   : > { %v6381_v43 = vpop.permute.xlu1 %6380  ;;  %v6472_v56 = vrot.slane %v6465_v25, %v11535_v57  ;;  %v6487_v32 = vrot.slane %v6480_v19, %v11535_v57  ;;  %v6580_v58 = vrot.slane %v6566_v48, %v11557_v29  ;;  %v6809_v35 = vcombine.high %v6799_v3, %v11559_v39 }
 0x6ba   : > { %v6441_v31 = vsel %vm898_vm10, %v6437_v47, %v6381_v43  ;;  %v6916_v28 = vrot.slane %v10947_v49, %v11557_v29  ;;  %v6907_v42 = vcombine.high %v6897_v20, %v11559_v39  ;;  %v6758_v2 = vcombine.high %v11097_v61, %v11559_v39 }
 0x6bb   : > { %v6495_v23 = vcombine.low %v10850_v9, %v6441_v31  ;;  %v6479_v34 = vrot.slane %v6472_v56, %v11535_v57  ;;  %v6494_v52 = vrot.slane %v6487_v32, %v11535_v57  ;;  %v6603_v13 = vrot.slane %v6580_v58, %v11558_v55 }
 0x6bc   : > { %6982 = vrot.lane.b32.xlu0 %v6791_v26, %s7637_s26  ;;  %6980 = vrot.lane.b32.xlu1 %v6693_v30, %s7637_s26  ;;  %v6596_v33 = vcombine.high %v6580_v58, %v11559_v39  ;;  %v11112_v15 = vrot.slane %v6818_v63, %v11558_v55  ;;  %v11115_v59 = vrot.slane %v6916_v28, %v11558_v55 }
 0x6bd   : > { %v6502_v14 = vrot.slane %v6495_v23, %v11535_v57  ;;  %7462 = vst.msk [vmem:[%s8608_s6 + $0x27] ss:$8 sm:$0x3] %vm8582_vm11, %v6479_v34  ;;  %7463 = vst.msk [vmem:[%s8608_s6 + $0x47] ss:$8 sm:$0x3] %vm8582_vm11, %v6494_v52  ;;  %v6613_v40 = vcombine.high %v6603_v13, %v11559_v39  ;;  %v6630_v45 = vcombine.high %v6622_v38, %v11559_v39 }
 0x6be   : > { %v11094_v5 = vrot.slane %v6596_v33, %v11558_v55  ;;  %v6728_v47 = vcombine.high %v6720_v24, %v11559_v39  ;;  %v6856_v43 = vcombine.high %v11112_v15, %v11559_v39  ;;  %v6954_v51 = vcombine.high %v11115_v59, %v11559_v39 }
 0x6bf   : > { %v6509_v9 = vrot.slane %v6502_v14, %v11535_v57  ;;  %v6644_v36 = vrot.slane %v6630_v45, %v11558_v55  ;;  %v6826_v25 = vcombine.high %v6818_v63, %v11559_v39  ;;  %v6924_v19 = vcombine.high %v6916_v28, %v11559_v39 }
 0x6c0   : > { %6994 = vrot.lane.b32.xlu0 %v6612_v0, %s7639_s28  ;;  %6984 = vrot.lane.b32.xlu1 %v6889_v60, %s7637_s26  ;;  %v6742_v31 = vrot.slane %v6728_v47, %v11558_v55  ;;  %v6615_v22 = vcombine.high %v10907_v16, %v11559_v39  ;;  %v6713_v23 = vcombine.high %v10920_v18, %v11559_v39 }
 0x6c1   : > { %7464 = vst.msk [vmem:[%s8608_s6 + $0x67] ss:$8 sm:$0x3] %vm8582_vm11, %v6509_v9  ;;  %v6840_v30 = vrot.slane %v6826_v25, %v11558_v55  ;;  %v6938_v26 = vrot.slane %v6924_v19, %v11558_v55  ;;  %v6661_v56 = vcombine.high %v6644_v36, %v11559_v39  ;;  %v6811_v34 = vcombine.high %v10929_v53, %v11559_v39 }
 0x6c2   : > { %v6759_v32 = vcombine.high %v6742_v31, %v11559_v39  ;;  %v6629_v14 = vrot.slane %v6615_v22, %v11557_v29  ;;  %v6727_v48 = vrot.slane %v6713_v23, %v11557_v29  ;;  %v6909_v16 = vcombine.high %v10947_v49, %v11559_v39 }
 0x6c3   : > { %v6857_v18 = vcombine.high %v6840_v30, %v11559_v39  ;;  %v6955_v52 = vcombine.high %v6938_v26, %v11559_v39  ;;  %v6825_v0 = vrot.slane %v6811_v34, %v11557_v29  ;;  %v6614_v24 = vcombine.high %v11094_v5, %v11559_v39 }
 0x6c4   : > { %6998 = vrot.lane.b32.xlu0 %v6808_v54, %s7639_s28  ;;  %6996 = vrot.lane.b32.xlu1 %v6710_v21, %s7639_s28  ;;  %v6652_v60 = vrot.slane %v6629_v14, %v11558_v55  ;;  %v6750_v9 = vrot.slane %v6727_v48, %v11558_v55  ;;  %v6923_v58 = vrot.slane %v6909_v16, %v11557_v29 }
 0x6c5   : > { %v6848_v53 = vrot.slane %v6825_v0, %v11558_v55  ;;  %v6694_v29 = vcombine.high %v11057_v46, %v11559_v39  ;;  %v6792_v54 = vcombine.high %v11060_v44, %v11559_v39  ;;  %v6645_v1 = vcombine.high %v6629_v14, %v11559_v39 }
 0x6c6   : > { %v6946_v49 = vrot.slane %v6923_v58, %v11558_v55  ;;  %v6662_v12 = vcombine.high %v6652_v60, %v11559_v39  ;;  %v6760_v37 = vcombine.high %v6750_v9, %v11559_v39  ;;  %v6743_v44 = vcombine.high %v6727_v48, %v11559_v39 }
 0x6c7   : > { %v6858_v21 = vcombine.high %v6848_v53, %v11559_v39  ;;  %v6806_v46 = vrot.slane %v6792_v54, %v11558_v55 }
 0x6c8   : > { %7010 = vrot.lane.b32.xlu0 %v6603_v13, %s7638_s27  ;;  %7000 = vrot.lane.b32.xlu1 %v6906_v41, %s7639_s28  ;;  %v6956_v13 = vcombine.high %v6946_v49, %v11559_v39  ;;  %v6890_v41 = vcombine.high %v11072_v11, %v11559_v39  ;;  %v6939_v11 = vcombine.high %v6923_v58, %v11559_v39 }
 0x6c9   : > { %v6757_v33 = vrot.slane %v6743_v44, %v11558_v55 }
 0x6cc   : > { %7014 = vrot.lane.b32.xlu0 %v6799_v3, %s7638_s27  ;;  %7012 = vrot.lane.b32.xlu1 %v6701_v62, %s7638_s27  ;;  %v6708_v62 = vrot.slane %v6694_v29, %v11558_v55  ;;  %v6841_v3 = vcombine.high %v6825_v0, %v11559_v39 }
 0x6ce   : > { %v6855_v38 = vrot.slane %v6841_v3, %v11558_v55  ;;  %v6712_v63 = vcombine.high %v6708_v62, %v11559_v39 }
 0x6d0   : > { %7026 = vrot.lane.b32.xlu0 %v6613_v40, %s7640_s29  ;;  %7016 = vrot.lane.b32.xlu1 %v6897_v20, %s7638_s27  ;;  %v6904_v20 = vrot.slane %v6890_v41, %v11558_v55  ;;  %v6659_v40 = vrot.slane %v6645_v1, %v11558_v55 }
 0x6d2   : > { %v6663_v28 = vcombine.high %v6659_v40, %v11559_v39 }
 0x6d4   : > { %7030 = vrot.lane.b32.xlu0 %v6809_v35, %s7640_s29  ;;  %7028 = vrot.lane.b32.xlu1 %v6711_v4, %s7640_s29  ;;  %v6953_v35 = vrot.slane %v6939_v11, %v11558_v55  ;;  %v6810_v4 = vcombine.high %v6806_v46, %v11559_v39  ;;  %v6859_v55 = vcombine.high %v6855_v38, %v11559_v39 }
 0x6d8   : > { %7042 = vrot.lane.b32.xlu0 %v11094_v5, %s7641_s30  ;;  %7032 = vrot.lane.b32.xlu1 %v6907_v42, %s7640_s29  ;;  %v6908_v42 = vcombine.high %v6904_v20, %v11559_v39  ;;  %v6761_v5 = vcombine.high %v6757_v33, %v11559_v39 }
 0x6dc   : > { %7074 = vrot.lane.b32.xlu1 %v6660_v10, %s7636_s25  ;;  %7076 = vrot.lane.b32.xlu0 %v6758_v2, %s7636_s25  ;;  %v6957_v10 = vcombine.high %v6953_v35, %v11559_v39 }
 0x6e0   : > { %7078 = vrot.lane.b32.xlu1 %v6856_v43, %s7636_s25  ;;  %7080 = vrot.lane.b32.xlu0 %v6954_v51, %s7636_s25 }
 0x6e4   : > { %7090 = vrot.lane.b32.xlu1 %v6644_v36, %s7637_s26  ;;  %7092 = vrot.lane.b32.xlu0 %v6742_v31, %s7637_s26 }
 0x6e8   : > { %7094 = vrot.lane.b32.xlu1 %v6840_v30, %s7637_s26  ;;  %7096 = vrot.lane.b32.xlu0 %v6938_v26, %s7637_s26 }
 0x6ec   : > { %7106 = vrot.lane.b32.xlu1 %v6661_v56, %s7639_s28  ;;  %7108 = vrot.lane.b32.xlu0 %v6759_v32, %s7639_s28 }
 0x6f0   : > { %7110 = vrot.lane.b32.xlu1 %v6857_v18, %s7639_s28  ;;  %7112 = vrot.lane.b32.xlu0 %v6955_v52, %s7639_s28 }
 0x6f4   : > { %7122 = vrot.lane.b32.xlu1 %v6652_v60, %s7638_s27  ;;  %7124 = vrot.lane.b32.xlu0 %v6750_v9, %s7638_s27 }
 0x6f8   : > { %7126 = vrot.lane.b32.xlu1 %v6848_v53, %s7638_s27  ;;  %7128 = vrot.lane.b32.xlu0 %v6946_v49, %s7638_s27 }
 0x6fc   : > { %7138 = vrot.lane.b32.xlu1 %v6662_v12, %s7640_s29  ;;  %7140 = vrot.lane.b32.xlu0 %v6760_v37, %s7640_s29 }
 0x700   : > { %7142 = vrot.lane.b32.xlu1 %v6858_v21, %s7640_s29  ;;  %7144 = vrot.lane.b32.xlu0 %v6956_v13, %s7640_s29 }
 0x704   : > { %7044 = vrot.lane.b32.xlu1 %v6708_v62, %s7641_s30  ;;  %7046 = vrot.lane.b32.xlu0 %v6806_v46, %s7641_s30 }
 0x708   : > { %7048 = vrot.lane.b32.xlu1 %v6904_v20, %s7641_s30  ;;  %7154 = vrot.lane.b32.xlu0 %v6659_v40, %s7641_s30 }
 0x70c   : > { %7156 = vrot.lane.b32.xlu1 %v6757_v33, %s7641_s30  ;;  %7158 = vrot.lane.b32.xlu0 %v6855_v38, %s7641_s30 }
 0x710   : > { %7058 = vrot.lane.b32.xlu0 %v6614_v24, %s7642_s2  ;;  %7160 = vrot.lane.b32.xlu1 %v6953_v35, %s7641_s30 }
 0x714   : > { %7062 = vrot.lane.b32.xlu0 %v6810_v4, %s7642_s2  ;;  %7060 = vrot.lane.b32.xlu1 %v6712_v63, %s7642_s2 }
 0x718   : > { %7170 = vrot.lane.b32.xlu0 %v6663_v28, %s7642_s2  ;;  %7064 = vrot.lane.b32.xlu1 %v6908_v42, %s7642_s2 }
 0x71c   : > { %7174 = vrot.lane.b32.xlu0 %v6859_v55, %s7642_s2  ;;  %7172 = vrot.lane.b32.xlu1 %v6761_v5, %s7642_s2 }
 0x71e   : > { %v6963_v2 = vpop.permute.xlu0 %6962 }
 0x71f   : > { %v7182_v43 = vsel %vm868_vm4, %v10913_v27, %v6963_v2 }
 0x720   : > { %7176 = vrot.lane.b32.xlu1 %v6957_v10, %s7642_s2 }
 0x722   : > { %v6965_v45 = vpop.permute.xlu1 %6964 }
 0x723   : > { %v7183_v25 = vsel %vm868_vm4, %v10932_v6, %v6965_v45 }
 0x726   : > { %v6967_v47 = vpop.permute.xlu0 %6966 }
 0x727   : > { %v7184_v19 = vsel %vm868_vm4, %v10955_v8, %v6967_v47 }
 0x72a   : > { %v6969_v51 = vpop.permute.xlu1 %6968  ;;  %v6979_v36 = vpop.permute.xlu0 %6978 }
 0x72b   : > { %v7186_v31 = vsel %vm873_vm5, %v7182_v43, %v6979_v36  ;;  %v7185_v23 = vsel %vm868_vm4, %v10990_v7, %v6969_v51 }
 0x72e   : > { %v6981_v30 = vpop.permute.xlu1 %6980  ;;  %v6983_v39 = vpop.permute.xlu0 %6982 }
 0x72f   : > { %v7187_v26 = vsel %vm873_vm5, %v7183_v25, %v6981_v30  ;;  %v7188_v22 = vsel %vm873_vm5, %v7184_v19, %v6983_v39 }
 0x732   : > { %v6985_v27 = vpop.permute.xlu1 %6984  ;;  %v6995_v56 = vpop.permute.xlu0 %6994 }
 0x733   : > { %v7189_v32 = vsel %vm873_vm5, %v7185_v23, %v6985_v27  ;;  %v7190_v14 = vsel %vm878_vm6, %v7186_v31, %v6995_v56 }
 0x736   : > { %v6997_v48 = vpop.permute.xlu1 %6996  ;;  %v6999_v6 = vpop.permute.xlu0 %6998 }
 0x737   : > { %v7191_v34 = vsel %vm878_vm6, %v7187_v26, %v6997_v48  ;;  %v7192_v8 = vsel %vm878_vm6, %v7188_v22, %v6999_v6 }
 0x73a   : > { %v7001_v16 = vpop.permute.xlu1 %7000  ;;  %v7011_v18 = vpop.permute.xlu0 %7010 }
 0x73b   : > { %v7193_v52 = vsel %vm878_vm6, %v7189_v32, %v7001_v16  ;;  %v7194_v60 = vsel %vm883_vm7, %v7190_v14, %v7011_v18 }
 0x73e   : > { %v7013_v9 = vpop.permute.xlu1 %7012  ;;  %v7015_v7 = vpop.permute.xlu0 %7014 }
 0x73f   : > { %v7195_v0 = vsel %vm883_vm7, %v7191_v34, %v7013_v9  ;;  %v7196_v58 = vsel %vm883_vm7, %v7192_v8, %v7015_v7 }
 0x742   : > { %v7017_v53 = vpop.permute.xlu1 %7016  ;;  %v7027_v49 = vpop.permute.xlu0 %7026 }
 0x743   : > { %v7197_v12 = vsel %vm883_vm7, %v7193_v52, %v7017_v53  ;;  %v7198_v37 = vsel %vm888_vm8, %v7194_v60, %v7027_v49 }
 0x746   : > { %v7029_v29 = vpop.permute.xlu1 %7028  ;;  %v7031_v54 = vpop.permute.xlu0 %7030 }
 0x747   : > { %v7199_v21 = vsel %vm888_vm8, %v7195_v0, %v7029_v29  ;;  %v7200_v13 = vsel %vm888_vm8, %v7196_v58, %v7031_v54 }
 0x74a   : > { %v7033_v1 = vpop.permute.xlu1 %7032  ;;  %v7043_v41 = vpop.permute.xlu0 %7042 }
 0x74b   : > { %v11238_v62 = vsel %vm888_vm8, %v7197_v12, %v7033_v1  ;;  %v7202_v14 = vsel %vm893_vm9, %v7198_v37, %v7043_v41 }
 0x74e   : > { %v7075_v46 = vpop.permute.xlu1 %7074  ;;  %v7077_v44 = vpop.permute.xlu0 %7076 }
 0x74f   : > { %v7210_v26 = vsel %vm868_vm4, %v11091_v17, %v7075_v46  ;;  %v7211_v48 = vsel %vm868_vm4, %v11097_v61, %v7077_v44 }
 0x752   : > { %v7079_v3 = vpop.permute.xlu1 %7078  ;;  %v7081_v20 = vpop.permute.xlu0 %7080 }
 0x753   : > { %v7212_v6 = vsel %vm868_vm4, %v11112_v15, %v7079_v3  ;;  %v7213_v17 = vsel %vm868_vm4, %v11115_v59, %v7081_v20 }
 0x756   : > { %v7091_v40 = vpop.permute.xlu1 %7090  ;;  %v7093_v11 = vpop.permute.xlu0 %7092 }
 0x757   : > { %v7214_v22 = vsel %vm873_vm5, %v7210_v26, %v7091_v40  ;;  %v7215_v8 = vsel %vm873_vm5, %v7211_v48, %v7093_v11 }
 0x75a   : > { %v7095_v33 = vpop.permute.xlu1 %7094  ;;  %v7097_v38 = vpop.permute.xlu0 %7096 }
 0x75b   : > { %v7216_v16 = vsel %vm873_vm5, %v7212_v6, %v7095_v33  ;;  %v7217_v0 = vsel %vm873_vm5, %v7213_v17, %v7097_v38 }
 0x75e   : > { %v7107_v24 = vpop.permute.xlu1 %7106  ;;  %v7109_v35 = vpop.permute.xlu0 %7108 }
 0x75f   : > { %v7218_v56 = vsel %vm878_vm6, %v7214_v22, %v7107_v24  ;;  %v7219_v9 = vsel %vm878_vm6, %v7215_v8, %v7109_v35 }
 0x762   : > { %v7111_v4 = vpop.permute.xlu1 %7110  ;;  %v7113_v63 = vpop.permute.xlu0 %7112 }
 0x763   : > { %v7220_v61 = vsel %vm878_vm6, %v7216_v16, %v7111_v4  ;;  %v7221_v49 = vsel %vm878_vm6, %v7217_v0, %v7113_v63 }
 0x766   : > { %v7123_v28 = vpop.permute.xlu1 %7122  ;;  %v7125_v42 = vpop.permute.xlu0 %7124 }
 0x767   : > { %v7222_v32 = vsel %vm883_vm7, %v7218_v56, %v7123_v28  ;;  %v7223_v59 = vsel %vm883_vm7, %v7219_v9, %v7125_v42 }
 0x76a   : > { %v7127_v55 = vpop.permute.xlu1 %7126  ;;  %v7129_v5 = vpop.permute.xlu0 %7128 }
 0x76b   : > { %v7224_v58 = vsel %vm883_vm7, %v7220_v61, %v7127_v55 }
 0x76e   : > { %v7139_v10 = vpop.permute.xlu1 %7138  ;;  %v7141_v2 = vpop.permute.xlu0 %7140 }
 0x76f   : > { %v7226_v34 = vsel %vm888_vm8, %v7222_v32, %v7139_v10  ;;  %v7227_v12 = vsel %vm888_vm8, %v7223_v59, %v7141_v2 }
 0x772   : > { %v7143_v45 = vpop.permute.xlu1 %7142  ;;  %v7145_v47 = vpop.permute.xlu0 %7144 }
 0x773   : > { %v7228_v37 = vsel %vm888_vm8, %v7224_v58, %v7143_v45 }
 0x776   : > { %v7045_v43 = vpop.permute.xlu1 %7044  ;;  %v7047_v51 = vpop.permute.xlu0 %7046 }
 0x777   : > { %v7203_v29 = vsel %vm893_vm9, %v7199_v21, %v7045_v43  ;;  %v7204_v54 = vsel %vm893_vm9, %v7200_v13, %v7047_v51  ;;  %v7225_v21 = vsel %vm883_vm7, %v7221_v49, %v7129_v5 }
 0x778   : > { %v7229_v35 = vsel %vm888_vm8, %v7225_v21, %v7145_v47 }
 0x77a   : > { %v7049_v36 = vpop.permute.xlu1 %7048  ;;  %v7155_v31 = vpop.permute.xlu0 %7154 }
 0x77b   : > { %v7230_v18 = vsel %vm893_vm9, %v7226_v34, %v7155_v31  ;;  %v7205_v4 = vsel %vm893_vm9, %v11238_v62, %v7049_v36 }
 0x77e   : > { %v7157_v25 = vpop.permute.xlu1 %7156  ;;  %v7159_v19 = vpop.permute.xlu0 %7158 }
 0x77f   : > { %v7231_v1 = vsel %vm893_vm9, %v7227_v12, %v7157_v25  ;;  %v7232_v41 = vsel %vm893_vm9, %v7228_v37, %v7159_v19 }
 0x782   : > { %v7161_v30 = vpop.permute.xlu1 %7160  ;;  %v7059_v39 = vpop.permute.xlu0 %7058 }
 0x783   : > { %v7206_v7 = vsel %vm898_vm10, %v7202_v14, %v7059_v39  ;;  %v7233_v63 = vsel %vm893_vm9, %v7229_v35, %v7161_v30 }
 0x786   : > { %v7061_v23 = vpop.permute.xlu1 %7060  ;;  %v7063_v27 = vpop.permute.xlu0 %7062 }
 0x787   : > { %v7207_v20 = vsel %vm898_vm10, %v7203_v29, %v7061_v23  ;;  %v7208_v40 = vsel %vm898_vm10, %v7204_v54, %v7063_v27 }
 0x78a   : > { %v7065_v52 = vpop.permute.xlu1 %7064  ;;  %v7171_v60 = vpop.permute.xlu0 %7170 }
 0x78b   : > { %v7234_v15 = vsel %vm898_vm10, %v7230_v18, %v7171_v60  ;;  %v7209_v5 = vsel %vm898_vm10, %v7205_v4, %v7065_v52 }
 0x78c   : > { %v7246_v53 = vcombine.low %v7206_v7, %v7234_v15 }
 0x78e   : > { %v7253_v46 = vrot.slane %v7246_v53, %v11535_v57  ;;  %v7173_v44 = vpop.permute.xlu1 %7172  ;;  %v7175_v3 = vpop.permute.xlu0 %7174 }
 0x78f   : > { %v7235_v11 = vsel %vm898_vm10, %v7231_v1, %v7173_v44  ;;  %v7236_v33 = vsel %vm898_vm10, %v7232_v41, %v7175_v3 }
 0x790   : > { %v7260_v13 = vrot.slane %v7253_v46, %v11535_v57  ;;  %v7261_v38 = vcombine.low %v7207_v20, %v7235_v11  ;;  %v7276_v24 = vcombine.low %v7208_v40, %v7236_v33 }
 0x792   : > { %7465 = vst.msk [vmem:[%s8608_s6 + $0x10] ss:$8 sm:$0x3] %vm8582_vm11, %v7260_v13  ;;  %v7268_v28 = vrot.slane %v7261_v38, %v11535_v57  ;;  %v7283_v42 = vrot.slane %v7276_v24, %v11535_v57  ;;  %v7177_v55 = vpop.permute.xlu1 %7176 }
 0x793   : > { %v7237_v10 = vsel %vm898_vm10, %v7233_v63, %v7177_v55 }
 0x794   : > { %v7275_v2 = vrot.slane %v7268_v28, %v11535_v57  ;;  %v7290_v45 = vrot.slane %v7283_v42, %v11535_v57  ;;  %v7291_v47 = vcombine.low %v7209_v5, %v7237_v10 }
 0x796   : > { %7466 = vst.msk [vmem:[%s8608_s6 + $0x30] ss:$8 sm:$0x3] %vm8582_vm11, %v7275_v2  ;;  %7467 = vst.msk [vmem:[%s8608_s6 + $0x50] ss:$8 sm:$0x3] %vm8582_vm11, %v7290_v45  ;;  %v7298_v62 = vrot.slane %v7291_v47, %v11535_v57 }
 0x798   : > { %v7305_v43 = vrot.slane %v7298_v62, %v11535_v57 }
 0x79a   : > { %7468 = vst.msk [vmem:[%s8608_s6 + $0x70] ss:$8 sm:$0x3] %vm8582_vm11, %v7305_v43 }
 0x79b PF: > { %s14_s11 = sadd.s32 1, %s7626_s11   ;;  %s11564_s6 = smov %s7610_s7 }
 0x79c   : > { %p11_p9 = scmp.ge.s32.totalorder %s14_s11, 4   ;;  %s11565_s7 = smov %s7614_s8 }
 0x79d   : > { %s11566_s8 = smov %s7704_s18  ;;  %s11567_s9 = smov %s7622_s10 }
 0x79e   : > { %s11568_s10 = smov %s11570_s13  ;;  %13 = sbr.rel (!%p11_p9) target bundleno = 4 (0x4), region = 99 }
 0x7a5   :  { %7354 = vsyncpa [#allocation4], 1 }
 0x7a6   :  { %7356 = vsyncpa [#allocation4 + $0x1], 1 }

</bundles_post_ra>
